<compile_context>
chip_gen: v6e
topology: v6e:2x2x1
jax: 0.10.0
libtpu: 0.0.40
codegen_flags: <defaults>
</compile_context>

<pallas_src>
import functools
import math

import jax
import jax.numpy as jnp
import numpy as np
from jax.experimental import pallas as pl
from jax.experimental.pallas import tpu as pltpu

NUM_HEADS = 12
_VMEM_LIMIT = 32 * 1024 * 1024


# ---------------------------------------------------------------------------
# Kernel A: fused intent+slot cross attention (grid over batch)
# ---------------------------------------------------------------------------
def _attention_kernel(intent_ref, slot_ref, bias_ref,
                      wqk_a_ref, bqk_a_ref, wqk_b_ref, bqk_b_ref,
                      wv_ref, bv_ref, cos_ref, sin_ref,
                      ctx_i_ref, ctx_s_ref, *, num_heads, head_dim, v_head_dim):
    f32 = jnp.float32
    x_intent = intent_ref[0].astype(f32)     # [S, H]
    x_slot = slot_ref[0].astype(f32)         # [S, H]
    cos = cos_ref[...]                       # [S, A]  per-head [cos | cos]
    sin = sin_ref[...]                       # [S, A]  per-head [-sin | +sin]
    key_bias = bias_ref[0]                   # [1, S]  additive key mask
    inv_sqrt_d = 1.0 / math.sqrt(head_dim)

    def proj_rope(x, idx):
        # "a": weight columns permuted to [evens | odds] per head
        # "b": weight columns permuted to [odds | evens] per head (rotation partner)
        a = jnp.dot(x, wqk_a_ref[idx], preferred_element_type=f32) + bqk_a_ref[idx]
        b = jnp.dot(x, wqk_b_ref[idx], preferred_element_type=f32) + bqk_b_ref[idx]
        # per head: [x1*cos - x2*sin | x2*cos + x1*sin]  ==  roEmb(x)
        return a * cos + b * sin

    q_intent = proj_rope(x_intent, 0)        # query(intent)
    k_intent = proj_rope(x_slot, 1)          # key(slot)
    q_slot = proj_rope(x_slot, 2)            # query_slot(slot)
    k_slot = proj_rope(x_intent, 3)          # key_slot(intent)
    v_intent = jnp.dot(x_slot, wv_ref[0], preferred_element_type=f32) + bv_ref[0]
    v_slot = jnp.dot(x_intent, wv_ref[1], preferred_element_type=f32) + bv_ref[1]

    def attend(q, k, v):
        heads = []
        for h in range(num_heads):
            qh = q[:, h * head_dim:(h + 1) * head_dim]       # [S, hd]
            kh = k[:, h * head_dim:(h + 1) * head_dim]       # [S, hd]
            vh = v[:, h * v_head_dim:(h + 1) * v_head_dim]   # [S, vd]
            # contract on head_dim for both operands: no explicit K transpose.
            s = jax.lax.dot_general(qh, kh, (((1,), (1,)), ((), ())),
                                    preferred_element_type=f32)
            s = s * inv_sqrt_d + key_bias                    # [S, S]
            s = s - jnp.max(s, axis=-1, keepdims=True)
            e = jnp.exp(s)
            # NOTE: pl.reciprocal(..., approx=True) would push the normalize to the EUP,
            # but its bf16-grade precision risks the correctness check (see review note),
            # so the exact normalize is kept.
            p = e / jnp.sum(e, axis=-1, keepdims=True)
            heads.append(jnp.dot(p, vh, preferred_element_type=f32))
        # merge heads once -> single lane-dense store per path
        return jnp.concatenate(heads, axis=-1)               # [S, V]

    ctx_i_ref[0] = attend(q_intent, k_intent, v_intent).astype(ctx_i_ref.dtype)
    ctx_s_ref[0] = attend(q_slot, k_slot, v_slot).astype(ctx_s_ref.dtype)


def _rope_permutations(num_heads, head_dim):
    half = head_dim // 2
    perm_a, perm_b = [], []
    for h in range(num_heads):
        base = h * head_dim
        evens = [base + 2 * k for k in range(half)]
        odds = [base + 2 * k + 1 for k in range(half)]
        perm_a.extend(evens + odds)
        perm_b.extend(odds + evens)
    return np.asarray(perm_a, np.int32), np.asarray(perm_b, np.int32)


def _rope_tables(seq_len, head_dim, num_heads, dtype):
    # RoFormerSinusoidalPositionalEmb: sin/cos share frequency 10000^(-2k/dim)
    half = head_dim // 2
    inv_freq = np.power(10000.0, -2.0 * np.arange(half) / head_dim)
    ang = np.arange(seq_len)[:, None] * inv_freq[None, :]            # [S, half]
    cos = np.cos(ang)
    sin = np.sin(ang)
    cos_full = np.tile(np.concatenate([cos, cos], axis=-1), (1, num_heads))
    sin_full = np.tile(np.concatenate([-sin, sin], axis=-1), (1, num_heads))
    return jnp.asarray(cos_full, dtype), jnp.asarray(sin_full, dtype)


def _is_cross_attention(intent, slot, mask, attn):
    B, S, H = intent.shape
    A = attn["wq"].shape[0]            # all_head_size of the Q/K projections (= 2H)
    V = attn["wv"].shape[0]            # out_size of the value projections (= H)
    head_dim = A // NUM_HEADS
    v_head_dim = V // NUM_HEADS

    perm_a, perm_b = _rope_permutations(NUM_HEADS, head_dim)

    def qk_pair(w, b):
        wt = w.T                        # [H, A]: MXU consumes the contraction directly
        return wt[:, perm_a], wt[:, perm_b], b[perm_a], b[perm_b]

    stacked = [qk_pair(attn[w], attn[b]) for w, b in
               (("wq", "bq"), ("wk", "bk"), ("wq_s", "bq_s"), ("wk_s", "bk_s"))]
    wqk_a = jnp.stack([s[0] for s in stacked])                # [4, H, A]
    wqk_b = jnp.stack([s[1] for s in stacked])                # [4, H, A]
    bqk_a = jnp.stack([s[2] for s in stacked])[:, None, :]    # [4, 1, A]
    bqk_b = jnp.stack([s[3] for s in stacked])[:, None, :]    # [4, 1, A]
    wv = jnp.stack([attn["wv"].T, attn["wv_s"].T])            # [2, H, V]
    bv = jnp.stack([attn["bv"], attn["bv_s"]])[:, None, :]    # [2, 1, V]

    cos_full, sin_full = _rope_tables(S, head_dim, NUM_HEADS, jnp.float32)
    key_bias = ((1.0 - mask.astype(jnp.float32)) * -10000.0).reshape(B, 1, S)

    kernel = functools.partial(_attention_kernel, num_heads=NUM_HEADS,
                               head_dim=head_dim, v_head_dim=v_head_dim)

    flops = int(2 * B * S * H * (8 * A + 2 * V)
                + 4 * B * NUM_HEADS * S * S * (head_dim + v_head_dim)
                + 4 * B * S * A)
    transcendentals = int(2 * B * NUM_HEADS * S * S)
    bytes_accessed = int(4 * (2 * B * S * H + 2 * B * S * V + 8 * H * A + 8 * A
                              + 2 * H * V + 2 * V + 2 * S * A + B * S))

    weight0 = lambda b: (0, 0, 0)
    ctx_intent, ctx_slot = pl.pallas_call(
        kernel,
        grid=(B,),
        in_specs=[
            pl.BlockSpec((1, S, H), lambda b: (b, 0, 0)),     # intent tokens
            pl.BlockSpec((1, S, H), lambda b: (b, 0, 0)),     # slot tokens
            pl.BlockSpec((1, 1, S), lambda b: (b, 0, 0)),     # additive key mask
            pl.BlockSpec((4, H, A), weight0),                 # QK weights (perm "a")
            pl.BlockSpec((4, 1, A), weight0),                 # QK biases  (perm "a")
            pl.BlockSpec((4, H, A), weight0),                 # QK weights (perm "b")
            pl.BlockSpec((4, 1, A), weight0),                 # QK biases  (perm "b")
            pl.BlockSpec((2, H, V), weight0),                 # value weights
            pl.BlockSpec((2, 1, V), weight0),                 # value biases
            pl.BlockSpec((S, A), lambda b: (0, 0)),           # RoPE cos table
            pl.BlockSpec((S, A), lambda b: (0, 0)),           # RoPE sin table
        ],
        out_specs=(
            pl.BlockSpec((1, S, V), lambda b: (b, 0, 0)),
            pl.BlockSpec((1, S, V), lambda b: (b, 0, 0)),
        ),
        out_shape=(
            jax.ShapeDtypeStruct((B, S, V), intent.dtype),
            jax.ShapeDtypeStruct((B, S, V), intent.dtype),
        ),
        compiler_params=pltpu.CompilerParams(
            dimension_semantics=("parallel",),
            vmem_limit_bytes=_VMEM_LIMIT),
        cost_estimate=pl.CostEstimate(flops=flops,
                                      transcendentals=transcendentals,
                                      bytes_accessed=bytes_accessed),
    )(intent, slot, key_bias, wqk_a, bqk_a, wqk_b, bqk_b, wv, bv,
      cos_full, sin_full)
    return ctx_intent, ctx_slot


# ---------------------------------------------------------------------------
# Kernel B: fused SelfOutput + Intermediate (FFN) for both paths (grid over tokens)
# ---------------------------------------------------------------------------
def _out_ffn_kernel(ctx_i_ref, res_i_ref, ctx_s_ref, res_s_ref,
                    wd_ref, bd_ref, g1_ref, b1_ref,
                    win_ref, bin_ref, wout_ref, bout_ref, g2_ref, b2_ref,
                    out_i_ref, out_s_ref, *, eps):
    f32 = jnp.float32

    def layer_norm(x, g, b):
        u = jnp.mean(x, axis=-1, keepdims=True)
        d = x - u
        var = jnp.mean(d * d, axis=-1, keepdims=True)
        return g * (d * jax.lax.rsqrt(var + eps)) + b

    def path(p, ctx, resid):
        # SelfOutput: dense + residual + LayerNorm (dropout = identity, eval mode)
        h = jnp.dot(ctx, wd_ref[p], preferred_element_type=f32) + bd_ref[p]
        h = layer_norm(h + resid, g1_ref[p], b1_ref[p])
        # Intermediate: dense_in -> ReLU -> dense_out + residual + LayerNorm
        f = jnp.dot(h, win_ref[p], preferred_element_type=f32) + bin_ref[p]
        f = jnp.maximum(f, 0.0)
        f = jnp.dot(f, wout_ref[p], preferred_element_type=f32) + bout_ref[p]
        return layer_norm(f + h, g2_ref[p], b2_ref[p])

    out_i_ref[...] = path(0, ctx_i_ref[...].astype(f32),
                          res_i_ref[...].astype(f32)).astype(out_i_ref.dtype)
    out_s_ref[...] = path(1, ctx_s_ref[...].astype(f32),
                          res_s_ref[...].astype(f32)).astype(out_s_ref.dtype)


def _pick_block_m(m, cap):
    best = None
    tile = 8
    while tile <= min(m, cap):
        if m % tile == 0:
            best = tile
        tile += 8
    return best if best is not None else m


def _output_ffn(ctx_i, res_i, ctx_s, res_s, params, *, block_m):
    M, H = ctx_i.shape
    F = params["i_ff"]["w_in"].shape[0]            # intermediate size (4H)

    # stacked [intent, slot] weights, pre-transposed to [in, out]
    wd = jnp.stack([params["i_out"]["w"].T, params["s_out"]["w"].T])          # [2, H, H]
    bd = jnp.stack([params["i_out"]["b"], params["s_out"]["b"]])[:, None, :]
    g1 = jnp.stack([params["i_out"]["g"], params["s_out"]["g"]])[:, None, :]
    b1 = jnp.stack([params["i_out"]["beta"], params["s_out"]["beta"]])[:, None, :]
    win = jnp.stack([params["i_ff"]["w_in"].T, params["s_ff"]["w_in"].T])     # [2, H, F]
    bin_ = jnp.stack([params["i_ff"]["b_in"], params["s_ff"]["b_in"]])[:, None, :]
    wout = jnp.stack([params["i_ff"]["w_out"].T, params["s_ff"]["w_out"].T])  # [2, F, H]
    bout = jnp.stack([params["i_ff"]["b_out"], params["s_ff"]["b_out"]])[:, None, :]
    g2 = jnp.stack([params["i_ff"]["g"], params["s_ff"]["g"]])[:, None, :]
    b2 = jnp.stack([params["i_ff"]["beta"], params["s_ff"]["beta"]])[:, None, :]

    tm = _pick_block_m(M, block_m)
    grid = (M // tm,)

    act_spec = pl.BlockSpec((tm, H), lambda i: (i, 0))
    w0 = lambda i: (0, 0, 0)

    flops = int(2 * (2 * M * H * H + 4 * M * H * F) + 20 * M * H)
    transcendentals = int(4 * M)
    bytes_accessed = int(4 * (6 * M * H + 2 * (H * H + 2 * H * F) + 10 * H + 2 * F))

    out_i, out_s = pl.pallas_call(
        functools.partial(_out_ffn_kernel, eps=1e-12),
        grid=grid,
        in_specs=[
            act_spec, act_spec, act_spec, act_spec,
            pl.BlockSpec((2, H, H), w0), pl.BlockSpec((2, 1, H), w0),
            pl.BlockSpec((2, 1, H), w0), pl.BlockSpec((2, 1, H), w0),
            pl.BlockSpec((2, H, F), w0), pl.BlockSpec((2, 1, F), w0),
            pl.BlockSpec((2, F, H), w0), pl.BlockSpec((2, 1, H), w0),
            pl.BlockSpec((2, 1, H), w0), pl.BlockSpec((2, 1, H), w0),
        ],
        out_specs=(pl.BlockSpec((tm, H), lambda i: (i, 0)),
                   pl.BlockSpec((tm, H), lambda i: (i, 0))),
        out_shape=(jax.ShapeDtypeStruct((M, H), ctx_i.dtype),
                   jax.ShapeDtypeStruct((M, H), ctx_i.dtype)),
        compiler_params=pltpu.CompilerParams(
            dimension_semantics=("parallel",),
            vmem_limit_bytes=_VMEM_LIMIT),
        cost_estimate=pl.CostEstimate(flops=flops,
                                      transcendentals=transcendentals,
                                      bytes_accessed=bytes_accessed),
    )(ctx_i, res_i, ctx_s, res_s,
      wd, bd, g1, b1, win, bin_, wout, bout, g2, b2)
    return out_i, out_s


# ---------------------------------------------------------------------------
# Full block
# ---------------------------------------------------------------------------
def i_s_block_forward(params, h_intent_input, h_slot_input, mask, *, block_m=64):
    """JAX/Pallas equivalent of I_S_Block.forward.

    Returns (H_intent, H_slot), matching the PyTorch module.
    """
    # TODO(synk): nn.Dropout is omitted (eval/inference forward); train-mode dropout
    # would use pltpu.prng_seed / pltpu.stateful_bernoulli inside the kernels.
    B, S, H = h_intent_input.shape
    ctx_intent, ctx_slot = _is_cross_attention(h_intent_input, h_slot_input,
                                               mask, params["attn"])
    M = B * S
    h_intent, h_slot = _output_ffn(
        ctx_intent.reshape(M, H), h_intent_input.reshape(M, H),
        ctx_slot.reshape(M, H), h_slot_input.reshape(M, H),
        params, block_m=block_m)
    return h_intent.reshape(B, S, H), h_slot.reshape(B, S, H)


# ---------------------------------------------------------------------------
# Pure-JAX reference (mirrors the PyTorch code path exactly, eval mode)
# ---------------------------------------------------------------------------
def _reference_forward(params, intent, slot, mask):
    prec = jax.lax.Precision.HIGHEST
    B, S, H = intent.shape
    attn = params["attn"]
    A = attn["wq"].shape[0]
    HD = A // NUM_HEADS
    VD = H // NUM_HEADS

    def linear(x, w, b):
        return jnp.einsum("bsh,oh->bso", x, w, precision=prec) + b

    def split_heads(x, hd):
        b, s, d = x.shape
        return x.reshape(b, s, d // hd, hd).transpose(0, 2, 1, 3)

    # exact RoFormerSinusoidalPositionalEmb construction
    pos = np.arange(S)[:, None]
    j = np.arange(HD)[None, :]
    enc = pos / np.power(10000.0, 2.0 * (j // 2) / HD)
    sentinel = HD // 2
    table = np.zeros((S, HD), np.float64)
    table[:, :sentinel] = np.sin(enc[:, 0::2])
    table[:, sentinel:] = np.cos(enc[:, 1::2])
    sin = jnp.asarray(table[:, :sentinel], jnp.float32)[None, None]
    cos = jnp.asarray(table[:, sentinel:], jnp.float32)[None, None]

    def ro(x):
        x1, x2 = x[..., 0::2], x[..., 1::2]
        return jnp.concatenate([x1 * cos - x2 * sin, x2 * cos + x1 * sin], axis=-1)

    q = ro(split_heads(linear(intent, attn["wq"], attn["bq"]), HD))
    k = ro(split_heads(linear(slot, attn["wk"], attn["bk"]), HD))
    v = split_heads(linear(slot, attn["wv"], attn["bv"]), VD)
    q_s = ro(split_heads(linear(slot, attn["wq_s"], attn["bq_s"]), HD))
    k_s = ro(split_heads(linear(intent, attn["wk_s"], attn["bk_s"]), HD))
    v_s = split_heads(linear(intent, attn["wv_s"], attn["bv_s"]), VD)

    bias = ((1.0 - mask.astype(jnp.float32)) * -10000.0)[:, None, None, :]

    def attend(q_, k_, v_):
        s_ = jnp.einsum("bhqd,bhkd->bhqk", q_, k_, precision=prec)
        s_ = s_ / math.sqrt(HD) + bias
        p_ = jax.nn.softmax(s_, axis=-1)
        c = jnp.einsum("bhqk,bhkd->bhqd", p_, v_, precision=prec)
        return c.transpose(0, 2, 1, 3).reshape(B, S, H)

    ctx_intent = attend(q, k, v)
    ctx_slot = attend(q_s, k_s, v_s)

    def layer_norm(x, g, b, eps=1e-12):
        u = x.mean(-1, keepdims=True)
        s_ = ((x - u) ** 2).mean(-1, keepdims=True)
        return g * (x - u) / jnp.sqrt(s_ + eps) + b

    def self_output(x, resid, p):
        h = jnp.einsum("bsh,oh->bso", x, p["w"], precision=prec) + p["b"]
        return layer_norm(h + resid, p["g"], p["beta"])

    def feed_forward(x, p):
        h = jnp.einsum("bsh,oh->bso", x, p["w_in"], precision=prec) + p["b_in"]
        h = jnp.maximum(h, 0.0)
        h = jnp.einsum("bsf,of->bso", h, p["w_out"], precision=prec) + p["b_out"]
        return layer_norm(h + x, p["g"], p["beta"])

    h_slot = self_output(ctx_slot, slot, params["s_out"])
    h_intent = self_output(ctx_intent, intent, params["i_out"])
    h_slot = feed_forward(h_slot, params["s_ff"])
    h_intent = feed_forward(h_intent, params["i_ff"])
    return h_intent, h_slot


if __name__ == "__main__":
    # hidden must be divisible by 12 (value head) and give an even QK head dim.
    B, S, H = 2, 16, 48          # batch, seq (= max_seq_len), hidden
    A = 2 * H                    # all_head_size inside I_S_SelfAttention(hidden=2H)
    F = 4 * H                    # intermediate size

    key = jax.random.PRNGKey(0)
    ks = iter(jax.random.split(key, 40))

    def w(shape, scale=0.1):
        return scale * jax.random.normal(next(ks), shape, jnp.float32)

    params = {
        "attn": {
            "wq": w((A, H)), "bq": w((A,)),
            "wk": w((A, H)), "bk": w((A,)),
            "wq_s": w((A, H)), "bq_s": w((A,)),
            "wk_s": w((A, H)), "bk_s": w((A,)),
            "wv": w((H, H)), "bv": w((H,)),
            "wv_s": w((H, H)), "bv_s": w((H,)),
        },
        "i_out": {"w": w((H, H)), "b": w((H,)),
                  "g": 1.0 + w((H,)), "beta": w((H,))},
        "s_out": {"w": w((H, H)), "b": w((H,)),
                  "g": 1.0 + w((H,)), "beta": w((H,))},
        "i_ff": {"w_in": w((F, H)), "b_in": w((F,)),
                 "w_out": w((H, F)), "b_out": w((H,)),
                 "g": 1.0 + w((H,)), "beta": w((H,))},
        "s_ff": {"w_in": w((F, H)), "b_in": w((F,)),
                 "w_out": w((H, F)), "b_out": w((H,)),
                 "g": 1.0 + w((H,)), "beta": w((H,))},
    }

    h_intent_in = jax.random.normal(next(ks), (B, S, H), jnp.float32)
    h_slot_in = jax.random.normal(next(ks), (B, S, H), jnp.float32)
    # padding mask: batch 0 fully valid, batch 1 has 5 padded key positions
    mask = jnp.ones((B, S), jnp.float32).at[1, -5:].set(0.0)

    fwd = jax.jit(functools.partial(i_s_block_forward, block_m=16))
    h_intent, h_slot = fwd(params, h_intent_in, h_slot_in, mask)
    jax.block_until_ready((h_intent, h_slot))

    ref_intent, ref_slot = _reference_forward(params, h_intent_in, h_slot_in, mask)
    assert h_intent.shape == (B, S, H) and h_slot.shape == (B, S, H)
    assert jnp.allclose(h_intent, ref_intent, atol=1e-3, rtol=1e-3), (
        float(jnp.max(jnp.abs(h_intent - ref_intent))))
    assert jnp.allclose(h_slot, ref_slot, atol=1e-3, rtol=1e-3), (
        float(jnp.max(jnp.abs(h_slot - ref_slot))))

    print("KERNEL_OK")
</pallas_src>

<mosaic_0001>
module attributes {stable_mosaic.version = 11 : i64} {
  func.func @_attention_kernel(%arg0: i32, %arg1: memref<1x16x48xf32, #tpu.memory_space<vmem>>, %arg2: memref<1x16x48xf32, #tpu.memory_space<vmem>>, %arg3: memref<1x1x16xf32, #tpu.memory_space<vmem>>, %arg4: memref<4x48x96xf32, #tpu.memory_space<vmem>>, %arg5: memref<4x1x96xf32, #tpu.memory_space<vmem>>, %arg6: memref<4x48x96xf32, #tpu.memory_space<vmem>>, %arg7: memref<4x1x96xf32, #tpu.memory_space<vmem>>, %arg8: memref<2x48x48xf32, #tpu.memory_space<vmem>>, %arg9: memref<2x1x48xf32, #tpu.memory_space<vmem>>, %arg10: memref<16x96xf32, #tpu.memory_space<vmem>>, %arg11: memref<16x96xf32, #tpu.memory_space<vmem>>, %arg12: memref<1x16x48xf32, #tpu.memory_space<vmem>>, %arg13: memref<1x16x48xf32, #tpu.memory_space<vmem>>) attributes {dimension_semantics = [#tpu.dimension_semantics<parallel>], iteration_bounds = array<i64: 2>, scalar_prefetch = 0 : i64, scratch_operands = 0 : i64, tpu.core_type = #tpu.core_type<tc>, window_params = [{transform_indices = @transform_0, window_bounds = array<i64: 1, 16, 48>}, {transform_indices = @transform_1, window_bounds = array<i64: 1, 16, 48>}, {transform_indices = @transform_2, window_bounds = array<i64: 1, 1, 16>}, {pipeline_mode = #tpu.pipeline_mode<synchronous>, transform_indices = @transform_3, window_bounds = array<i64: 4, 48, 96>}, {pipeline_mode = #tpu.pipeline_mode<synchronous>, transform_indices = @transform_4, window_bounds = array<i64: 4, 1, 96>}, {pipeline_mode = #tpu.pipeline_mode<synchronous>, transform_indices = @transform_5, window_bounds = array<i64: 4, 48, 96>}, {pipeline_mode = #tpu.pipeline_mode<synchronous>, transform_indices = @transform_6, window_bounds = array<i64: 4, 1, 96>}, {pipeline_mode = #tpu.pipeline_mode<synchronous>, transform_indices = @transform_7, window_bounds = array<i64: 2, 48, 48>}, {pipeline_mode = #tpu.pipeline_mode<synchronous>, transform_indices = @transform_8, window_bounds = array<i64: 2, 1, 48>}, {pipeline_mode = #tpu.pipeline_mode<synchronous>, transform_indices = @transform_9, window_bounds = array<i64: 16, 96>}, {pipeline_mode = #tpu.pipeline_mode<synchronous>, transform_indices = @transform_10, window_bounds = array<i64: 16, 96>}, {transform_indices = @transform_11, window_bounds = array<i64: 1, 16, 48>}, {transform_indices = @transform_12, window_bounds = array<i64: 1, 16, 48>}]} {
    %c0 = arith.constant 0 : index
    %c0_0 = arith.constant 0 : index
    %c0_1 = arith.constant 0 : index
    %0 = vector.load %arg1[%c0, %c0_0, %c0_1] : memref<1x16x48xf32, #tpu.memory_space<vmem>>, vector<1x16x48xf32>
    %1 = vector.shape_cast %0 : vector<1x16x48xf32> to vector<16x48xf32>
    %c0_2 = arith.constant 0 : index
    %c0_3 = arith.constant 0 : index
    %c0_4 = arith.constant 0 : index
    %2 = vector.load %arg2[%c0_2, %c0_3, %c0_4] : memref<1x16x48xf32, #tpu.memory_space<vmem>>, vector<1x16x48xf32>
    %3 = vector.shape_cast %2 : vector<1x16x48xf32> to vector<16x48xf32>
    %c0_5 = arith.constant 0 : index
    %c0_6 = arith.constant 0 : index
    %4 = vector.load %arg10[%c0_5, %c0_6] : memref<16x96xf32, #tpu.memory_space<vmem>>, vector<16x96xf32>
    %c0_7 = arith.constant 0 : index
    %c0_8 = arith.constant 0 : index
    %5 = vector.load %arg11[%c0_7, %c0_8] : memref<16x96xf32, #tpu.memory_space<vmem>>, vector<16x96xf32>
    %c0_9 = arith.constant 0 : index
    %c0_10 = arith.constant 0 : index
    %c0_11 = arith.constant 0 : index
    %6 = vector.load %arg3[%c0_9, %c0_10, %c0_11] : memref<1x1x16xf32, #tpu.memory_space<vmem>>, vector<1x1x16xf32>
    %7 = vector.shape_cast %6 : vector<1x1x16xf32> to vector<1x16xf32>
    %c0_12 = arith.constant 0 : index
    %c0_13 = arith.constant 0 : index
    %c0_14 = arith.constant 0 : index
    %8 = vector.load %arg4[%c0_12, %c0_13, %c0_14] : memref<4x48x96xf32, #tpu.memory_space<vmem>>, vector<1x48x96xf32>
    %9 = vector.shape_cast %8 : vector<1x48x96xf32> to vector<48x96xf32>
    %cst = arith.constant dense<0.000000e+00> : vector<16x96xf32>
    %10 = tpu.matmul %1, %9, %cst {dimension_numbers = #tpu.dot_dimension_numbers<[1], [0], [0], [1], [0, 0, 1, 1], [], []>} : vector<16x48xf32>, vector<48x96xf32>, vector<16x96xf32> -> vector<16x96xf32>
    %c0_15 = arith.constant 0 : index
    %c0_16 = arith.constant 0 : index
    %c0_17 = arith.constant 0 : index
    %11 = vector.load %arg5[%c0_15, %c0_16, %c0_17] : memref<4x1x96xf32, #tpu.memory_space<vmem>>, vector<1x1x96xf32>
    %12 = vector.shape_cast %11 : vector<1x1x96xf32> to vector<1x96xf32>
    %13 = vector.broadcast %12 : vector<1x96xf32> to vector<16x96xf32>
    %14 = arith.addf %10, %13 : vector<16x96xf32>
    %c0_18 = arith.constant 0 : index
    %c0_19 = arith.constant 0 : index
    %c0_20 = arith.constant 0 : index
    %15 = vector.load %arg6[%c0_18, %c0_19, %c0_20] : memref<4x48x96xf32, #tpu.memory_space<vmem>>, vector<1x48x96xf32>
    %16 = vector.shape_cast %15 : vector<1x48x96xf32> to vector<48x96xf32>
    %cst_21 = arith.constant dense<0.000000e+00> : vector<16x96xf32>
    %17 = tpu.matmul %1, %16, %cst_21 {dimension_numbers = #tpu.dot_dimension_numbers<[1], [0], [0], [1], [0, 0, 1, 1], [], []>} : vector<16x48xf32>, vector<48x96xf32>, vector<16x96xf32> -> vector<16x96xf32>
    %c0_22 = arith.constant 0 : index
    %c0_23 = arith.constant 0 : index
    %c0_24 = arith.constant 0 : index
    %18 = vector.load %arg7[%c0_22, %c0_23, %c0_24] : memref<4x1x96xf32, #tpu.memory_space<vmem>>, vector<1x1x96xf32>
    %19 = vector.shape_cast %18 : vector<1x1x96xf32> to vector<1x96xf32>
    %20 = vector.broadcast %19 : vector<1x96xf32> to vector<16x96xf32>
    %21 = arith.addf %17, %20 : vector<16x96xf32>
    %22 = arith.mulf %14, %4 : vector<16x96xf32>
    %23 = arith.mulf %21, %5 : vector<16x96xf32>
    %24 = arith.addf %22, %23 : vector<16x96xf32>
    %c1 = arith.constant 1 : index
    %c0_25 = arith.constant 0 : index
    %c0_26 = arith.constant 0 : index
    %25 = vector.load %arg4[%c1, %c0_25, %c0_26] : memref<4x48x96xf32, #tpu.memory_space<vmem>>, vector<1x48x96xf32>
    %26 = vector.shape_cast %25 : vector<1x48x96xf32> to vector<48x96xf32>
    %cst_27 = arith.constant dense<0.000000e+00> : vector<16x96xf32>
    %27 = tpu.matmul %3, %26, %cst_27 {dimension_numbers = #tpu.dot_dimension_numbers<[1], [0], [0], [1], [0, 0, 1, 1], [], []>} : vector<16x48xf32>, vector<48x96xf32>, vector<16x96xf32> -> vector<16x96xf32>
    %c1_28 = arith.constant 1 : index
    %c0_29 = arith.constant 0 : index
    %c0_30 = arith.constant 0 : index
    %28 = vector.load %arg5[%c1_28, %c0_29, %c0_30] : memref<4x1x96xf32, #tpu.memory_space<vmem>>, vector<1x1x96xf32>
    %29 = vector.shape_cast %28 : vector<1x1x96xf32> to vector<1x96xf32>
    %30 = vector.broadcast %29 : vector<1x96xf32> to vector<16x96xf32>
    %31 = arith.addf %27, %30 : vector<16x96xf32>
    %c1_31 = arith.constant 1 : index
    %c0_32 = arith.constant 0 : index
    %c0_33 = arith.constant 0 : index
    %32 = vector.load %arg6[%c1_31, %c0_32, %c0_33] : memref<4x48x96xf32, #tpu.memory_space<vmem>>, vector<1x48x96xf32>
    %33 = vector.shape_cast %32 : vector<1x48x96xf32> to vector<48x96xf32>
    %cst_34 = arith.constant dense<0.000000e+00> : vector<16x96xf32>
    %34 = tpu.matmul %3, %33, %cst_34 {dimension_numbers = #tpu.dot_dimension_numbers<[1], [0], [0], [1], [0, 0, 1, 1], [], []>} : vector<16x48xf32>, vector<48x96xf32>, vector<16x96xf32> -> vector<16x96xf32>
    %c1_35 = arith.constant 1 : index
    %c0_36 = arith.constant 0 : index
    %c0_37 = arith.constant 0 : index
    %35 = vector.load %arg7[%c1_35, %c0_36, %c0_37] : memref<4x1x96xf32, #tpu.memory_space<vmem>>, vector<1x1x96xf32>
    %36 = vector.shape_cast %35 : vector<1x1x96xf32> to vector<1x96xf32>
    %37 = vector.broadcast %36 : vector<1x96xf32> to vector<16x96xf32>
    %38 = arith.addf %34, %37 : vector<16x96xf32>
    %39 = arith.mulf %31, %4 : vector<16x96xf32>
    %40 = arith.mulf %38, %5 : vector<16x96xf32>
    %41 = arith.addf %39, %40 : vector<16x96xf32>
    %c2 = arith.constant 2 : index
    %c0_38 = arith.constant 0 : index
    %c0_39 = arith.constant 0 : index
    %42 = vector.load %arg4[%c2, %c0_38, %c0_39] : memref<4x48x96xf32, #tpu.memory_space<vmem>>, vector<1x48x96xf32>
    %43 = vector.shape_cast %42 : vector<1x48x96xf32> to vector<48x96xf32>
    %cst_40 = arith.constant dense<0.000000e+00> : vector<16x96xf32>
    %44 = tpu.matmul %3, %43, %cst_40 {dimension_numbers = #tpu.dot_dimension_numbers<[1], [0], [0], [1], [0, 0, 1, 1], [], []>} : vector<16x48xf32>, vector<48x96xf32>, vector<16x96xf32> -> vector<16x96xf32>
    %c2_41 = arith.constant 2 : index
    %c0_42 = arith.constant 0 : index
    %c0_43 = arith.constant 0 : index
    %45 = vector.load %arg5[%c2_41, %c0_42, %c0_43] : memref<4x1x96xf32, #tpu.memory_space<vmem>>, vector<1x1x96xf32>
    %46 = vector.shape_cast %45 : vector<1x1x96xf32> to vector<1x96xf32>
    %47 = vector.broadcast %46 : vector<1x96xf32> to vector<16x96xf32>
    %48 = arith.addf %44, %47 : vector<16x96xf32>
    %c2_44 = arith.constant 2 : index
    %c0_45 = arith.constant 0 : index
    %c0_46 = arith.constant 0 : index
    %49 = vector.load %arg6[%c2_44, %c0_45, %c0_46] : memref<4x48x96xf32, #tpu.memory_space<vmem>>, vector<1x48x96xf32>
    %50 = vector.shape_cast %49 : vector<1x48x96xf32> to vector<48x96xf32>
    %cst_47 = arith.constant dense<0.000000e+00> : vector<16x96xf32>
    %51 = tpu.matmul %3, %50, %cst_47 {dimension_numbers = #tpu.dot_dimension_numbers<[1], [0], [0], [1], [0, 0, 1, 1], [], []>} : vector<16x48xf32>, vector<48x96xf32>, vector<16x96xf32> -> vector<16x96xf32>
    %c2_48 = arith.constant 2 : index
    %c0_49 = arith.constant 0 : index
    %c0_50 = arith.constant 0 : index
    %52 = vector.load %arg7[%c2_48, %c0_49, %c0_50] : memref<4x1x96xf32, #tpu.memory_space<vmem>>, vector<1x1x96xf32>
    %53 = vector.shape_cast %52 : vector<1x1x96xf32> to vector<1x96xf32>
    %54 = vector.broadcast %53 : vector<1x96xf32> to vector<16x96xf32>
    %55 = arith.addf %51, %54 : vector<16x96xf32>
    %56 = arith.mulf %48, %4 : vector<16x96xf32>
    %57 = arith.mulf %55, %5 : vector<16x96xf32>
    %58 = arith.addf %56, %57 : vector<16x96xf32>
    %c3 = arith.constant 3 : index
    %c0_51 = arith.constant 0 : index
    %c0_52 = arith.constant 0 : index
    %59 = vector.load %arg4[%c3, %c0_51, %c0_52] : memref<4x48x96xf32, #tpu.memory_space<vmem>>, vector<1x48x96xf32>
    %60 = vector.shape_cast %59 : vector<1x48x96xf32> to vector<48x96xf32>
    %cst_53 = arith.constant dense<0.000000e+00> : vector<16x96xf32>
    %61 = tpu.matmul %1, %60, %cst_53 {dimension_numbers = #tpu.dot_dimension_numbers<[1], [0], [0], [1], [0, 0, 1, 1], [], []>} : vector<16x48xf32>, vector<48x96xf32>, vector<16x96xf32> -> vector<16x96xf32>
    %c3_54 = arith.constant 3 : index
    %c0_55 = arith.constant 0 : index
    %c0_56 = arith.constant 0 : index
    %62 = vector.load %arg5[%c3_54, %c0_55, %c0_56] : memref<4x1x96xf32, #tpu.memory_space<vmem>>, vector<1x1x96xf32>
    %63 = vector.shape_cast %62 : vector<1x1x96xf32> to vector<1x96xf32>
    %64 = vector.broadcast %63 : vector<1x96xf32> to vector<16x96xf32>
    %65 = arith.addf %61, %64 : vector<16x96xf32>
    %c3_57 = arith.constant 3 : index
    %c0_58 = arith.constant 0 : index
    %c0_59 = arith.constant 0 : index
    %66 = vector.load %arg6[%c3_57, %c0_58, %c0_59] : memref<4x48x96xf32, #tpu.memory_space<vmem>>, vector<1x48x96xf32>
    %67 = vector.shape_cast %66 : vector<1x48x96xf32> to vector<48x96xf32>
    %cst_60 = arith.constant dense<0.000000e+00> : vector<16x96xf32>
    %68 = tpu.matmul %1, %67, %cst_60 {dimension_numbers = #tpu.dot_dimension_numbers<[1], [0], [0], [1], [0, 0, 1, 1], [], []>} : vector<16x48xf32>, vector<48x96xf32>, vector<16x96xf32> -> vector<16x96xf32>
    %c3_61 = arith.constant 3 : index
    %c0_62 = arith.constant 0 : index
    %c0_63 = arith.constant 0 : index
    %69 = vector.load %arg7[%c3_61, %c0_62, %c0_63] : memref<4x1x96xf32, #tpu.memory_space<vmem>>, vector<1x1x96xf32>
    %70 = vector.shape_cast %69 : vector<1x1x96xf32> to vector<1x96xf32>
    %71 = vector.broadcast %70 : vector<1x96xf32> to vector<16x96xf32>
    %72 = arith.addf %68, %71 : vector<16x96xf32>
    %73 = arith.mulf %65, %4 : vector<16x96xf32>
    %74 = arith.mulf %72, %5 : vector<16x96xf32>
    %75 = arith.addf %73, %74 : vector<16x96xf32>
    %c0_64 = arith.constant 0 : index
    %c0_65 = arith.constant 0 : index
    %c0_66 = arith.constant 0 : index
    %76 = vector.load %arg8[%c0_64, %c0_65, %c0_66] : memref<2x48x48xf32, #tpu.memory_space<vmem>>, vector<1x48x48xf32>
    %77 = vector.shape_cast %76 : vector<1x48x48xf32> to vector<48x48xf32>
    %cst_67 = arith.constant dense<0.000000e+00> : vector<16x48xf32>
    %78 = tpu.matmul %3, %77, %cst_67 {dimension_numbers = #tpu.dot_dimension_numbers<[1], [0], [0], [1], [0, 0, 1, 1], [], []>} : vector<16x48xf32>, vector<48x48xf32>, vector<16x48xf32> -> vector<16x48xf32>
    %c0_68 = arith.constant 0 : index
    %c0_69 = arith.constant 0 : index
    %c0_70 = arith.constant 0 : index
    %79 = vector.load %arg9[%c0_68, %c0_69, %c0_70] : memref<2x1x48xf32, #tpu.memory_space<vmem>>, vector<1x1x48xf32>
    %80 = vector.shape_cast %79 : vector<1x1x48xf32> to vector<1x48xf32>
    %81 = vector.broadcast %80 : vector<1x48xf32> to vector<16x48xf32>
    %82 = arith.addf %78, %81 : vector<16x48xf32>
    %c1_71 = arith.constant 1 : index
    %c0_72 = arith.constant 0 : index
    %c0_73 = arith.constant 0 : index
    %83 = vector.load %arg8[%c1_71, %c0_72, %c0_73] : memref<2x48x48xf32, #tpu.memory_space<vmem>>, vector<1x48x48xf32>
    %84 = vector.shape_cast %83 : vector<1x48x48xf32> to vector<48x48xf32>
    %cst_74 = arith.constant dense<0.000000e+00> : vector<16x48xf32>
    %85 = tpu.matmul %1, %84, %cst_74 {dimension_numbers = #tpu.dot_dimension_numbers<[1], [0], [0], [1], [0, 0, 1, 1], [], []>} : vector<16x48xf32>, vector<48x48xf32>, vector<16x48xf32> -> vector<16x48xf32>
    %c1_75 = arith.constant 1 : index
    %c0_76 = arith.constant 0 : index
    %c0_77 = arith.constant 0 : index
    %86 = vector.load %arg9[%c1_75, %c0_76, %c0_77] : memref<2x1x48xf32, #tpu.memory_space<vmem>>, vector<1x1x48xf32>
    %87 = vector.shape_cast %86 : vector<1x1x48xf32> to vector<1x48xf32>
    %88 = vector.broadcast %87 : vector<1x48xf32> to vector<16x48xf32>
    %89 = arith.addf %85, %88 : vector<16x48xf32>
    %90 = vector.extract_strided_slice %24 {offsets = [0, 0], sizes = [16, 8], strides = [1, 1]} : vector<16x96xf32> to vector<16x8xf32>
    %91 = vector.extract_strided_slice %41 {offsets = [0, 0], sizes = [16, 8], strides = [1, 1]} : vector<16x96xf32> to vector<16x8xf32>
    %92 = vector.extract_strided_slice %82 {offsets = [0, 0], sizes = [16, 4], strides = [1, 1]} : vector<16x48xf32> to vector<16x4xf32>
    %cst_78 = arith.constant dense<0.000000e+00> : vector<16x16xf32>
    %93 = tpu.matmul %90, %91, %cst_78 {dimension_numbers = #tpu.dot_dimension_numbers<[1], [1], [0], [0], [0, 0, 1, 0], [], []>} : vector<16x8xf32>, vector<16x8xf32>, vector<16x16xf32> -> vector<16x16xf32>
    %cst_79 = arith.constant 0.353553385 : f32
    %94 = vector.broadcast %cst_79 : f32 to vector<16x16xf32>
    %95 = arith.mulf %93, %94 : vector<16x16xf32>
    %96 = vector.broadcast %7 : vector<1x16xf32> to vector<16x16xf32>
    %97 = arith.addf %95, %96 : vector<16x16xf32>
    %cst_80 = arith.constant dense<0xFF800000> : vector<16xf32>
    %98 = vector.multi_reduction <maximumf>, %97, %cst_80 [1] : vector<16x16xf32> to vector<16xf32>
    %99 = vector.shape_cast %98 : vector<16xf32> to vector<16x1xf32>
    %100 = vector.broadcast %99 : vector<16x1xf32> to vector<16x16xf32>
    %101 = arith.subf %97, %100 : vector<16x16xf32>
    %102 = math.exp %101 : vector<16x16xf32>
    %cst_81 = arith.constant dense<0.000000e+00> : vector<16xf32>
    %103 = vector.multi_reduction <add>, %102, %cst_81 [1] : vector<16x16xf32> to vector<16xf32>
    %104 = vector.shape_cast %103 : vector<16xf32> to vector<16x1xf32>
    %105 = vector.broadcast %104 : vector<16x1xf32> to vector<16x16xf32>
    %106 = arith.divf %102, %105 : vector<16x16xf32>
    %cst_82 = arith.constant dense<0.000000e+00> : vector<16x4xf32>
    %107 = tpu.matmul %106, %92, %cst_82 {dimension_numbers = #tpu.dot_dimension_numbers<[1], [0], [0], [1], [0, 0, 1, 1], [], []>} : vector<16x16xf32>, vector<16x4xf32>, vector<16x4xf32> -> vector<16x4xf32>
    %108 = vector.extract_strided_slice %24 {offsets = [0, 8], sizes = [16, 8], strides = [1, 1]} : vector<16x96xf32> to vector<16x8xf32>
    %109 = vector.extract_strided_slice %41 {offsets = [0, 8], sizes = [16, 8], strides = [1, 1]} : vector<16x96xf32> to vector<16x8xf32>
    %110 = vector.extract_strided_slice %82 {offsets = [0, 4], sizes = [16, 4], strides = [1, 1]} : vector<16x48xf32> to vector<16x4xf32>
    %cst_83 = arith.constant dense<0.000000e+00> : vector<16x16xf32>
    %111 = tpu.matmul %108, %109, %cst_83 {dimension_numbers = #tpu.dot_dimension_numbers<[1], [1], [0], [0], [0, 0, 1, 0], [], []>} : vector<16x8xf32>, vector<16x8xf32>, vector<16x16xf32> -> vector<16x16xf32>
    %cst_84 = arith.constant 0.353553385 : f32
    %112 = vector.broadcast %cst_84 : f32 to vector<16x16xf32>
    %113 = arith.mulf %111, %112 : vector<16x16xf32>
    %114 = vector.broadcast %7 : vector<1x16xf32> to vector<16x16xf32>
    %115 = arith.addf %113, %114 : vector<16x16xf32>
    %cst_85 = arith.constant dense<0xFF800000> : vector<16xf32>
    %116 = vector.multi_reduction <maximumf>, %115, %cst_85 [1] : vector<16x16xf32> to vector<16xf32>
    %117 = vector.shape_cast %116 : vector<16xf32> to vector<16x1xf32>
    %118 = vector.broadcast %117 : vector<16x1xf32> to vector<16x16xf32>
    %119 = arith.subf %115, %118 : vector<16x16xf32>
    %120 = math.exp %119 : vector<16x16xf32>
    %cst_86 = arith.constant dense<0.000000e+00> : vector<16xf32>
    %121 = vector.multi_reduction <add>, %120, %cst_86 [1] : vector<16x16xf32> to vector<16xf32>
    %122 = vector.shape_cast %121 : vector<16xf32> to vector<16x1xf32>
    %123 = vector.broadcast %122 : vector<16x1xf32> to vector<16x16xf32>
    %124 = arith.divf %120, %123 : vector<16x16xf32>
    %cst_87 = arith.constant dense<0.000000e+00> : vector<16x4xf32>
    %125 = tpu.matmul %124, %110, %cst_87 {dimension_numbers = #tpu.dot_dimension_numbers<[1], [0], [0], [1], [0, 0, 1, 1], [], []>} : vector<16x16xf32>, vector<16x4xf32>, vector<16x4xf32> -> vector<16x4xf32>
    %126 = vector.extract_strided_slice %24 {offsets = [0, 16], sizes = [16, 8], strides = [1, 1]} : vector<16x96xf32> to vector<16x8xf32>
    %127 = vector.extract_strided_slice %41 {offsets = [0, 16], sizes = [16, 8], strides = [1, 1]} : vector<16x96xf32> to vector<16x8xf32>
    %128 = vector.extract_strided_slice %82 {offsets = [0, 8], sizes = [16, 4], strides = [1, 1]} : vector<16x48xf32> to vector<16x4xf32>
    %cst_88 = arith.constant dense<0.000000e+00> : vector<16x16xf32>
    %129 = tpu.matmul %126, %127, %cst_88 {dimension_numbers = #tpu.dot_dimension_numbers<[1], [1], [0], [0], [0, 0, 1, 0], [], []>} : vector<16x8xf32>, vector<16x8xf32>, vector<16x16xf32> -> vector<16x16xf32>
    %cst_89 = arith.constant 0.353553385 : f32
    %130 = vector.broadcast %cst_89 : f32 to vector<16x16xf32>
    %131 = arith.mulf %129, %130 : vector<16x16xf32>
    %132 = vector.broadcast %7 : vector<1x16xf32> to vector<16x16xf32>
    %133 = arith.addf %131, %132 : vector<16x16xf32>
    %cst_90 = arith.constant dense<0xFF800000> : vector<16xf32>
    %134 = vector.multi_reduction <maximumf>, %133, %cst_90 [1] : vector<16x16xf32> to vector<16xf32>
    %135 = vector.shape_cast %134 : vector<16xf32> to vector<16x1xf32>
    %136 = vector.broadcast %135 : vector<16x1xf32> to vector<16x16xf32>
    %137 = arith.subf %133, %136 : vector<16x16xf32>
    %138 = math.exp %137 : vector<16x16xf32>
    %cst_91 = arith.constant dense<0.000000e+00> : vector<16xf32>
    %139 = vector.multi_reduction <add>, %138, %cst_91 [1] : vector<16x16xf32> to vector<16xf32>
    %140 = vector.shape_cast %139 : vector<16xf32> to vector<16x1xf32>
    %141 = vector.broadcast %140 : vector<16x1xf32> to vector<16x16xf32>
    %142 = arith.divf %138, %141 : vector<16x16xf32>
    %cst_92 = arith.constant dense<0.000000e+00> : vector<16x4xf32>
    %143 = tpu.matmul %142, %128, %cst_92 {dimension_numbers = #tpu.dot_dimension_numbers<[1], [0], [0], [1], [0, 0, 1, 1], [], []>} : vector<16x16xf32>, vector<16x4xf32>, vector<16x4xf32> -> vector<16x4xf32>
    %144 = vector.extract_strided_slice %24 {offsets = [0, 24], sizes = [16, 8], strides = [1, 1]} : vector<16x96xf32> to vector<16x8xf32>
    %145 = vector.extract_strided_slice %41 {offsets = [0, 24], sizes = [16, 8], strides = [1, 1]} : vector<16x96xf32> to vector<16x8xf32>
    %146 = vector.extract_strided_slice %82 {offsets = [0, 12], sizes = [16, 4], strides = [1, 1]} : vector<16x48xf32> to vector<16x4xf32>
    %cst_93 = arith.constant dense<0.000000e+00> : vector<16x16xf32>
    %147 = tpu.matmul %144, %145, %cst_93 {dimension_numbers = #tpu.dot_dimension_numbers<[1], [1], [0], [0], [0, 0, 1, 0], [], []>} : vector<16x8xf32>, vector<16x8xf32>, vector<16x16xf32> -> vector<16x16xf32>
    %cst_94 = arith.constant 0.353553385 : f32
    %148 = vector.broadcast %cst_94 : f32 to vector<16x16xf32>
    %149 = arith.mulf %147, %148 : vector<16x16xf32>
    %150 = vector.broadcast %7 : vector<1x16xf32> to vector<16x16xf32>
    %151 = arith.addf %149, %150 : vector<16x16xf32>
    %cst_95 = arith.constant dense<0xFF800000> : vector<16xf32>
    %152 = vector.multi_reduction <maximumf>, %151, %cst_95 [1] : vector<16x16xf32> to vector<16xf32>
    %153 = vector.shape_cast %152 : vector<16xf32> to vector<16x1xf32>
    %154 = vector.broadcast %153 : vector<16x1xf32> to vector<16x16xf32>
    %155 = arith.subf %151, %154 : vector<16x16xf32>
    %156 = math.exp %155 : vector<16x16xf32>
    %cst_96 = arith.constant dense<0.000000e+00> : vector<16xf32>
    %157 = vector.multi_reduction <add>, %156, %cst_96 [1] : vector<16x16xf32> to vector<16xf32>
    %158 = vector.shape_cast %157 : vector<16xf32> to vector<16x1xf32>
    %159 = vector.broadcast %158 : vector<16x1xf32> to vector<16x16xf32>
    %160 = arith.divf %156, %159 : vector<16x16xf32>
    %cst_97 = arith.constant dense<0.000000e+00> : vector<16x4xf32>
    %161 = tpu.matmul %160, %146, %cst_97 {dimension_numbers = #tpu.dot_dimension_numbers<[1], [0], [0], [1], [0, 0, 1, 1], [], []>} : vector<16x16xf32>, vector<16x4xf32>, vector<16x4xf32> -> vector<16x4xf32>
    %162 = vector.extract_strided_slice %24 {offsets = [0, 32], sizes = [16, 8], strides = [1, 1]} : vector<16x96xf32> to vector<16x8xf32>
    %163 = vector.extract_strided_slice %41 {offsets = [0, 32], sizes = [16, 8], strides = [1, 1]} : vector<16x96xf32> to vector<16x8xf32>
    %164 = vector.extract_strided_slice %82 {offsets = [0, 16], sizes = [16, 4], strides = [1, 1]} : vector<16x48xf32> to vector<16x4xf32>
    %cst_98 = arith.constant dense<0.000000e+00> : vector<16x16xf32>
    %165 = tpu.matmul %162, %163, %cst_98 {dimension_numbers = #tpu.dot_dimension_numbers<[1], [1], [0], [0], [0, 0, 1, 0], [], []>} : vector<16x8xf32>, vector<16x8xf32>, vector<16x16xf32> -> vector<16x16xf32>
    %cst_99 = arith.constant 0.353553385 : f32
    %166 = vector.broadcast %cst_99 : f32 to vector<16x16xf32>
    %167 = arith.mulf %165, %166 : vector<16x16xf32>
    %168 = vector.broadcast %7 : vector<1x16xf32> to vector<16x16xf32>
    %169 = arith.addf %167, %168 : vector<16x16xf32>
    %cst_100 = arith.constant dense<0xFF800000> : vector<16xf32>
    %170 = vector.multi_reduction <maximumf>, %169, %cst_100 [1] : vector<16x16xf32> to vector<16xf32>
    %171 = vector.shape_cast %170 : vector<16xf32> to vector<16x1xf32>
    %172 = vector.broadcast %171 : vector<16x1xf32> to vector<16x16xf32>
    %173 = arith.subf %169, %172 : vector<16x16xf32>
    %174 = math.exp %173 : vector<16x16xf32>
    %cst_101 = arith.constant dense<0.000000e+00> : vector<16xf32>
    %175 = vector.multi_reduction <add>, %174, %cst_101 [1] : vector<16x16xf32> to vector<16xf32>
    %176 = vector.shape_cast %175 : vector<16xf32> to vector<16x1xf32>
    %177 = vector.broadcast %176 : vector<16x1xf32> to vector<16x16xf32>
    %178 = arith.divf %174, %177 : vector<16x16xf32>
    %cst_102 = arith.constant dense<0.000000e+00> : vector<16x4xf32>
    %179 = tpu.matmul %178, %164, %cst_102 {dimension_numbers = #tpu.dot_dimension_numbers<[1], [0], [0], [1], [0, 0, 1, 1], [], []>} : vector<16x16xf32>, vector<16x4xf32>, vector<16x4xf32> -> vector<16x4xf32>
    %180 = vector.extract_strided_slice %24 {offsets = [0, 40], sizes = [16, 8], strides = [1, 1]} : vector<16x96xf32> to vector<16x8xf32>
    %181 = vector.extract_strided_slice %41 {offsets = [0, 40], sizes = [16, 8], strides = [1, 1]} : vector<16x96xf32> to vector<16x8xf32>
    %182 = vector.extract_strided_slice %82 {offsets = [0, 20], sizes = [16, 4], strides = [1, 1]} : vector<16x48xf32> to vector<16x4xf32>
    %cst_103 = arith.constant dense<0.000000e+00> : vector<16x16xf32>
    %183 = tpu.matmul %180, %181, %cst_103 {dimension_numbers = #tpu.dot_dimension_numbers<[1], [1], [0], [0], [0, 0, 1, 0], [], []>} : vector<16x8xf32>, vector<16x8xf32>, vector<16x16xf32> -> vector<16x16xf32>
    %cst_104 = arith.constant 0.353553385 : f32
    %184 = vector.broadcast %cst_104 : f32 to vector<16x16xf32>
    %185 = arith.mulf %183, %184 : vector<16x16xf32>
    %186 = vector.broadcast %7 : vector<1x16xf32> to vector<16x16xf32>
    %187 = arith.addf %185, %186 : vector<16x16xf32>
    %cst_105 = arith.constant dense<0xFF800000> : vector<16xf32>
    %188 = vector.multi_reduction <maximumf>, %187, %cst_105 [1] : vector<16x16xf32> to vector<16xf32>
    %189 = vector.shape_cast %188 : vector<16xf32> to vector<16x1xf32>
    %190 = vector.broadcast %189 : vector<16x1xf32> to vector<16x16xf32>
    %191 = arith.subf %187, %190 : vector<16x16xf32>
    %192 = math.exp %191 : vector<16x16xf32>
    %cst_106 = arith.constant dense<0.000000e+00> : vector<16xf32>
    %193 = vector.multi_reduction <add>, %192, %cst_106 [1] : vector<16x16xf32> to vector<16xf32>
    %194 = vector.shape_cast %193 : vector<16xf32> to vector<16x1xf32>
    %195 = vector.broadcast %194 : vector<16x1xf32> to vector<16x16xf32>
    %196 = arith.divf %192, %195 : vector<16x16xf32>
    %cst_107 = arith.constant dense<0.000000e+00> : vector<16x4xf32>
    %197 = tpu.matmul %196, %182, %cst_107 {dimension_numbers = #tpu.dot_dimension_numbers<[1], [0], [0], [1], [0, 0, 1, 1], [], []>} : vector<16x16xf32>, vector<16x4xf32>, vector<16x4xf32> -> vector<16x4xf32>
    %198 = vector.extract_strided_slice %24 {offsets = [0, 48], sizes = [16, 8], strides = [1, 1]} : vector<16x96xf32> to vector<16x8xf32>
    %199 = vector.extract_strided_slice %41 {offsets = [0, 48], sizes = [16, 8], strides = [1, 1]} : vector<16x96xf32> to vector<16x8xf32>
    %200 = vector.extract_strided_slice %82 {offsets = [0, 24], sizes = [16, 4], strides = [1, 1]} : vector<16x48xf32> to vector<16x4xf32>
    %cst_108 = arith.constant dense<0.000000e+00> : vector<16x16xf32>
    %201 = tpu.matmul %198, %199, %cst_108 {dimension_numbers = #tpu.dot_dimension_numbers<[1], [1], [0], [0], [0, 0, 1, 0], [], []>} : vector<16x8xf32>, vector<16x8xf32>, vector<16x16xf32> -> vector<16x16xf32>
    %cst_109 = arith.constant 0.353553385 : f32
    %202 = vector.broadcast %cst_109 : f32 to vector<16x16xf32>
    %203 = arith.mulf %201, %202 : vector<16x16xf32>
    %204 = vector.broadcast %7 : vector<1x16xf32> to vector<16x16xf32>
    %205 = arith.addf %203, %204 : vector<16x16xf32>
    %cst_110 = arith.constant dense<0xFF800000> : vector<16xf32>
    %206 = vector.multi_reduction <maximumf>, %205, %cst_110 [1] : vector<16x16xf32> to vector<16xf32>
    %207 = vector.shape_cast %206 : vector<16xf32> to vector<16x1xf32>
    %208 = vector.broadcast %207 : vector<16x1xf32> to vector<16x16xf32>
    %209 = arith.subf %205, %208 : vector<16x16xf32>
    %210 = math.exp %209 : vector<16x16xf32>
    %cst_111 = arith.constant dense<0.000000e+00> : vector<16xf32>
    %211 = vector.multi_reduction <add>, %210, %cst_111 [1] : vector<16x16xf32> to vector<16xf32>
    %212 = vector.shape_cast %211 : vector<16xf32> to vector<16x1xf32>
    %213 = vector.broadcast %212 : vector<16x1xf32> to vector<16x16xf32>
    %214 = arith.divf %210, %213 : vector<16x16xf32>
    %cst_112 = arith.constant dense<0.000000e+00> : vector<16x4xf32>
    %215 = tpu.matmul %214, %200, %cst_112 {dimension_numbers = #tpu.dot_dimension_numbers<[1], [0], [0], [1], [0, 0, 1, 1], [], []>} : vector<16x16xf32>, vector<16x4xf32>, vector<16x4xf32> -> vector<16x4xf32>
    %216 = vector.extract_strided_slice %24 {offsets = [0, 56], sizes = [16, 8], strides = [1, 1]} : vector<16x96xf32> to vector<16x8xf32>
    %217 = vector.extract_strided_slice %41 {offsets = [0, 56], sizes = [16, 8], strides = [1, 1]} : vector<16x96xf32> to vector<16x8xf32>
    %218 = vector.extract_strided_slice %82 {offsets = [0, 28], sizes = [16, 4], strides = [1, 1]} : vector<16x48xf32> to vector<16x4xf32>
    %cst_113 = arith.constant dense<0.000000e+00> : vector<16x16xf32>
    %219 = tpu.matmul %216, %217, %cst_113 {dimension_numbers = #tpu.dot_dimension_numbers<[1], [1], [0], [0], [0, 0, 1, 0], [], []>} : vector<16x8xf32>, vector<16x8xf32>, vector<16x16xf32> -> vector<16x16xf32>
    %cst_114 = arith.constant 0.353553385 : f32
    %220 = vector.broadcast %cst_114 : f32 to vector<16x16xf32>
    %221 = arith.mulf %219, %220 : vector<16x16xf32>
    %222 = vector.broadcast %7 : vector<1x16xf32> to vector<16x16xf32>
    %223 = arith.addf %221, %222 : vector<16x16xf32>
    %cst_115 = arith.constant dense<0xFF800000> : vector<16xf32>
    %224 = vector.multi_reduction <maximumf>, %223, %cst_115 [1] : vector<16x16xf32> to vector<16xf32>
    %225 = vector.shape_cast %224 : vector<16xf32> to vector<16x1xf32>
    %226 = vector.broadcast %225 : vector<16x1xf32> to vector<16x16xf32>
    %227 = arith.subf %223, %226 : vector<16x16xf32>
    %228 = math.exp %227 : vector<16x16xf32>
    %cst_116 = arith.constant dense<0.000000e+00> : vector<16xf32>
    %229 = vector.multi_reduction <add>, %228, %cst_116 [1] : vector<16x16xf32> to vector<16xf32>
    %230 = vector.shape_cast %229 : vector<16xf32> to vector<16x1xf32>
    %231 = vector.broadcast %230 : vector<16x1xf32> to vector<16x16xf32>
    %232 = arith.divf %228, %231 : vector<16x16xf32>
    %cst_117 = arith.constant dense<0.000000e+00> : vector<16x4xf32>
    %233 = tpu.matmul %232, %218, %cst_117 {dimension_numbers = #tpu.dot_dimension_numbers<[1], [0], [0], [1], [0, 0, 1, 1], [], []>} : vector<16x16xf32>, vector<16x4xf32>, vector<16x4xf32> -> vector<16x4xf32>
    %234 = vector.extract_strided_slice %24 {offsets = [0, 64], sizes = [16, 8], strides = [1, 1]} : vector<16x96xf32> to vector<16x8xf32>
    %235 = vector.extract_strided_slice %41 {offsets = [0, 64], sizes = [16, 8], strides = [1, 1]} : vector<16x96xf32> to vector<16x8xf32>
    %236 = vector.extract_strided_slice %82 {offsets = [0, 32], sizes = [16, 4], strides = [1, 1]} : vector<16x48xf32> to vector<16x4xf32>
    %cst_118 = arith.constant dense<0.000000e+00> : vector<16x16xf32>
    %237 = tpu.matmul %234, %235, %cst_118 {dimension_numbers = #tpu.dot_dimension_numbers<[1], [1], [0], [0], [0, 0, 1, 0], [], []>} : vector<16x8xf32>, vector<16x8xf32>, vector<16x16xf32> -> vector<16x16xf32>
    %cst_119 = arith.constant 0.353553385 : f32
    %238 = vector.broadcast %cst_119 : f32 to vector<16x16xf32>
    %239 = arith.mulf %237, %238 : vector<16x16xf32>
    %240 = vector.broadcast %7 : vector<1x16xf32> to vector<16x16xf32>
    %241 = arith.addf %239, %240 : vector<16x16xf32>
    %cst_120 = arith.constant dense<0xFF800000> : vector<16xf32>
    %242 = vector.multi_reduction <maximumf>, %241, %cst_120 [1] : vector<16x16xf32> to vector<16xf32>
    %243 = vector.shape_cast %242 : vector<16xf32> to vector<16x1xf32>
    %244 = vector.broadcast %243 : vector<16x1xf32> to vector<16x16xf32>
    %245 = arith.subf %241, %244 : vector<16x16xf32>
    %246 = math.exp %245 : vector<16x16xf32>
    %cst_121 = arith.constant dense<0.000000e+00> : vector<16xf32>
    %247 = vector.multi_reduction <add>, %246, %cst_121 [1] : vector<16x16xf32> to vector<16xf32>
    %248 = vector.shape_cast %247 : vector<16xf32> to vector<16x1xf32>
    %249 = vector.broadcast %248 : vector<16x1xf32> to vector<16x16xf32>
    %250 = arith.divf %246, %249 : vector<16x16xf32>
    %cst_122 = arith.constant dense<0.000000e+00> : vector<16x4xf32>
    %251 = tpu.matmul %250, %236, %cst_122 {dimension_numbers = #tpu.dot_dimension_numbers<[1], [0], [0], [1], [0, 0, 1, 1], [], []>} : vector<16x16xf32>, vector<16x4xf32>, vector<16x4xf32> -> vector<16x4xf32>
    %252 = vector.extract_strided_slice %24 {offsets = [0, 72], sizes = [16, 8], strides = [1, 1]} : vector<16x96xf32> to vector<16x8xf32>
    %253 = vector.extract_strided_slice %41 {offsets = [0, 72], sizes = [16, 8], strides = [1, 1]} : vector<16x96xf32> to vector<16x8xf32>
    %254 = vector.extract_strided_slice %82 {offsets = [0, 36], sizes = [16, 4], strides = [1, 1]} : vector<16x48xf32> to vector<16x4xf32>
    %cst_123 = arith.constant dense<0.000000e+00> : vector<16x16xf32>
    %255 = tpu.matmul %252, %253, %cst_123 {dimension_numbers = #tpu.dot_dimension_numbers<[1], [1], [0], [0], [0, 0, 1, 0], [], []>} : vector<16x8xf32>, vector<16x8xf32>, vector<16x16xf32> -> vector<16x16xf32>
    %cst_124 = arith.constant 0.353553385 : f32
    %256 = vector.broadcast %cst_124 : f32 to vector<16x16xf32>
    %257 = arith.mulf %255, %256 : vector<16x16xf32>
    %258 = vector.broadcast %7 : vector<1x16xf32> to vector<16x16xf32>
    %259 = arith.addf %257, %258 : vector<16x16xf32>
    %cst_125 = arith.constant dense<0xFF800000> : vector<16xf32>
    %260 = vector.multi_reduction <maximumf>, %259, %cst_125 [1] : vector<16x16xf32> to vector<16xf32>
    %261 = vector.shape_cast %260 : vector<16xf32> to vector<16x1xf32>
    %262 = vector.broadcast %261 : vector<16x1xf32> to vector<16x16xf32>
    %263 = arith.subf %259, %262 : vector<16x16xf32>
    %264 = math.exp %263 : vector<16x16xf32>
    %cst_126 = arith.constant dense<0.000000e+00> : vector<16xf32>
    %265 = vector.multi_reduction <add>, %264, %cst_126 [1] : vector<16x16xf32> to vector<16xf32>
    %266 = vector.shape_cast %265 : vector<16xf32> to vector<16x1xf32>
    %267 = vector.broadcast %266 : vector<16x1xf32> to vector<16x16xf32>
    %268 = arith.divf %264, %267 : vector<16x16xf32>
    %cst_127 = arith.constant dense<0.000000e+00> : vector<16x4xf32>
    %269 = tpu.matmul %268, %254, %cst_127 {dimension_numbers = #tpu.dot_dimension_numbers<[1], [0], [0], [1], [0, 0, 1, 1], [], []>} : vector<16x16xf32>, vector<16x4xf32>, vector<16x4xf32> -> vector<16x4xf32>
    %270 = vector.extract_strided_slice %24 {offsets = [0, 80], sizes = [16, 8], strides = [1, 1]} : vector<16x96xf32> to vector<16x8xf32>
    %271 = vector.extract_strided_slice %41 {offsets = [0, 80], sizes = [16, 8], strides = [1, 1]} : vector<16x96xf32> to vector<16x8xf32>
    %272 = vector.extract_strided_slice %82 {offsets = [0, 40], sizes = [16, 4], strides = [1, 1]} : vector<16x48xf32> to vector<16x4xf32>
    %cst_128 = arith.constant dense<0.000000e+00> : vector<16x16xf32>
    %273 = tpu.matmul %270, %271, %cst_128 {dimension_numbers = #tpu.dot_dimension_numbers<[1], [1], [0], [0], [0, 0, 1, 0], [], []>} : vector<16x8xf32>, vector<16x8xf32>, vector<16x16xf32> -> vector<16x16xf32>
    %cst_129 = arith.constant 0.353553385 : f32
    %274 = vector.broadcast %cst_129 : f32 to vector<16x16xf32>
    %275 = arith.mulf %273, %274 : vector<16x16xf32>
    %276 = vector.broadcast %7 : vector<1x16xf32> to vector<16x16xf32>
    %277 = arith.addf %275, %276 : vector<16x16xf32>
    %cst_130 = arith.constant dense<0xFF800000> : vector<16xf32>
    %278 = vector.multi_reduction <maximumf>, %277, %cst_130 [1] : vector<16x16xf32> to vector<16xf32>
    %279 = vector.shape_cast %278 : vector<16xf32> to vector<16x1xf32>
    %280 = vector.broadcast %279 : vector<16x1xf32> to vector<16x16xf32>
    %281 = arith.subf %277, %280 : vector<16x16xf32>
    %282 = math.exp %281 : vector<16x16xf32>
    %cst_131 = arith.constant dense<0.000000e+00> : vector<16xf32>
    %283 = vector.multi_reduction <add>, %282, %cst_131 [1] : vector<16x16xf32> to vector<16xf32>
    %284 = vector.shape_cast %283 : vector<16xf32> to vector<16x1xf32>
    %285 = vector.broadcast %284 : vector<16x1xf32> to vector<16x16xf32>
    %286 = arith.divf %282, %285 : vector<16x16xf32>
    %cst_132 = arith.constant dense<0.000000e+00> : vector<16x4xf32>
    %287 = tpu.matmul %286, %272, %cst_132 {dimension_numbers = #tpu.dot_dimension_numbers<[1], [0], [0], [1], [0, 0, 1, 1], [], []>} : vector<16x16xf32>, vector<16x4xf32>, vector<16x4xf32> -> vector<16x4xf32>
    %288 = vector.extract_strided_slice %24 {offsets = [0, 88], sizes = [16, 8], strides = [1, 1]} : vector<16x96xf32> to vector<16x8xf32>
    %289 = vector.extract_strided_slice %41 {offsets = [0, 88], sizes = [16, 8], strides = [1, 1]} : vector<16x96xf32> to vector<16x8xf32>
    %290 = vector.extract_strided_slice %82 {offsets = [0, 44], sizes = [16, 4], strides = [1, 1]} : vector<16x48xf32> to vector<16x4xf32>
    %cst_133 = arith.constant dense<0.000000e+00> : vector<16x16xf32>
    %291 = tpu.matmul %288, %289, %cst_133 {dimension_numbers = #tpu.dot_dimension_numbers<[1], [1], [0], [0], [0, 0, 1, 0], [], []>} : vector<16x8xf32>, vector<16x8xf32>, vector<16x16xf32> -> vector<16x16xf32>
    %cst_134 = arith.constant 0.353553385 : f32
    %292 = vector.broadcast %cst_134 : f32 to vector<16x16xf32>
    %293 = arith.mulf %291, %292 : vector<16x16xf32>
    %294 = vector.broadcast %7 : vector<1x16xf32> to vector<16x16xf32>
    %295 = arith.addf %293, %294 : vector<16x16xf32>
    %cst_135 = arith.constant dense<0xFF800000> : vector<16xf32>
    %296 = vector.multi_reduction <maximumf>, %295, %cst_135 [1] : vector<16x16xf32> to vector<16xf32>
    %297 = vector.shape_cast %296 : vector<16xf32> to vector<16x1xf32>
    %298 = vector.broadcast %297 : vector<16x1xf32> to vector<16x16xf32>
    %299 = arith.subf %295, %298 : vector<16x16xf32>
    %300 = math.exp %299 : vector<16x16xf32>
    %cst_136 = arith.constant dense<0.000000e+00> : vector<16xf32>
    %301 = vector.multi_reduction <add>, %300, %cst_136 [1] : vector<16x16xf32> to vector<16xf32>
    %302 = vector.shape_cast %301 : vector<16xf32> to vector<16x1xf32>
    %303 = vector.broadcast %302 : vector<16x1xf32> to vector<16x16xf32>
    %304 = arith.divf %300, %303 : vector<16x16xf32>
    %cst_137 = arith.constant dense<0.000000e+00> : vector<16x4xf32>
    %305 = tpu.matmul %304, %290, %cst_137 {dimension_numbers = #tpu.dot_dimension_numbers<[1], [0], [0], [1], [0, 0, 1, 1], [], []>} : vector<16x16xf32>, vector<16x4xf32>, vector<16x4xf32> -> vector<16x4xf32>
    %306 = tpu.concatenate %107, %125, %143, %161, %179, %197, %215, %233, %251, %269, %287, %305 in 1 : vector<16x4xf32>, vector<16x4xf32>, vector<16x4xf32>, vector<16x4xf32>, vector<16x4xf32>, vector<16x4xf32>, vector<16x4xf32>, vector<16x4xf32>, vector<16x4xf32>, vector<16x4xf32>, vector<16x4xf32>, vector<16x4xf32> -> vector<16x48xf32>
    %c0_138 = arith.constant 0 : index
    %c0_139 = arith.constant 0 : index
    %c0_140 = arith.constant 0 : index
    %307 = vector.load %arg12[%c0_138, %c0_139, %c0_140] : memref<1x16x48xf32, #tpu.memory_space<vmem>>, vector<1x16x48xf32>
    %308 = vector.shape_cast %307 : vector<1x16x48xf32> to vector<16x48xf32>
    %309 = vector.shape_cast %306 : vector<16x48xf32> to vector<1x16x48xf32>
    tpu.vector_store %arg12[%c0_138, %c0_139, %c0_140], %309 {strides = array<i32>} : memref<1x16x48xf32, #tpu.memory_space<vmem>>, vector<1x16x48xf32>,
    %310 = vector.extract_strided_slice %58 {offsets = [0, 0], sizes = [16, 8], strides = [1, 1]} : vector<16x96xf32> to vector<16x8xf32>
    %311 = vector.extract_strided_slice %75 {offsets = [0, 0], sizes = [16, 8], strides = [1, 1]} : vector<16x96xf32> to vector<16x8xf32>
    %312 = vector.extract_strided_slice %89 {offsets = [0, 0], sizes = [16, 4], strides = [1, 1]} : vector<16x48xf32> to vector<16x4xf32>
    %cst_141 = arith.constant dense<0.000000e+00> : vector<16x16xf32>
    %313 = tpu.matmul %310, %311, %cst_141 {dimension_numbers = #tpu.dot_dimension_numbers<[1], [1], [0], [0], [0, 0, 1, 0], [], []>} : vector<16x8xf32>, vector<16x8xf32>, vector<16x16xf32> -> vector<16x16xf32>
    %cst_142 = arith.constant 0.353553385 : f32
    %314 = vector.broadcast %cst_142 : f32 to vector<16x16xf32>
    %315 = arith.mulf %313, %314 : vector<16x16xf32>
    %316 = vector.broadcast %7 : vector<1x16xf32> to vector<16x16xf32>
    %317 = arith.addf %315, %316 : vector<16x16xf32>
    %cst_143 = arith.constant dense<0xFF800000> : vector<16xf32>
    %318 = vector.multi_reduction <maximumf>, %317, %cst_143 [1] : vector<16x16xf32> to vector<16xf32>
    %319 = vector.shape_cast %318 : vector<16xf32> to vector<16x1xf32>
    %320 = vector.broadcast %319 : vector<16x1xf32> to vector<16x16xf32>
    %321 = arith.subf %317, %320 : vector<16x16xf32>
    %322 = math.exp %321 : vector<16x16xf32>
    %cst_144 = arith.constant dense<0.000000e+00> : vector<16xf32>
    %323 = vector.multi_reduction <add>, %322, %cst_144 [1] : vector<16x16xf32> to vector<16xf32>
    %324 = vector.shape_cast %323 : vector<16xf32> to vector<16x1xf32>
    %325 = vector.broadcast %324 : vector<16x1xf32> to vector<16x16xf32>
    %326 = arith.divf %322, %325 : vector<16x16xf32>
    %cst_145 = arith.constant dense<0.000000e+00> : vector<16x4xf32>
    %327 = tpu.matmul %326, %312, %cst_145 {dimension_numbers = #tpu.dot_dimension_numbers<[1], [0], [0], [1], [0, 0, 1, 1], [], []>} : vector<16x16xf32>, vector<16x4xf32>, vector<16x4xf32> -> vector<16x4xf32>
    %328 = vector.extract_strided_slice %58 {offsets = [0, 8], sizes = [16, 8], strides = [1, 1]} : vector<16x96xf32> to vector<16x8xf32>
    %329 = vector.extract_strided_slice %75 {offsets = [0, 8], sizes = [16, 8], strides = [1, 1]} : vector<16x96xf32> to vector<16x8xf32>
    %330 = vector.extract_strided_slice %89 {offsets = [0, 4], sizes = [16, 4], strides = [1, 1]} : vector<16x48xf32> to vector<16x4xf32>
    %cst_146 = arith.constant dense<0.000000e+00> : vector<16x16xf32>
    %331 = tpu.matmul %328, %329, %cst_146 {dimension_numbers = #tpu.dot_dimension_numbers<[1], [1], [0], [0], [0, 0, 1, 0], [], []>} : vector<16x8xf32>, vector<16x8xf32>, vector<16x16xf32> -> vector<16x16xf32>
    %cst_147 = arith.constant 0.353553385 : f32
    %332 = vector.broadcast %cst_147 : f32 to vector<16x16xf32>
    %333 = arith.mulf %331, %332 : vector<16x16xf32>
    %334 = vector.broadcast %7 : vector<1x16xf32> to vector<16x16xf32>
    %335 = arith.addf %333, %334 : vector<16x16xf32>
    %cst_148 = arith.constant dense<0xFF800000> : vector<16xf32>
    %336 = vector.multi_reduction <maximumf>, %335, %cst_148 [1] : vector<16x16xf32> to vector<16xf32>
    %337 = vector.shape_cast %336 : vector<16xf32> to vector<16x1xf32>
    %338 = vector.broadcast %337 : vector<16x1xf32> to vector<16x16xf32>
    %339 = arith.subf %335, %338 : vector<16x16xf32>
    %340 = math.exp %339 : vector<16x16xf32>
    %cst_149 = arith.constant dense<0.000000e+00> : vector<16xf32>
    %341 = vector.multi_reduction <add>, %340, %cst_149 [1] : vector<16x16xf32> to vector<16xf32>
    %342 = vector.shape_cast %341 : vector<16xf32> to vector<16x1xf32>
    %343 = vector.broadcast %342 : vector<16x1xf32> to vector<16x16xf32>
    %344 = arith.divf %340, %343 : vector<16x16xf32>
    %cst_150 = arith.constant dense<0.000000e+00> : vector<16x4xf32>
    %345 = tpu.matmul %344, %330, %cst_150 {dimension_numbers = #tpu.dot_dimension_numbers<[1], [0], [0], [1], [0, 0, 1, 1], [], []>} : vector<16x16xf32>, vector<16x4xf32>, vector<16x4xf32> -> vector<16x4xf32>
    %346 = vector.extract_strided_slice %58 {offsets = [0, 16], sizes = [16, 8], strides = [1, 1]} : vector<16x96xf32> to vector<16x8xf32>
    %347 = vector.extract_strided_slice %75 {offsets = [0, 16], sizes = [16, 8], strides = [1, 1]} : vector<16x96xf32> to vector<16x8xf32>
    %348 = vector.extract_strided_slice %89 {offsets = [0, 8], sizes = [16, 4], strides = [1, 1]} : vector<16x48xf32> to vector<16x4xf32>
    %cst_151 = arith.constant dense<0.000000e+00> : vector<16x16xf32>
    %349 = tpu.matmul %346, %347, %cst_151 {dimension_numbers = #tpu.dot_dimension_numbers<[1], [1], [0], [0], [0, 0, 1, 0], [], []>} : vector<16x8xf32>, vector<16x8xf32>, vector<16x16xf32> -> vector<16x16xf32>
    %cst_152 = arith.constant 0.353553385 : f32
    %350 = vector.broadcast %cst_152 : f32 to vector<16x16xf32>
    %351 = arith.mulf %349, %350 : vector<16x16xf32>
    %352 = vector.broadcast %7 : vector<1x16xf32> to vector<16x16xf32>
    %353 = arith.addf %351, %352 : vector<16x16xf32>
    %cst_153 = arith.constant dense<0xFF800000> : vector<16xf32>
    %354 = vector.multi_reduction <maximumf>, %353, %cst_153 [1] : vector<16x16xf32> to vector<16xf32>
    %355 = vector.shape_cast %354 : vector<16xf32> to vector<16x1xf32>
    %356 = vector.broadcast %355 : vector<16x1xf32> to vector<16x16xf32>
    %357 = arith.subf %353, %356 : vector<16x16xf32>
    %358 = math.exp %357 : vector<16x16xf32>
    %cst_154 = arith.constant dense<0.000000e+00> : vector<16xf32>
    %359 = vector.multi_reduction <add>, %358, %cst_154 [1] : vector<16x16xf32> to vector<16xf32>
    %360 = vector.shape_cast %359 : vector<16xf32> to vector<16x1xf32>
    %361 = vector.broadcast %360 : vector<16x1xf32> to vector<16x16xf32>
    %362 = arith.divf %358, %361 : vector<16x16xf32>
    %cst_155 = arith.constant dense<0.000000e+00> : vector<16x4xf32>
    %363 = tpu.matmul %362, %348, %cst_155 {dimension_numbers = #tpu.dot_dimension_numbers<[1], [0], [0], [1], [0, 0, 1, 1], [], []>} : vector<16x16xf32>, vector<16x4xf32>, vector<16x4xf32> -> vector<16x4xf32>
    %364 = vector.extract_strided_slice %58 {offsets = [0, 24], sizes = [16, 8], strides = [1, 1]} : vector<16x96xf32> to vector<16x8xf32>
    %365 = vector.extract_strided_slice %75 {offsets = [0, 24], sizes = [16, 8], strides = [1, 1]} : vector<16x96xf32> to vector<16x8xf32>
    %366 = vector.extract_strided_slice %89 {offsets = [0, 12], sizes = [16, 4], strides = [1, 1]} : vector<16x48xf32> to vector<16x4xf32>
    %cst_156 = arith.constant dense<0.000000e+00> : vector<16x16xf32>
    %367 = tpu.matmul %364, %365, %cst_156 {dimension_numbers = #tpu.dot_dimension_numbers<[1], [1], [0], [0], [0, 0, 1, 0], [], []>} : vector<16x8xf32>, vector<16x8xf32>, vector<16x16xf32> -> vector<16x16xf32>
    %cst_157 = arith.constant 0.353553385 : f32
    %368 = vector.broadcast %cst_157 : f32 to vector<16x16xf32>
    %369 = arith.mulf %367, %368 : vector<16x16xf32>
    %370 = vector.broadcast %7 : vector<1x16xf32> to vector<16x16xf32>
    %371 = arith.addf %369, %370 : vector<16x16xf32>
    %cst_158 = arith.constant dense<0xFF800000> : vector<16xf32>
    %372 = vector.multi_reduction <maximumf>, %371, %cst_158 [1] : vector<16x16xf32> to vector<16xf32>
    %373 = vector.shape_cast %372 : vector<16xf32> to vector<16x1xf32>
    %374 = vector.broadcast %373 : vector<16x1xf32> to vector<16x16xf32>
    %375 = arith.subf %371, %374 : vector<16x16xf32>
    %376 = math.exp %375 : vector<16x16xf32>
    %cst_159 = arith.constant dense<0.000000e+00> : vector<16xf32>
    %377 = vector.multi_reduction <add>, %376, %cst_159 [1] : vector<16x16xf32> to vector<16xf32>
    %378 = vector.shape_cast %377 : vector<16xf32> to vector<16x1xf32>
    %379 = vector.broadcast %378 : vector<16x1xf32> to vector<16x16xf32>
    %380 = arith.divf %376, %379 : vector<16x16xf32>
    %cst_160 = arith.constant dense<0.000000e+00> : vector<16x4xf32>
    %381 = tpu.matmul %380, %366, %cst_160 {dimension_numbers = #tpu.dot_dimension_numbers<[1], [0], [0], [1], [0, 0, 1, 1], [], []>} : vector<16x16xf32>, vector<16x4xf32>, vector<16x4xf32> -> vector<16x4xf32>
    %382 = vector.extract_strided_slice %58 {offsets = [0, 32], sizes = [16, 8], strides = [1, 1]} : vector<16x96xf32> to vector<16x8xf32>
    %383 = vector.extract_strided_slice %75 {offsets = [0, 32], sizes = [16, 8], strides = [1, 1]} : vector<16x96xf32> to vector<16x8xf32>
    %384 = vector.extract_strided_slice %89 {offsets = [0, 16], sizes = [16, 4], strides = [1, 1]} : vector<16x48xf32> to vector<16x4xf32>
    %cst_161 = arith.constant dense<0.000000e+00> : vector<16x16xf32>
    %385 = tpu.matmul %382, %383, %cst_161 {dimension_numbers = #tpu.dot_dimension_numbers<[1], [1], [0], [0], [0, 0, 1, 0], [], []>} : vector<16x8xf32>, vector<16x8xf32>, vector<16x16xf32> -> vector<16x16xf32>
    %cst_162 = arith.constant 0.353553385 : f32
    %386 = vector.broadcast %cst_162 : f32 to vector<16x16xf32>
    %387 = arith.mulf %385, %386 : vector<16x16xf32>
    %388 = vector.broadcast %7 : vector<1x16xf32> to vector<16x16xf32>
    %389 = arith.addf %387, %388 : vector<16x16xf32>
    %cst_163 = arith.constant dense<0xFF800000> : vector<16xf32>
    %390 = vector.multi_reduction <maximumf>, %389, %cst_163 [1] : vector<16x16xf32> to vector<16xf32>
    %391 = vector.shape_cast %390 : vector<16xf32> to vector<16x1xf32>
    %392 = vector.broadcast %391 : vector<16x1xf32> to vector<16x16xf32>
    %393 = arith.subf %389, %392 : vector<16x16xf32>
    %394 = math.exp %393 : vector<16x16xf32>
    %cst_164 = arith.constant dense<0.000000e+00> : vector<16xf32>
    %395 = vector.multi_reduction <add>, %394, %cst_164 [1] : vector<16x16xf32> to vector<16xf32>
    %396 = vector.shape_cast %395 : vector<16xf32> to vector<16x1xf32>
    %397 = vector.broadcast %396 : vector<16x1xf32> to vector<16x16xf32>
    %398 = arith.divf %394, %397 : vector<16x16xf32>
    %cst_165 = arith.constant dense<0.000000e+00> : vector<16x4xf32>
    %399 = tpu.matmul %398, %384, %cst_165 {dimension_numbers = #tpu.dot_dimension_numbers<[1], [0], [0], [1], [0, 0, 1, 1], [], []>} : vector<16x16xf32>, vector<16x4xf32>, vector<16x4xf32> -> vector<16x4xf32>
    %400 = vector.extract_strided_slice %58 {offsets = [0, 40], sizes = [16, 8], strides = [1, 1]} : vector<16x96xf32> to vector<16x8xf32>
    %401 = vector.extract_strided_slice %75 {offsets = [0, 40], sizes = [16, 8], strides = [1, 1]} : vector<16x96xf32> to vector<16x8xf32>
    %402 = vector.extract_strided_slice %89 {offsets = [0, 20], sizes = [16, 4], strides = [1, 1]} : vector<16x48xf32> to vector<16x4xf32>
    %cst_166 = arith.constant dense<0.000000e+00> : vector<16x16xf32>
    %403 = tpu.matmul %400, %401, %cst_166 {dimension_numbers = #tpu.dot_dimension_numbers<[1], [1], [0], [0], [0, 0, 1, 0], [], []>} : vector<16x8xf32>, vector<16x8xf32>, vector<16x16xf32> -> vector<16x16xf32>
    %cst_167 = arith.constant 0.353553385 : f32
    %404 = vector.broadcast %cst_167 : f32 to vector<16x16xf32>
    %405 = arith.mulf %403, %404 : vector<16x16xf32>
    %406 = vector.broadcast %7 : vector<1x16xf32> to vector<16x16xf32>
    %407 = arith.addf %405, %406 : vector<16x16xf32>
    %cst_168 = arith.constant dense<0xFF800000> : vector<16xf32>
    %408 = vector.multi_reduction <maximumf>, %407, %cst_168 [1] : vector<16x16xf32> to vector<16xf32>
    %409 = vector.shape_cast %408 : vector<16xf32> to vector<16x1xf32>
    %410 = vector.broadcast %409 : vector<16x1xf32> to vector<16x16xf32>
    %411 = arith.subf %407, %410 : vector<16x16xf32>
    %412 = math.exp %411 : vector<16x16xf32>
    %cst_169 = arith.constant dense<0.000000e+00> : vector<16xf32>
    %413 = vector.multi_reduction <add>, %412, %cst_169 [1] : vector<16x16xf32> to vector<16xf32>
    %414 = vector.shape_cast %413 : vector<16xf32> to vector<16x1xf32>
    %415 = vector.broadcast %414 : vector<16x1xf32> to vector<16x16xf32>
    %416 = arith.divf %412, %415 : vector<16x16xf32>
    %cst_170 = arith.constant dense<0.000000e+00> : vector<16x4xf32>
    %417 = tpu.matmul %416, %402, %cst_170 {dimension_numbers = #tpu.dot_dimension_numbers<[1], [0], [0], [1], [0, 0, 1, 1], [], []>} : vector<16x16xf32>, vector<16x4xf32>, vector<16x4xf32> -> vector<16x4xf32>
    %418 = vector.extract_strided_slice %58 {offsets = [0, 48], sizes = [16, 8], strides = [1, 1]} : vector<16x96xf32> to vector<16x8xf32>
    %419 = vector.extract_strided_slice %75 {offsets = [0, 48], sizes = [16, 8], strides = [1, 1]} : vector<16x96xf32> to vector<16x8xf32>
    %420 = vector.extract_strided_slice %89 {offsets = [0, 24], sizes = [16, 4], strides = [1, 1]} : vector<16x48xf32> to vector<16x4xf32>
    %cst_171 = arith.constant dense<0.000000e+00> : vector<16x16xf32>
    %421 = tpu.matmul %418, %419, %cst_171 {dimension_numbers = #tpu.dot_dimension_numbers<[1], [1], [0], [0], [0, 0, 1, 0], [], []>} : vector<16x8xf32>, vector<16x8xf32>, vector<16x16xf32> -> vector<16x16xf32>
    %cst_172 = arith.constant 0.353553385 : f32
    %422 = vector.broadcast %cst_172 : f32 to vector<16x16xf32>
    %423 = arith.mulf %421, %422 : vector<16x16xf32>
    %424 = vector.broadcast %7 : vector<1x16xf32> to vector<16x16xf32>
    %425 = arith.addf %423, %424 : vector<16x16xf32>
    %cst_173 = arith.constant dense<0xFF800000> : vector<16xf32>
    %426 = vector.multi_reduction <maximumf>, %425, %cst_173 [1] : vector<16x16xf32> to vector<16xf32>
    %427 = vector.shape_cast %426 : vector<16xf32> to vector<16x1xf32>
    %428 = vector.broadcast %427 : vector<16x1xf32> to vector<16x16xf32>
    %429 = arith.subf %425, %428 : vector<16x16xf32>
    %430 = math.exp %429 : vector<16x16xf32>
    %cst_174 = arith.constant dense<0.000000e+00> : vector<16xf32>
    %431 = vector.multi_reduction <add>, %430, %cst_174 [1] : vector<16x16xf32> to vector<16xf32>
    %432 = vector.shape_cast %431 : vector<16xf32> to vector<16x1xf32>
    %433 = vector.broadcast %432 : vector<16x1xf32> to vector<16x16xf32>
    %434 = arith.divf %430, %433 : vector<16x16xf32>
    %cst_175 = arith.constant dense<0.000000e+00> : vector<16x4xf32>
    %435 = tpu.matmul %434, %420, %cst_175 {dimension_numbers = #tpu.dot_dimension_numbers<[1], [0], [0], [1], [0, 0, 1, 1], [], []>} : vector<16x16xf32>, vector<16x4xf32>, vector<16x4xf32> -> vector<16x4xf32>
    %436 = vector.extract_strided_slice %58 {offsets = [0, 56], sizes = [16, 8], strides = [1, 1]} : vector<16x96xf32> to vector<16x8xf32>
    %437 = vector.extract_strided_slice %75 {offsets = [0, 56], sizes = [16, 8], strides = [1, 1]} : vector<16x96xf32> to vector<16x8xf32>
    %438 = vector.extract_strided_slice %89 {offsets = [0, 28], sizes = [16, 4], strides = [1, 1]} : vector<16x48xf32> to vector<16x4xf32>
    %cst_176 = arith.constant dense<0.000000e+00> : vector<16x16xf32>
    %439 = tpu.matmul %436, %437, %cst_176 {dimension_numbers = #tpu.dot_dimension_numbers<[1], [1], [0], [0], [0, 0, 1, 0], [], []>} : vector<16x8xf32>, vector<16x8xf32>, vector<16x16xf32> -> vector<16x16xf32>
    %cst_177 = arith.constant 0.353553385 : f32
    %440 = vector.broadcast %cst_177 : f32 to vector<16x16xf32>
    %441 = arith.mulf %439, %440 : vector<16x16xf32>
    %442 = vector.broadcast %7 : vector<1x16xf32> to vector<16x16xf32>
    %443 = arith.addf %441, %442 : vector<16x16xf32>
    %cst_178 = arith.constant dense<0xFF800000> : vector<16xf32>
    %444 = vector.multi_reduction <maximumf>, %443, %cst_178 [1] : vector<16x16xf32> to vector<16xf32>
    %445 = vector.shape_cast %444 : vector<16xf32> to vector<16x1xf32>
    %446 = vector.broadcast %445 : vector<16x1xf32> to vector<16x16xf32>
    %447 = arith.subf %443, %446 : vector<16x16xf32>
    %448 = math.exp %447 : vector<16x16xf32>
    %cst_179 = arith.constant dense<0.000000e+00> : vector<16xf32>
    %449 = vector.multi_reduction <add>, %448, %cst_179 [1] : vector<16x16xf32> to vector<16xf32>
    %450 = vector.shape_cast %449 : vector<16xf32> to vector<16x1xf32>
    %451 = vector.broadcast %450 : vector<16x1xf32> to vector<16x16xf32>
    %452 = arith.divf %448, %451 : vector<16x16xf32>
    %cst_180 = arith.constant dense<0.000000e+00> : vector<16x4xf32>
    %453 = tpu.matmul %452, %438, %cst_180 {dimension_numbers = #tpu.dot_dimension_numbers<[1], [0], [0], [1], [0, 0, 1, 1], [], []>} : vector<16x16xf32>, vector<16x4xf32>, vector<16x4xf32> -> vector<16x4xf32>
    %454 = vector.extract_strided_slice %58 {offsets = [0, 64], sizes = [16, 8], strides = [1, 1]} : vector<16x96xf32> to vector<16x8xf32>
    %455 = vector.extract_strided_slice %75 {offsets = [0, 64], sizes = [16, 8], strides = [1, 1]} : vector<16x96xf32> to vector<16x8xf32>
    %456 = vector.extract_strided_slice %89 {offsets = [0, 32], sizes = [16, 4], strides = [1, 1]} : vector<16x48xf32> to vector<16x4xf32>
    %cst_181 = arith.constant dense<0.000000e+00> : vector<16x16xf32>
    %457 = tpu.matmul %454, %455, %cst_181 {dimension_numbers = #tpu.dot_dimension_numbers<[1], [1], [0], [0], [0, 0, 1, 0], [], []>} : vector<16x8xf32>, vector<16x8xf32>, vector<16x16xf32> -> vector<16x16xf32>
    %cst_182 = arith.constant 0.353553385 : f32
    %458 = vector.broadcast %cst_182 : f32 to vector<16x16xf32>
    %459 = arith.mulf %457, %458 : vector<16x16xf32>
    %460 = vector.broadcast %7 : vector<1x16xf32> to vector<16x16xf32>
    %461 = arith.addf %459, %460 : vector<16x16xf32>
    %cst_183 = arith.constant dense<0xFF800000> : vector<16xf32>
    %462 = vector.multi_reduction <maximumf>, %461, %cst_183 [1] : vector<16x16xf32> to vector<16xf32>
    %463 = vector.shape_cast %462 : vector<16xf32> to vector<16x1xf32>
    %464 = vector.broadcast %463 : vector<16x1xf32> to vector<16x16xf32>
    %465 = arith.subf %461, %464 : vector<16x16xf32>
    %466 = math.exp %465 : vector<16x16xf32>
    %cst_184 = arith.constant dense<0.000000e+00> : vector<16xf32>
    %467 = vector.multi_reduction <add>, %466, %cst_184 [1] : vector<16x16xf32> to vector<16xf32>
    %468 = vector.shape_cast %467 : vector<16xf32> to vector<16x1xf32>
    %469 = vector.broadcast %468 : vector<16x1xf32> to vector<16x16xf32>
    %470 = arith.divf %466, %469 : vector<16x16xf32>
    %cst_185 = arith.constant dense<0.000000e+00> : vector<16x4xf32>
    %471 = tpu.matmul %470, %456, %cst_185 {dimension_numbers = #tpu.dot_dimension_numbers<[1], [0], [0], [1], [0, 0, 1, 1], [], []>} : vector<16x16xf32>, vector<16x4xf32>, vector<16x4xf32> -> vector<16x4xf32>
    %472 = vector.extract_strided_slice %58 {offsets = [0, 72], sizes = [16, 8], strides = [1, 1]} : vector<16x96xf32> to vector<16x8xf32>
    %473 = vector.extract_strided_slice %75 {offsets = [0, 72], sizes = [16, 8], strides = [1, 1]} : vector<16x96xf32> to vector<16x8xf32>
    %474 = vector.extract_strided_slice %89 {offsets = [0, 36], sizes = [16, 4], strides = [1, 1]} : vector<16x48xf32> to vector<16x4xf32>
    %cst_186 = arith.constant dense<0.000000e+00> : vector<16x16xf32>
    %475 = tpu.matmul %472, %473, %cst_186 {dimension_numbers = #tpu.dot_dimension_numbers<[1], [1], [0], [0], [0, 0, 1, 0], [], []>} : vector<16x8xf32>, vector<16x8xf32>, vector<16x16xf32> -> vector<16x16xf32>
    %cst_187 = arith.constant 0.353553385 : f32
    %476 = vector.broadcast %cst_187 : f32 to vector<16x16xf32>
    %477 = arith.mulf %475, %476 : vector<16x16xf32>
    %478 = vector.broadcast %7 : vector<1x16xf32> to vector<16x16xf32>
    %479 = arith.addf %477, %478 : vector<16x16xf32>
    %cst_188 = arith.constant dense<0xFF800000> : vector<16xf32>
    %480 = vector.multi_reduction <maximumf>, %479, %cst_188 [1] : vector<16x16xf32> to vector<16xf32>
    %481 = vector.shape_cast %480 : vector<16xf32> to vector<16x1xf32>
    %482 = vector.broadcast %481 : vector<16x1xf32> to vector<16x16xf32>
    %483 = arith.subf %479, %482 : vector<16x16xf32>
    %484 = math.exp %483 : vector<16x16xf32>
    %cst_189 = arith.constant dense<0.000000e+00> : vector<16xf32>
    %485 = vector.multi_reduction <add>, %484, %cst_189 [1] : vector<16x16xf32> to vector<16xf32>
    %486 = vector.shape_cast %485 : vector<16xf32> to vector<16x1xf32>
    %487 = vector.broadcast %486 : vector<16x1xf32> to vector<16x16xf32>
    %488 = arith.divf %484, %487 : vector<16x16xf32>
    %cst_190 = arith.constant dense<0.000000e+00> : vector<16x4xf32>
    %489 = tpu.matmul %488, %474, %cst_190 {dimension_numbers = #tpu.dot_dimension_numbers<[1], [0], [0], [1], [0, 0, 1, 1], [], []>} : vector<16x16xf32>, vector<16x4xf32>, vector<16x4xf32> -> vector<16x4xf32>
    %490 = vector.extract_strided_slice %58 {offsets = [0, 80], sizes = [16, 8], strides = [1, 1]} : vector<16x96xf32> to vector<16x8xf32>
    %491 = vector.extract_strided_slice %75 {offsets = [0, 80], sizes = [16, 8], strides = [1, 1]} : vector<16x96xf32> to vector<16x8xf32>
    %492 = vector.extract_strided_slice %89 {offsets = [0, 40], sizes = [16, 4], strides = [1, 1]} : vector<16x48xf32> to vector<16x4xf32>
    %cst_191 = arith.constant dense<0.000000e+00> : vector<16x16xf32>
    %493 = tpu.matmul %490, %491, %cst_191 {dimension_numbers = #tpu.dot_dimension_numbers<[1], [1], [0], [0], [0, 0, 1, 0], [], []>} : vector<16x8xf32>, vector<16x8xf32>, vector<16x16xf32> -> vector<16x16xf32>
    %cst_192 = arith.constant 0.353553385 : f32
    %494 = vector.broadcast %cst_192 : f32 to vector<16x16xf32>
    %495 = arith.mulf %493, %494 : vector<16x16xf32>
    %496 = vector.broadcast %7 : vector<1x16xf32> to vector<16x16xf32>
    %497 = arith.addf %495, %496 : vector<16x16xf32>
    %cst_193 = arith.constant dense<0xFF800000> : vector<16xf32>
    %498 = vector.multi_reduction <maximumf>, %497, %cst_193 [1] : vector<16x16xf32> to vector<16xf32>
    %499 = vector.shape_cast %498 : vector<16xf32> to vector<16x1xf32>
    %500 = vector.broadcast %499 : vector<16x1xf32> to vector<16x16xf32>
    %501 = arith.subf %497, %500 : vector<16x16xf32>
    %502 = math.exp %501 : vector<16x16xf32>
    %cst_194 = arith.constant dense<0.000000e+00> : vector<16xf32>
    %503 = vector.multi_reduction <add>, %502, %cst_194 [1] : vector<16x16xf32> to vector<16xf32>
    %504 = vector.shape_cast %503 : vector<16xf32> to vector<16x1xf32>
    %505 = vector.broadcast %504 : vector<16x1xf32> to vector<16x16xf32>
    %506 = arith.divf %502, %505 : vector<16x16xf32>
    %cst_195 = arith.constant dense<0.000000e+00> : vector<16x4xf32>
    %507 = tpu.matmul %506, %492, %cst_195 {dimension_numbers = #tpu.dot_dimension_numbers<[1], [0], [0], [1], [0, 0, 1, 1], [], []>} : vector<16x16xf32>, vector<16x4xf32>, vector<16x4xf32> -> vector<16x4xf32>
    %508 = vector.extract_strided_slice %58 {offsets = [0, 88], sizes = [16, 8], strides = [1, 1]} : vector<16x96xf32> to vector<16x8xf32>
    %509 = vector.extract_strided_slice %75 {offsets = [0, 88], sizes = [16, 8], strides = [1, 1]} : vector<16x96xf32> to vector<16x8xf32>
    %510 = vector.extract_strided_slice %89 {offsets = [0, 44], sizes = [16, 4], strides = [1, 1]} : vector<16x48xf32> to vector<16x4xf32>
    %cst_196 = arith.constant dense<0.000000e+00> : vector<16x16xf32>
    %511 = tpu.matmul %508, %509, %cst_196 {dimension_numbers = #tpu.dot_dimension_numbers<[1], [1], [0], [0], [0, 0, 1, 0], [], []>} : vector<16x8xf32>, vector<16x8xf32>, vector<16x16xf32> -> vector<16x16xf32>
    %cst_197 = arith.constant 0.353553385 : f32
    %512 = vector.broadcast %cst_197 : f32 to vector<16x16xf32>
    %513 = arith.mulf %511, %512 : vector<16x16xf32>
    %514 = vector.broadcast %7 : vector<1x16xf32> to vector<16x16xf32>
    %515 = arith.addf %513, %514 : vector<16x16xf32>
    %cst_198 = arith.constant dense<0xFF800000> : vector<16xf32>
    %516 = vector.multi_reduction <maximumf>, %515, %cst_198 [1] : vector<16x16xf32> to vector<16xf32>
    %517 = vector.shape_cast %516 : vector<16xf32> to vector<16x1xf32>
    %518 = vector.broadcast %517 : vector<16x1xf32> to vector<16x16xf32>
    %519 = arith.subf %515, %518 : vector<16x16xf32>
    %520 = math.exp %519 : vector<16x16xf32>
    %cst_199 = arith.constant dense<0.000000e+00> : vector<16xf32>
    %521 = vector.multi_reduction <add>, %520, %cst_199 [1] : vector<16x16xf32> to vector<16xf32>
    %522 = vector.shape_cast %521 : vector<16xf32> to vector<16x1xf32>
    %523 = vector.broadcast %522 : vector<16x1xf32> to vector<16x16xf32>
    %524 = arith.divf %520, %523 : vector<16x16xf32>
    %cst_200 = arith.constant dense<0.000000e+00> : vector<16x4xf32>
    %525 = tpu.matmul %524, %510, %cst_200 {dimension_numbers = #tpu.dot_dimension_numbers<[1], [0], [0], [1], [0, 0, 1, 1], [], []>} : vector<16x16xf32>, vector<16x4xf32>, vector<16x4xf32> -> vector<16x4xf32>
    %526 = tpu.concatenate %327, %345, %363, %381, %399, %417, %435, %453, %471, %489, %507, %525 in 1 : vector<16x4xf32>, vector<16x4xf32>, vector<16x4xf32>, vector<16x4xf32>, vector<16x4xf32>, vector<16x4xf32>, vector<16x4xf32>, vector<16x4xf32>, vector<16x4xf32>, vector<16x4xf32>, vector<16x4xf32>, vector<16x4xf32> -> vector<16x48xf32>
    %c0_201 = arith.constant 0 : index
    %c0_202 = arith.constant 0 : index
    %c0_203 = arith.constant 0 : index
    %527 = vector.load %arg13[%c0_201, %c0_202, %c0_203] : memref<1x16x48xf32, #tpu.memory_space<vmem>>, vector<1x16x48xf32>
    %528 = vector.shape_cast %527 : vector<1x16x48xf32> to vector<16x48xf32>
    %529 = vector.shape_cast %526 : vector<16x48xf32> to vector<1x16x48xf32>
    tpu.vector_store %arg13[%c0_201, %c0_202, %c0_203], %529 {strides = array<i32>} : memref<1x16x48xf32, #tpu.memory_space<vmem>>, vector<1x16x48xf32>,
    return
  }
  func.func @transform_0(%arg0: i32) -> (i32, i32, i32) {
    %c0_i32 = arith.constant 0 : i32
    %c0_i32_0 = arith.constant 0 : i32
    %c0_i32_1 = arith.constant 0 : i32
    return %arg0, %c0_i32, %c0_i32_0 : i32, i32, i32
  }
  func.func @transform_1(%arg0: i32) -> (i32, i32, i32) {
    %c0_i32 = arith.constant 0 : i32
    %c0_i32_0 = arith.constant 0 : i32
    %c0_i32_1 = arith.constant 0 : i32
    return %arg0, %c0_i32, %c0_i32_0 : i32, i32, i32
  }
  func.func @transform_2(%arg0: i32) -> (i32, i32, i32) {
    %c0_i32 = arith.constant 0 : i32
    %c0_i32_0 = arith.constant 0 : i32
    %c0_i32_1 = arith.constant 0 : i32
    return %arg0, %c0_i32, %c0_i32_0 : i32, i32, i32
  }
  func.func @transform_3(%arg0: i32) -> (i32, i32, i32) {
    %c0_i32 = arith.constant 0 : i32
    %c0_i32_0 = arith.constant 0 : i32
    %c0_i32_1 = arith.constant 0 : i32
    %c0_i32_2 = arith.constant 0 : i32
    return %c0_i32, %c0_i32_0, %c0_i32_1 : i32, i32, i32
  }
  func.func @transform_4(%arg0: i32) -> (i32, i32, i32) {
    %c0_i32 = arith.constant 0 : i32
    %c0_i32_0 = arith.constant 0 : i32
    %c0_i32_1 = arith.constant 0 : i32
    %c0_i32_2 = arith.constant 0 : i32
    return %c0_i32, %c0_i32_0, %c0_i32_1 : i32, i32, i32
  }
  func.func @transform_5(%arg0: i32) -> (i32, i32, i32) {
    %c0_i32 = arith.constant 0 : i32
    %c0_i32_0 = arith.constant 0 : i32
    %c0_i32_1 = arith.constant 0 : i32
    %c0_i32_2 = arith.constant 0 : i32
    return %c0_i32, %c0_i32_0, %c0_i32_1 : i32, i32, i32
  }
  func.func @transform_6(%arg0: i32) -> (i32, i32, i32) {
    %c0_i32 = arith.constant 0 : i32
    %c0_i32_0 = arith.constant 0 : i32
    %c0_i32_1 = arith.constant 0 : i32
    %c0_i32_2 = arith.constant 0 : i32
    return %c0_i32, %c0_i32_0, %c0_i32_1 : i32, i32, i32
  }
  func.func @transform_7(%arg0: i32) -> (i32, i32, i32) {
    %c0_i32 = arith.constant 0 : i32
    %c0_i32_0 = arith.constant 0 : i32
    %c0_i32_1 = arith.constant 0 : i32
    %c0_i32_2 = arith.constant 0 : i32
    return %c0_i32, %c0_i32_0, %c0_i32_1 : i32, i32, i32
  }
  func.func @transform_8(%arg0: i32) -> (i32, i32, i32) {
    %c0_i32 = arith.constant 0 : i32
    %c0_i32_0 = arith.constant 0 : i32
    %c0_i32_1 = arith.constant 0 : i32
    %c0_i32_2 = arith.constant 0 : i32
    return %c0_i32, %c0_i32_0, %c0_i32_1 : i32, i32, i32
  }
  func.func @transform_9(%arg0: i32) -> (i32, i32) {
    %c0_i32 = arith.constant 0 : i32
    %c0_i32_0 = arith.constant 0 : i32
    %c0_i32_1 = arith.constant 0 : i32
    return %c0_i32, %c0_i32_0 : i32, i32
  }
  func.func @transform_10(%arg0: i32) -> (i32, i32) {
    %c0_i32 = arith.constant 0 : i32
    %c0_i32_0 = arith.constant 0 : i32
    %c0_i32_1 = arith.constant 0 : i32
    return %c0_i32, %c0_i32_0 : i32, i32
  }
  func.func @transform_11(%arg0: i32) -> (i32, i32, i32) {
    %c0_i32 = arith.constant 0 : i32
    %c0_i32_0 = arith.constant 0 : i32
    %c0_i32_1 = arith.constant 0 : i32
    return %arg0, %c0_i32, %c0_i32_0 : i32, i32, i32
  }
  func.func @transform_12(%arg0: i32) -> (i32, i32, i32) {
    %c0_i32 = arith.constant 0 : i32
    %c0_i32_0 = arith.constant 0 : i32
    %c0_i32_1 = arith.constant 0 : i32
    return %arg0, %c0_i32, %c0_i32_0 : i32, i32, i32
  }
}

module attributes {stable_mosaic.version = 11 : i64} {
  func.func @_out_ffn_kernel(%arg0: i32, %arg1: memref<16x48xf32, #tpu.memory_space<vmem>>, %arg2: memref<16x48xf32, #tpu.memory_space<vmem>>, %arg3: memref<16x48xf32, #tpu.memory_space<vmem>>, %arg4: memref<16x48xf32, #tpu.memory_space<vmem>>, %arg5: memref<2x48x48xf32, #tpu.memory_space<vmem>>, %arg6: memref<2x1x48xf32, #tpu.memory_space<vmem>>, %arg7: memref<2x1x48xf32, #tpu.memory_space<vmem>>, %arg8: memref<2x1x48xf32, #tpu.memory_space<vmem>>, %arg9: memref<2x48x192xf32, #tpu.memory_space<vmem>>, %arg10: memref<2x1x192xf32, #tpu.memory_space<vmem>>, %arg11: memref<2x192x48xf32, #tpu.memory_space<vmem>>, %arg12: memref<2x1x48xf32, #tpu.memory_space<vmem>>, %arg13: memref<2x1x48xf32, #tpu.memory_space<vmem>>, %arg14: memref<2x1x48xf32, #tpu.memory_space<vmem>>, %arg15: memref<16x48xf32, #tpu.memory_space<vmem>>, %arg16: memref<16x48xf32, #tpu.memory_space<vmem>>) attributes {dimension_semantics = [#tpu.dimension_semantics<parallel>], iteration_bounds = array<i64: 2>, scalar_prefetch = 0 : i64, scratch_operands = 0 : i64, tpu.core_type = #tpu.core_type<tc>, window_params = [{transform_indices = @transform_0, window_bounds = array<i64: 16, 48>}, {transform_indices = @transform_1, window_bounds = array<i64: 16, 48>}, {transform_indices = @transform_2, window_bounds = array<i64: 16, 48>}, {transform_indices = @transform_3, window_bounds = array<i64: 16, 48>}, {pipeline_mode = #tpu.pipeline_mode<synchronous>, transform_indices = @transform_4, window_bounds = array<i64: 2, 48, 48>}, {pipeline_mode = #tpu.pipeline_mode<synchronous>, transform_indices = @transform_5, window_bounds = array<i64: 2, 1, 48>}, {pipeline_mode = #tpu.pipeline_mode<synchronous>, transform_indices = @transform_6, window_bounds = array<i64: 2, 1, 48>}, {pipeline_mode = #tpu.pipeline_mode<synchronous>, transform_indices = @transform_7, window_bounds = array<i64: 2, 1, 48>}, {pipeline_mode = #tpu.pipeline_mode<synchronous>, transform_indices = @transform_8, window_bounds = array<i64: 2, 48, 192>}, {pipeline_mode = #tpu.pipeline_mode<synchronous>, transform_indices = @transform_9, window_bounds = array<i64: 2, 1, 192>}, {pipeline_mode = #tpu.pipeline_mode<synchronous>, transform_indices = @transform_10, window_bounds = array<i64: 2, 192, 48>}, {pipeline_mode = #tpu.pipeline_mode<synchronous>, transform_indices = @transform_11, window_bounds = array<i64: 2, 1, 48>}, {pipeline_mode = #tpu.pipeline_mode<synchronous>, transform_indices = @transform_12, window_bounds = array<i64: 2, 1, 48>}, {pipeline_mode = #tpu.pipeline_mode<synchronous>, transform_indices = @transform_13, window_bounds = array<i64: 2, 1, 48>}, {transform_indices = @transform_14, window_bounds = array<i64: 16, 48>}, {transform_indices = @transform_15, window_bounds = array<i64: 16, 48>}]} {
    %c0 = arith.constant 0 : index
    %c0_0 = arith.constant 0 : index
    %0 = vector.load %arg1[%c0, %c0_0] : memref<16x48xf32, #tpu.memory_space<vmem>>, vector<16x48xf32>
    %c0_1 = arith.constant 0 : index
    %c0_2 = arith.constant 0 : index
    %1 = vector.load %arg2[%c0_1, %c0_2] : memref<16x48xf32, #tpu.memory_space<vmem>>, vector<16x48xf32>
    %c0_3 = arith.constant 0 : index
    %c0_4 = arith.constant 0 : index
    %c0_5 = arith.constant 0 : index
    %2 = vector.load %arg5[%c0_3, %c0_4, %c0_5] : memref<2x48x48xf32, #tpu.memory_space<vmem>>, vector<1x48x48xf32>
    %3 = vector.shape_cast %2 : vector<1x48x48xf32> to vector<48x48xf32>
    %cst = arith.constant dense<0.000000e+00> : vector<16x48xf32>
    %4 = tpu.matmul %0, %3, %cst {dimension_numbers = #tpu.dot_dimension_numbers<[1], [0], [0], [1], [0, 0, 1, 1], [], []>} : vector<16x48xf32>, vector<48x48xf32>, vector<16x48xf32> -> vector<16x48xf32>
    %c0_6 = arith.constant 0 : index
    %c0_7 = arith.constant 0 : index
    %c0_8 = arith.constant 0 : index
    %5 = vector.load %arg6[%c0_6, %c0_7, %c0_8] : memref<2x1x48xf32, #tpu.memory_space<vmem>>, vector<1x1x48xf32>
    %6 = vector.shape_cast %5 : vector<1x1x48xf32> to vector<1x48xf32>
    %7 = vector.broadcast %6 : vector<1x48xf32> to vector<16x48xf32>
    %8 = arith.addf %4, %7 : vector<16x48xf32>
    %9 = arith.addf %8, %1 : vector<16x48xf32>
    %c0_9 = arith.constant 0 : index
    %c0_10 = arith.constant 0 : index
    %c0_11 = arith.constant 0 : index
    %10 = vector.load %arg7[%c0_9, %c0_10, %c0_11] : memref<2x1x48xf32, #tpu.memory_space<vmem>>, vector<1x1x48xf32>
    %11 = vector.shape_cast %10 : vector<1x1x48xf32> to vector<1x48xf32>
    %c0_12 = arith.constant 0 : index
    %c0_13 = arith.constant 0 : index
    %c0_14 = arith.constant 0 : index
    %12 = vector.load %arg8[%c0_12, %c0_13, %c0_14] : memref<2x1x48xf32, #tpu.memory_space<vmem>>, vector<1x1x48xf32>
    %13 = vector.shape_cast %12 : vector<1x1x48xf32> to vector<1x48xf32>
    %cst_15 = arith.constant dense<0.000000e+00> : vector<16xf32>
    %14 = vector.multi_reduction <add>, %9, %cst_15 [1] : vector<16x48xf32> to vector<16xf32>
    %15 = vector.shape_cast %14 : vector<16xf32> to vector<16x1xf32>
    %cst_16 = arith.constant 4.800000e+01 : f32
    %16 = vector.broadcast %cst_16 : f32 to vector<16x1xf32>
    %17 = arith.divf %15, %16 : vector<16x1xf32>
    %18 = vector.broadcast %17 : vector<16x1xf32> to vector<16x48xf32>
    %19 = arith.subf %9, %18 : vector<16x48xf32>
    %20 = arith.mulf %19, %19 : vector<16x48xf32>
    %cst_17 = arith.constant dense<0.000000e+00> : vector<16xf32>
    %21 = vector.multi_reduction <add>, %20, %cst_17 [1] : vector<16x48xf32> to vector<16xf32>
    %22 = vector.shape_cast %21 : vector<16xf32> to vector<16x1xf32>
    %cst_18 = arith.constant 4.800000e+01 : f32
    %23 = vector.broadcast %cst_18 : f32 to vector<16x1xf32>
    %24 = arith.divf %22, %23 : vector<16x1xf32>
    %cst_19 = arith.constant 9.99999996E-13 : f32
    %25 = vector.broadcast %cst_19 : f32 to vector<16x1xf32>
    %26 = arith.addf %24, %25 : vector<16x1xf32>
    %27 = math.rsqrt %26 : vector<16x1xf32>
    %28 = vector.broadcast %27 : vector<16x1xf32> to vector<16x48xf32>
    %29 = arith.mulf %19, %28 : vector<16x48xf32>
    %30 = vector.broadcast %11 : vector<1x48xf32> to vector<16x48xf32>
    %31 = arith.mulf %30, %29 : vector<16x48xf32>
    %32 = vector.broadcast %13 : vector<1x48xf32> to vector<16x48xf32>
    %33 = arith.addf %31, %32 : vector<16x48xf32>
    %c0_20 = arith.constant 0 : index
    %c0_21 = arith.constant 0 : index
    %c0_22 = arith.constant 0 : index
    %34 = vector.load %arg9[%c0_20, %c0_21, %c0_22] : memref<2x48x192xf32, #tpu.memory_space<vmem>>, vector<1x48x192xf32>
    %35 = vector.shape_cast %34 : vector<1x48x192xf32> to vector<48x192xf32>
    %cst_23 = arith.constant dense<0.000000e+00> : vector<16x192xf32>
    %36 = tpu.matmul %33, %35, %cst_23 {dimension_numbers = #tpu.dot_dimension_numbers<[1], [0], [0], [1], [0, 0, 1, 1], [], []>} : vector<16x48xf32>, vector<48x192xf32>, vector<16x192xf32> -> vector<16x192xf32>
    %c0_24 = arith.constant 0 : index
    %c0_25 = arith.constant 0 : index
    %c0_26 = arith.constant 0 : index
    %37 = vector.load %arg10[%c0_24, %c0_25, %c0_26] : memref<2x1x192xf32, #tpu.memory_space<vmem>>, vector<1x1x192xf32>
    %38 = vector.shape_cast %37 : vector<1x1x192xf32> to vector<1x192xf32>
    %39 = vector.broadcast %38 : vector<1x192xf32> to vector<16x192xf32>
    %40 = arith.addf %36, %39 : vector<16x192xf32>
    %cst_27 = arith.constant 0.000000e+00 : f32
    %41 = vector.broadcast %cst_27 : f32 to vector<16x192xf32>
    %42 = arith.maximumf %40, %41 : vector<16x192xf32>
    %c0_28 = arith.constant 0 : index
    %c0_29 = arith.constant 0 : index
    %c0_30 = arith.constant 0 : index
    %43 = vector.load %arg11[%c0_28, %c0_29, %c0_30] : memref<2x192x48xf32, #tpu.memory_space<vmem>>, vector<1x192x48xf32>
    %44 = vector.shape_cast %43 : vector<1x192x48xf32> to vector<192x48xf32>
    %cst_31 = arith.constant dense<0.000000e+00> : vector<16x48xf32>
    %45 = tpu.matmul %42, %44, %cst_31 {dimension_numbers = #tpu.dot_dimension_numbers<[1], [0], [0], [1], [0, 0, 1, 1], [], []>} : vector<16x192xf32>, vector<192x48xf32>, vector<16x48xf32> -> vector<16x48xf32>
    %c0_32 = arith.constant 0 : index
    %c0_33 = arith.constant 0 : index
    %c0_34 = arith.constant 0 : index
    %46 = vector.load %arg12[%c0_32, %c0_33, %c0_34] : memref<2x1x48xf32, #tpu.memory_space<vmem>>, vector<1x1x48xf32>
    %47 = vector.shape_cast %46 : vector<1x1x48xf32> to vector<1x48xf32>
    %48 = vector.broadcast %47 : vector<1x48xf32> to vector<16x48xf32>
    %49 = arith.addf %45, %48 : vector<16x48xf32>
    %50 = arith.addf %49, %33 : vector<16x48xf32>
    %c0_35 = arith.constant 0 : index
    %c0_36 = arith.constant 0 : index
    %c0_37 = arith.constant 0 : index
    %51 = vector.load %arg13[%c0_35, %c0_36, %c0_37] : memref<2x1x48xf32, #tpu.memory_space<vmem>>, vector<1x1x48xf32>
    %52 = vector.shape_cast %51 : vector<1x1x48xf32> to vector<1x48xf32>
    %c0_38 = arith.constant 0 : index
    %c0_39 = arith.constant 0 : index
    %c0_40 = arith.constant 0 : index
    %53 = vector.load %arg14[%c0_38, %c0_39, %c0_40] : memref<2x1x48xf32, #tpu.memory_space<vmem>>, vector<1x1x48xf32>
    %54 = vector.shape_cast %53 : vector<1x1x48xf32> to vector<1x48xf32>
    %cst_41 = arith.constant dense<0.000000e+00> : vector<16xf32>
    %55 = vector.multi_reduction <add>, %50, %cst_41 [1] : vector<16x48xf32> to vector<16xf32>
    %56 = vector.shape_cast %55 : vector<16xf32> to vector<16x1xf32>
    %cst_42 = arith.constant 4.800000e+01 : f32
    %57 = vector.broadcast %cst_42 : f32 to vector<16x1xf32>
    %58 = arith.divf %56, %57 : vector<16x1xf32>
    %59 = vector.broadcast %58 : vector<16x1xf32> to vector<16x48xf32>
    %60 = arith.subf %50, %59 : vector<16x48xf32>
    %61 = arith.mulf %60, %60 : vector<16x48xf32>
    %cst_43 = arith.constant dense<0.000000e+00> : vector<16xf32>
    %62 = vector.multi_reduction <add>, %61, %cst_43 [1] : vector<16x48xf32> to vector<16xf32>
    %63 = vector.shape_cast %62 : vector<16xf32> to vector<16x1xf32>
    %cst_44 = arith.constant 4.800000e+01 : f32
    %64 = vector.broadcast %cst_44 : f32 to vector<16x1xf32>
    %65 = arith.divf %63, %64 : vector<16x1xf32>
    %cst_45 = arith.constant 9.99999996E-13 : f32
    %66 = vector.broadcast %cst_45 : f32 to vector<16x1xf32>
    %67 = arith.addf %65, %66 : vector<16x1xf32>
    %68 = math.rsqrt %67 : vector<16x1xf32>
    %69 = vector.broadcast %68 : vector<16x1xf32> to vector<16x48xf32>
    %70 = arith.mulf %60, %69 : vector<16x48xf32>
    %71 = vector.broadcast %52 : vector<1x48xf32> to vector<16x48xf32>
    %72 = arith.mulf %71, %70 : vector<16x48xf32>
    %73 = vector.broadcast %54 : vector<1x48xf32> to vector<16x48xf32>
    %74 = arith.addf %72, %73 : vector<16x48xf32>
    %c0_46 = arith.constant 0 : index
    %c0_47 = arith.constant 0 : index
    %75 = vector.load %arg15[%c0_46, %c0_47] : memref<16x48xf32, #tpu.memory_space<vmem>>, vector<16x48xf32>
    tpu.vector_store %arg15[%c0_46, %c0_47], %74 {strides = array<i32>} : memref<16x48xf32, #tpu.memory_space<vmem>>, vector<16x48xf32>,
    %c0_48 = arith.constant 0 : index
    %c0_49 = arith.constant 0 : index
    %76 = vector.load %arg3[%c0_48, %c0_49] : memref<16x48xf32, #tpu.memory_space<vmem>>, vector<16x48xf32>
    %c0_50 = arith.constant 0 : index
    %c0_51 = arith.constant 0 : index
    %77 = vector.load %arg4[%c0_50, %c0_51] : memref<16x48xf32, #tpu.memory_space<vmem>>, vector<16x48xf32>
    %c1 = arith.constant 1 : index
    %c0_52 = arith.constant 0 : index
    %c0_53 = arith.constant 0 : index
    %78 = vector.load %arg5[%c1, %c0_52, %c0_53] : memref<2x48x48xf32, #tpu.memory_space<vmem>>, vector<1x48x48xf32>
    %79 = vector.shape_cast %78 : vector<1x48x48xf32> to vector<48x48xf32>
    %cst_54 = arith.constant dense<0.000000e+00> : vector<16x48xf32>
    %80 = tpu.matmul %76, %79, %cst_54 {dimension_numbers = #tpu.dot_dimension_numbers<[1], [0], [0], [1], [0, 0, 1, 1], [], []>} : vector<16x48xf32>, vector<48x48xf32>, vector<16x48xf32> -> vector<16x48xf32>
    %c1_55 = arith.constant 1 : index
    %c0_56 = arith.constant 0 : index
    %c0_57 = arith.constant 0 : index
    %81 = vector.load %arg6[%c1_55, %c0_56, %c0_57] : memref<2x1x48xf32, #tpu.memory_space<vmem>>, vector<1x1x48xf32>
    %82 = vector.shape_cast %81 : vector<1x1x48xf32> to vector<1x48xf32>
    %83 = vector.broadcast %82 : vector<1x48xf32> to vector<16x48xf32>
    %84 = arith.addf %80, %83 : vector<16x48xf32>
    %85 = arith.addf %84, %77 : vector<16x48xf32>
    %c1_58 = arith.constant 1 : index
    %c0_59 = arith.constant 0 : index
    %c0_60 = arith.constant 0 : index
    %86 = vector.load %arg7[%c1_58, %c0_59, %c0_60] : memref<2x1x48xf32, #tpu.memory_space<vmem>>, vector<1x1x48xf32>
    %87 = vector.shape_cast %86 : vector<1x1x48xf32> to vector<1x48xf32>
    %c1_61 = arith.constant 1 : index
    %c0_62 = arith.constant 0 : index
    %c0_63 = arith.constant 0 : index
    %88 = vector.load %arg8[%c1_61, %c0_62, %c0_63] : memref<2x1x48xf32, #tpu.memory_space<vmem>>, vector<1x1x48xf32>
    %89 = vector.shape_cast %88 : vector<1x1x48xf32> to vector<1x48xf32>
    %cst_64 = arith.constant dense<0.000000e+00> : vector<16xf32>
    %90 = vector.multi_reduction <add>, %85, %cst_64 [1] : vector<16x48xf32> to vector<16xf32>
    %91 = vector.shape_cast %90 : vector<16xf32> to vector<16x1xf32>
    %cst_65 = arith.constant 4.800000e+01 : f32
    %92 = vector.broadcast %cst_65 : f32 to vector<16x1xf32>
    %93 = arith.divf %91, %92 : vector<16x1xf32>
    %94 = vector.broadcast %93 : vector<16x1xf32> to vector<16x48xf32>
    %95 = arith.subf %85, %94 : vector<16x48xf32>
    %96 = arith.mulf %95, %95 : vector<16x48xf32>
    %cst_66 = arith.constant dense<0.000000e+00> : vector<16xf32>
    %97 = vector.multi_reduction <add>, %96, %cst_66 [1] : vector<16x48xf32> to vector<16xf32>
    %98 = vector.shape_cast %97 : vector<16xf32> to vector<16x1xf32>
    %cst_67 = arith.constant 4.800000e+01 : f32
    %99 = vector.broadcast %cst_67 : f32 to vector<16x1xf32>
    %100 = arith.divf %98, %99 : vector<16x1xf32>
    %cst_68 = arith.constant 9.99999996E-13 : f32
    %101 = vector.broadcast %cst_68 : f32 to vector<16x1xf32>
    %102 = arith.addf %100, %101 : vector<16x1xf32>
    %103 = math.rsqrt %102 : vector<16x1xf32>
    %104 = vector.broadcast %103 : vector<16x1xf32> to vector<16x48xf32>
    %105 = arith.mulf %95, %104 : vector<16x48xf32>
    %106 = vector.broadcast %87 : vector<1x48xf32> to vector<16x48xf32>
    %107 = arith.mulf %106, %105 : vector<16x48xf32>
    %108 = vector.broadcast %89 : vector<1x48xf32> to vector<16x48xf32>
    %109 = arith.addf %107, %108 : vector<16x48xf32>
    %c1_69 = arith.constant 1 : index
    %c0_70 = arith.constant 0 : index
    %c0_71 = arith.constant 0 : index
    %110 = vector.load %arg9[%c1_69, %c0_70, %c0_71] : memref<2x48x192xf32, #tpu.memory_space<vmem>>, vector<1x48x192xf32>
    %111 = vector.shape_cast %110 : vector<1x48x192xf32> to vector<48x192xf32>
    %cst_72 = arith.constant dense<0.000000e+00> : vector<16x192xf32>
    %112 = tpu.matmul %109, %111, %cst_72 {dimension_numbers = #tpu.dot_dimension_numbers<[1], [0], [0], [1], [0, 0, 1, 1], [], []>} : vector<16x48xf32>, vector<48x192xf32>, vector<16x192xf32> -> vector<16x192xf32>
    %c1_73 = arith.constant 1 : index
    %c0_74 = arith.constant 0 : index
    %c0_75 = arith.constant 0 : index
    %113 = vector.load %arg10[%c1_73, %c0_74, %c0_75] : memref<2x1x192xf32, #tpu.memory_space<vmem>>, vector<1x1x192xf32>
    %114 = vector.shape_cast %113 : vector<1x1x192xf32> to vector<1x192xf32>
    %115 = vector.broadcast %114 : vector<1x192xf32> to vector<16x192xf32>
    %116 = arith.addf %112, %115 : vector<16x192xf32>
    %cst_76 = arith.constant 0.000000e+00 : f32
    %117 = vector.broadcast %cst_76 : f32 to vector<16x192xf32>
    %118 = arith.maximumf %116, %117 : vector<16x192xf32>
    %c1_77 = arith.constant 1 : index
    %c0_78 = arith.constant 0 : index
    %c0_79 = arith.constant 0 : index
    %119 = vector.load %arg11[%c1_77, %c0_78, %c0_79] : memref<2x192x48xf32, #tpu.memory_space<vmem>>, vector<1x192x48xf32>
    %120 = vector.shape_cast %119 : vector<1x192x48xf32> to vector<192x48xf32>
    %cst_80 = arith.constant dense<0.000000e+00> : vector<16x48xf32>
    %121 = tpu.matmul %118, %120, %cst_80 {dimension_numbers = #tpu.dot_dimension_numbers<[1], [0], [0], [1], [0, 0, 1, 1], [], []>} : vector<16x192xf32>, vector<192x48xf32>, vector<16x48xf32> -> vector<16x48xf32>
    %c1_81 = arith.constant 1 : index
    %c0_82 = arith.constant 0 : index
    %c0_83 = arith.constant 0 : index
    %122 = vector.load %arg12[%c1_81, %c0_82, %c0_83] : memref<2x1x48xf32, #tpu.memory_space<vmem>>, vector<1x1x48xf32>
    %123 = vector.shape_cast %122 : vector<1x1x48xf32> to vector<1x48xf32>
    %124 = vector.broadcast %123 : vector<1x48xf32> to vector<16x48xf32>
    %125 = arith.addf %121, %124 : vector<16x48xf32>
    %126 = arith.addf %125, %109 : vector<16x48xf32>
    %c1_84 = arith.constant 1 : index
    %c0_85 = arith.constant 0 : index
    %c0_86 = arith.constant 0 : index
    %127 = vector.load %arg13[%c1_84, %c0_85, %c0_86] : memref<2x1x48xf32, #tpu.memory_space<vmem>>, vector<1x1x48xf32>
    %128 = vector.shape_cast %127 : vector<1x1x48xf32> to vector<1x48xf32>
    %c1_87 = arith.constant 1 : index
    %c0_88 = arith.constant 0 : index
    %c0_89 = arith.constant 0 : index
    %129 = vector.load %arg14[%c1_87, %c0_88, %c0_89] : memref<2x1x48xf32, #tpu.memory_space<vmem>>, vector<1x1x48xf32>
    %130 = vector.shape_cast %129 : vector<1x1x48xf32> to vector<1x48xf32>
    %cst_90 = arith.constant dense<0.000000e+00> : vector<16xf32>
    %131 = vector.multi_reduction <add>, %126, %cst_90 [1] : vector<16x48xf32> to vector<16xf32>
    %132 = vector.shape_cast %131 : vector<16xf32> to vector<16x1xf32>
    %cst_91 = arith.constant 4.800000e+01 : f32
    %133 = vector.broadcast %cst_91 : f32 to vector<16x1xf32>
    %134 = arith.divf %132, %133 : vector<16x1xf32>
    %135 = vector.broadcast %134 : vector<16x1xf32> to vector<16x48xf32>
    %136 = arith.subf %126, %135 : vector<16x48xf32>
    %137 = arith.mulf %136, %136 : vector<16x48xf32>
    %cst_92 = arith.constant dense<0.000000e+00> : vector<16xf32>
    %138 = vector.multi_reduction <add>, %137, %cst_92 [1] : vector<16x48xf32> to vector<16xf32>
    %139 = vector.shape_cast %138 : vector<16xf32> to vector<16x1xf32>
    %cst_93 = arith.constant 4.800000e+01 : f32
    %140 = vector.broadcast %cst_93 : f32 to vector<16x1xf32>
    %141 = arith.divf %139, %140 : vector<16x1xf32>
    %cst_94 = arith.constant 9.99999996E-13 : f32
    %142 = vector.broadcast %cst_94 : f32 to vector<16x1xf32>
    %143 = arith.addf %141, %142 : vector<16x1xf32>
    %144 = math.rsqrt %143 : vector<16x1xf32>
    %145 = vector.broadcast %144 : vector<16x1xf32> to vector<16x48xf32>
    %146 = arith.mulf %136, %145 : vector<16x48xf32>
    %147 = vector.broadcast %128 : vector<1x48xf32> to vector<16x48xf32>
    %148 = arith.mulf %147, %146 : vector<16x48xf32>
    %149 = vector.broadcast %130 : vector<1x48xf32> to vector<16x48xf32>
    %150 = arith.addf %148, %149 : vector<16x48xf32>
    %c0_95 = arith.constant 0 : index
    %c0_96 = arith.constant 0 : index
    %151 = vector.load %arg16[%c0_95, %c0_96] : memref<16x48xf32, #tpu.memory_space<vmem>>, vector<16x48xf32>
    tpu.vector_store %arg16[%c0_95, %c0_96], %150 {strides = array<i32>} : memref<16x48xf32, #tpu.memory_space<vmem>>, vector<16x48xf32>,
    return
  }
  func.func @transform_0(%arg0: i32) -> (i32, i32) {
    %c0_i32 = arith.constant 0 : i32
    %c0_i32_0 = arith.constant 0 : i32
    return %arg0, %c0_i32 : i32, i32
  }
  func.func @transform_1(%arg0: i32) -> (i32, i32) {
    %c0_i32 = arith.constant 0 : i32
    %c0_i32_0 = arith.constant 0 : i32
    return %arg0, %c0_i32 : i32, i32
  }
  func.func @transform_2(%arg0: i32) -> (i32, i32) {
    %c0_i32 = arith.constant 0 : i32
    %c0_i32_0 = arith.constant 0 : i32
    return %arg0, %c0_i32 : i32, i32
  }
  func.func @transform_3(%arg0: i32) -> (i32, i32) {
    %c0_i32 = arith.constant 0 : i32
    %c0_i32_0 = arith.constant 0 : i32
    return %arg0, %c0_i32 : i32, i32
  }
  func.func @transform_4(%arg0: i32) -> (i32, i32, i32) {
    %c0_i32 = arith.constant 0 : i32
    %c0_i32_0 = arith.constant 0 : i32
    %c0_i32_1 = arith.constant 0 : i32
    %c0_i32_2 = arith.constant 0 : i32
    return %c0_i32, %c0_i32_0, %c0_i32_1 : i32, i32, i32
  }
  func.func @transform_5(%arg0: i32) -> (i32, i32, i32) {
    %c0_i32 = arith.constant 0 : i32
    %c0_i32_0 = arith.constant 0 : i32
    %c0_i32_1 = arith.constant 0 : i32
    %c0_i32_2 = arith.constant 0 : i32
    return %c0_i32, %c0_i32_0, %c0_i32_1 : i32, i32, i32
  }
  func.func @transform_6(%arg0: i32) -> (i32, i32, i32) {
    %c0_i32 = arith.constant 0 : i32
    %c0_i32_0 = arith.constant 0 : i32
    %c0_i32_1 = arith.constant 0 : i32
    %c0_i32_2 = arith.constant 0 : i32
    return %c0_i32, %c0_i32_0, %c0_i32_1 : i32, i32, i32
  }
  func.func @transform_7(%arg0: i32) -> (i32, i32, i32) {
    %c0_i32 = arith.constant 0 : i32
    %c0_i32_0 = arith.constant 0 : i32
    %c0_i32_1 = arith.constant 0 : i32
    %c0_i32_2 = arith.constant 0 : i32
    return %c0_i32, %c0_i32_0, %c0_i32_1 : i32, i32, i32
  }
  func.func @transform_8(%arg0: i32) -> (i32, i32, i32) {
    %c0_i32 = arith.constant 0 : i32
    %c0_i32_0 = arith.constant 0 : i32
    %c0_i32_1 = arith.constant 0 : i32
    %c0_i32_2 = arith.constant 0 : i32
    return %c0_i32, %c0_i32_0, %c0_i32_1 : i32, i32, i32
  }
  func.func @transform_9(%arg0: i32) -> (i32, i32, i32) {
    %c0_i32 = arith.constant 0 : i32
    %c0_i32_0 = arith.constant 0 : i32
    %c0_i32_1 = arith.constant 0 : i32
    %c0_i32_2 = arith.constant 0 : i32
    return %c0_i32, %c0_i32_0, %c0_i32_1 : i32, i32, i32
  }
  func.func @transform_10(%arg0: i32) -> (i32, i32, i32) {
    %c0_i32 = arith.constant 0 : i32
    %c0_i32_0 = arith.constant 0 : i32
    %c0_i32_1 = arith.constant 0 : i32
    %c0_i32_2 = arith.constant 0 : i32
    return %c0_i32, %c0_i32_0, %c0_i32_1 : i32, i32, i32
  }
  func.func @transform_11(%arg0: i32) -> (i32, i32, i32) {
    %c0_i32 = arith.constant 0 : i32
    %c0_i32_0 = arith.constant 0 : i32
    %c0_i32_1 = arith.constant 0 : i32
    %c0_i32_2 = arith.constant 0 : i32
    return %c0_i32, %c0_i32_0, %c0_i32_1 : i32, i32, i32
  }
  func.func @transform_12(%arg0: i32) -> (i32, i32, i32) {
    %c0_i32 = arith.constant 0 : i32
    %c0_i32_0 = arith.constant 0 : i32
    %c0_i32_1 = arith.constant 0 : i32
    %c0_i32_2 = arith.constant 0 : i32
    return %c0_i32, %c0_i32_0, %c0_i32_1 : i32, i32, i32
  }
  func.func @transform_13(%arg0: i32) -> (i32, i32, i32) {
    %c0_i32 = arith.constant 0 : i32
    %c0_i32_0 = arith.constant 0 : i32
    %c0_i32_1 = arith.constant 0 : i32
    %c0_i32_2 = arith.constant 0 : i32
    return %c0_i32, %c0_i32_0, %c0_i32_1 : i32, i32, i32
  }
  func.func @transform_14(%arg0: i32) -> (i32, i32) {
    %c0_i32 = arith.constant 0 : i32
    %c0_i32_0 = arith.constant 0 : i32
    return %arg0, %c0_i32 : i32, i32
  }
  func.func @transform_15(%arg0: i32) -> (i32, i32) {
    %c0_i32 = arith.constant 0 : i32
    %c0_i32_0 = arith.constant 0 : i32
    return %arg0, %c0_i32 : i32, i32
  }
}

</mosaic_0001>

<bundles_post_ra>
// kernel: i_s_block_forward.3
= control target key start
LH: loop header
LB: loop body
LE: loop exit
PB: predicated region body
PF: predicated region fallthrough
CT: control target
= control target key end

     0   :  { %s2543_s0 = inlined_call_operand.vmem [shape: f32[32,48], index: 0, kind: input, shape index: {}]   ;;  %s2544_s1 = inlined_call_operand.vmem [shape: f32[32,48], index: 1, kind: input, shape index: {}]   ;;  %s2545_s2 = inlined_call_operand.vmem [shape: f32[32,48], index: 2, kind: input, shape index: {}]   ;;  %s2546_s3 = inlined_call_operand.vmem [shape: f32[32,48], index: 3, kind: input, shape index: {}]   ;;  %s2547_s4 = inlined_call_operand.vmem [shape: f32[2,48,48], index: 4, kind: input, shape index: {}]   ;;  %s2548_s5 = inlined_call_operand.vmem [shape: f32[2,1,48], index: 5, kind: input, shape index: {}]   ;;  %s2549_s6 = inlined_call_operand.vmem [shape: f32[2,1,48], index: 6, kind: input, shape index: {}]   ;;  %s2550_s7 = inlined_call_operand.vmem [shape: f32[2,1,48], index: 7, kind: input, shape index: {}]   ;;  %s2551_s8 = inlined_call_operand.vmem [shape: f32[2,48,192], index: 8, kind: input, shape index: {}]   ;;  %s2552_s9 = inlined_call_operand.vmem [shape: f32[2,1,192], index: 9, kind: input, shape index: {}]   ;;  %s2553_s10 = inlined_call_operand.vmem [shape: f32[2,192,48], index: 10, kind: input, shape index: {}]   ;;  %s2554_s11 = inlined_call_operand.vmem [shape: f32[2,1,48], index: 11, kind: input, shape index: {}]   ;;  %s2555_s12 = inlined_call_operand.vmem [shape: f32[2,1,48], index: 12, kind: input, shape index: {}]   ;;  %s2556_s13 = inlined_call_operand.vmem [shape: f32[2,1,48], index: 13, kind: input, shape index: {}]   ;;  %s2557_s14 = inlined_call_operand.hbm [shape: f32[32,48], index: 14, kind: output, shape index: {0}]   ;;  %s2558_s15 = inlined_call_operand.hbm [shape: f32[32,48], index: 15, kind: output, shape index: {1}]  }
   0x1   :  { %2565 = sst [smem:[#allocation13_spill]] %s2543_s0 }
   0x2   :  { %2566 = sst [smem:[#allocation14_spill]] %s2544_s1 }
   0x3   :  { %2567 = sst [smem:[#allocation15_spill]] %s2545_s2 }
   0x4   :  { %21 = vsyncpa [#allocation3], 0 }
   0x5   :  { %23 = vsyncpa [#allocation3 + $0x1], 0 }
   0x6   :  { %24 = vsyncpa [#allocation5], 0 }
   0x7   :  { %26 = vsyncpa [#allocation5 + $0x1], 0  ;;  %s1965_s18 = smov 0   ;;  %s1967_s19 = smov 0  }
   0x8   :  { %s1969_s20 = smov 0   ;;  %s1971_s21 = smov 0  }
   0x9 LB: > { %2568 = sst [smem:[#allocation8_spill]] %s1866_s18  ;;  %s1986_s22 = sadd.s32 4294967295, %s1878_s21   ;;  %s1878_s21 = sphi %s1971_s21, %s2583_s21   ;;  %s1874_s20 = sphi %s1969_s20, %s2585_s20   ;;  %s1870_s19 = sphi %s1967_s19, %s2587_s19   ;;  %s1866_s18 = sphi %s1965_s18, %s2586_s18  }
   0xa   : > { %2569 = sst [smem:[#allocation9_spill]] %s1874_s20  ;;  %s1582_s23 = sadd.s32 4294967294, %s1878_s21  }
   0xb   : > { %s1990_s24 = sadd.s32 1, %s1878_s21   ;;  %s353_s25 = sadd.s32 1, %s1874_s20 }
   0xc   : > { %2570 = sst [smem:[#allocation10_spill]] %s1990_s24  ;;  %s350_s26 = ssub.s32 %s1878_s21, %s1990_s24 }
   0xd   : > { %p363_p0 = scmp.ne.s32.totalorder %s1874_s20, %s1870_s19  ;;  %p351_p1 = scmp.eq.s32.totalorder %s350_s26, 0 }
   0xe   : > { %p364_p2 = scmp.eq.s32.totalorder %s1986_s22, 1  ;;  %p369_p3 = scmp.ne.s32.totalorder %s1870_s19, %s1866_s18 }
   0xf   : > { %p370_p4 = scmp.eq.s32.totalorder %s1582_s23, 1  ;;  %p1585_p7 = scmp.ge.s32.totalorder %s1878_s21, 1 }
  0x10   : > { %s2001_s27 = scalar_select %p351_p1, %s1874_s20, %s353_s25  }
  0x11   : > { %p2003_p5 = por %p364_p2, %p363_p0  ;;  %p2007_p6 = por %p370_p4, %p369_p3 }
  0x12   : > { %2571 = sst [smem:[#allocation11_spill]] %s2001_s27  ;;  %p480_p8 = scmp.lt.s32.totalorder %s1878_s21, 3 }
  0x13   : > { %s2573_s29 = scalar_select %p2007_p6, 1, 0 }
  0x14   : > { %p481_p9 = pnand %p1585_p7, %p480_p8 }
  0x15   : > { %2574 = sst [smem:[#allocation12_spill]] %s2573_s29  ;;  %s1588_s27 = sshll.u32 (!%p481_p9), %s1986_s22, 1 }
  0x16   : > { %484 = sbr.rel (%p481_p9) target bundleno = 1295 (0x50f), region = 76  ;;  %p549_p10 = scmp.lt.s32.totalorder (!%p481_p9), %s1588_s27, 3 }
  0x17   : > { %s2575_s0 = sld [smem:[#allocation13_spill]] (!%p481_p9)  ;;  %s2431_s16 = sand.u32 (!%p481_p9), 1, %s1870_s19  }
  0x18   : > { %s2576_s2 = sld [smem:[#allocation15_spill]] (!%p481_p9) }
  0x19   : > { %s2577_s1 = sld [smem:[#allocation14_spill]] (!%p481_p9) }
  0x1b   : > { %v583_v0 = vld [vmem:[%s2547_s4 + $0x28] sm:$0xff]  ;;  %v582_v1 = vld [vmem:[%s2547_s4 + $0x20] sm:$0xff]  ;;  %v1613_v2 = vld [vmem:[%s2547_s4 + $0x58] sm:$0xff]  ;;  %s2589_s27 = smov (!%p549_p10, %s1588_s27), 3  ;;  %vm591_vm0 = vcmask 392192   ;;  %vm862_vm1 = vcmask 523264  }
  0x1c   : > { %1695 = vmatprep.subr.mxu0 %v583_v0  ;;  %1710 = vmatprep.subr.mxu1 %v1613_v2  ;;  %v1612_v3 = vld [vmem:[%s2547_s4 + $0x50] sm:$0xff]  ;;  %v581_v4 = vld [vmem:[%s2547_s4 + $0x18] sm:$0xff]  ;;  %v1611_v5 = vld [vmem:[%s2547_s4 + $0x48] sm:$0xff]  ;;  %s2038_s30 = sshll.u32 %s2589_s27, 3 }
  0x1d   : > { %1696 = vmatpush3.msra.mxu0 %v583_v0  ;;  %1711 = vmatpush3.msra.mxu1 %v1613_v2  ;;  %v580_v6 = vld [vmem:[%s2547_s4 + $0x10] sm:$0xff]  ;;  %v1610_v7 = vld [vmem:[%s2547_s4 + $0x40] sm:$0xff]  ;;  %v579_v8 = vld [vmem:[%s2547_s4 + $0x8] sm:$0xff]  ;;  %s552_s20 = scalar_lea.vmem %s2575_s0, %s2038_s30  ;;  %s570_s29 = scalar_lea.vmem %s2546_s3, %s2038_s30 }
  0x1e   : > { %1697 = vmatprep.subr.mxu0 %v582_v1  ;;  %1712 = vmatprep.subr.mxu1 %v1612_v3  ;;  %v1609_v9 = vld [vmem:[%s2547_s4 + $0x38] sm:$0xff]  ;;  %v574_v10 = vld [vmem:[%s552_s20] sm:$0xff]  ;;  %s564_s18 = scalar_lea.vmem %s2576_s2, %s2038_s30  ;;  %v1608_v12 = vld [vmem:[%s2547_s4 + $0x30] sm:$0xff] }
  0x1f   : > { %1698 = vmatpush3.msra.mxu0 %v582_v1  ;;  %1713 = vmatpush3.msra.mxu1 %v1612_v3  ;;  %v578_v11 = vld [vmem:[%s2547_s4] sm:$0xff]  ;;  %v575_v13 = vld [vmem:[%s552_s20 + $0x8] sm:$0xff]  ;;  %s558_s27 = scalar_lea.vmem %s2577_s1, %s2038_s30  ;;  %v731_v58 = vld [vmem:[%s2551_s8 + $0x58] sm:$0xff]  ;;  %s1881_s30 = smov [#allocation2]  }
  0x20   : > { %1699 = vmatprep.subr.mxu0 %v581_v4  ;;  %1714 = vmatprep.subr.mxu1 %v1611_v5  ;;  %v992_v14 = vld [vmem:[%s564_s18] sm:$0xff]  ;;  %v993_v15 = vld [vmem:[%s564_s18 + $0x8] sm:$0xff]  ;;  %v730_v59 = vld [vmem:[%s2551_s8 + $0x50] sm:$0xff]  ;;  %s1586_s18 = sshll.u32 %s2431_s16, 4 }
  0x21   : > { %1700 = vmatpush3.msra.mxu0 %v581_v4  ;;  %1715 = vmatpush3.msra.mxu1 %v1611_v5  ;;  %v1596_v16 = vld [vmem:[%s2548_s5] ss:$0 sm:$0xff]  ;;  %v1615_v18 = vld [vmem:[%s2548_s5 + $0x1] ss:$0 sm:$0xff]  ;;  %v577_v19 = vld [vmem:[%s558_s27 + $0x8] sm:$0xff]  ;;  %s540_s20 = scalar_lea.vmem [#allocation2], %s1586_s18 }
  0x22   : > { %1701 = vmatprep.subr.mxu0 %v580_v6  ;;  %1716 = vmatprep.subr.mxu1 %v1610_v7  ;;  %v576_v23 = vld [vmem:[%s558_s27] sm:$0xff]  ;;  %v995_v24 = vld [vmem:[%s570_s29 + $0x8] sm:$0xff]  ;;  %v727_v62 = vld [vmem:[%s2551_s8 + $0x38] sm:$0xff]  ;;  %s2564_s27 = sshll.u32 %s1986_s22, 8  ;;  %s1436_s24 = sshll.u32 %s540_s20, 4  ;;  %s2455_s24 = int_to_ptr.vmem [resolvable:$true] %s1436_s24 }
  0x23   : > { %1702 = vmatpush3.msra.mxu0 %v580_v6  ;;  %1717 = vmatpush3.msra.mxu1 %v1610_v7  ;;  %v994_v29 = vld [vmem:[%s570_s29] sm:$0xff]  ;;  %v729_v60 = vld [vmem:[%s2551_s8 + $0x48] sm:$0xff]  ;;  %v1633_v63 = vld [vmem:[%s2551_s8 + $0xb8] sm:$0xff]  ;;  %s2453_s25 = scalar_lea.hbm %s2557_s14, %s2564_s27  ;;  %s2457_s26 = scalar_lea.vmem [#allocation4], %s1586_s18 }
  0x24   : > { %1703 = vmatprep.subr.mxu0 %v579_v8  ;;  %1718 = vmatprep.subr.mxu1 %v1609_v9  ;;  %v728_v61 = vld [vmem:[%s2551_s8 + $0x40] sm:$0xff]  ;;  %v726_v0 = vld [vmem:[%s2551_s8 + $0x30] sm:$0xff]  ;;  %v725_v2 = vld [vmem:[%s2551_s8 + $0x28] sm:$0xff]  ;;  %s1788_s23 = scalar_lea.vmem %s2455_s24, 256  ;;  %s1792_s27 = sshll.u32 %s1881_s30, 4  ;;  %s1793_s27 = int_to_ptr.vmem [resolvable:$false] %s1792_s27 }
  0x25   : > { %1704 = vmatpush3.msra.mxu0 %v579_v8  ;;  %1707 = vmatprep.mubr.msk.f32.mxu0 %vm591_vm0, %v574_v10  ;;  %v1632_v1 = vld [vmem:[%s2551_s8 + $0xb0] sm:$0xff]  ;;  %v1631_v3 = vld [vmem:[%s2551_s8 + $0xa8] sm:$0xff]  ;;  %v724_v4 = vld [vmem:[%s2551_s8 + $0x20] sm:$0xff]  ;;  %p1789_p11 = scmp.ne.s32.totalorder %s2455_s24, %s1788_s23  ;;  %s1794_s0 = scalar_lea.vmem %s1793_s27, 512 }
  0x26   : > { %1705 = vmatprep.subr.mxu0 %v578_v11  ;;  %1719 = vmatpush3.msra.mxu1 %v1609_v9  ;;  %v1630_v5 = vld [vmem:[%s2551_s8 + $0xa0] sm:$0xff]  ;;  %v723_v6 = vld [vmem:[%s2551_s8 + $0x18] sm:$0xff]  ;;  %v722_v8 = vld [vmem:[%s2551_s8 + $0x10] sm:$0xff]  ;;  %p1795_p0 = scmp.lt.s32.totalorder %s2455_s24, %s1793_s27  ;;  %p1796_p1 = scmp.lt.s32.totalorder %s1794_s0, %s1788_s23 }
  0x27   : > { %1706 = vmatpush3.msra.mxu0 %v578_v11  ;;  %1720 = vmatprep.subr.mxu1 %v1608_v12  ;;  %v1629_v7 = vld [vmem:[%s2551_s8 + $0x98] sm:$0xff]  ;;  %v1628_v9 = vld [vmem:[%s2551_s8 + $0x90] sm:$0xff]  ;;  %v721_v10 = vld [vmem:[%s2551_s8 + $0x8] sm:$0xff]  ;;  %p1790_p12 = pnand %p1789_p11, %p2003_p5 }
  0x28   : > { %1708 = vmatmul.mubr.msk.f32.vlgmr.msra.gmra.mxu0 %vm591_vm0, %v575_v13  ;;  %1721 = vmatpush3.msra.mxu1 %v1608_v12  ;;  %v1627_v11 = vld [vmem:[%s2551_s8 + $0x88] sm:$0xff]  ;;  %v720_v12 = vld [vmem:[%s2551_s8] sm:$0xff]  ;;  %p1797_p2 = por %p1796_p1, %p1795_p0 }
  0x29   : > { %1722 = vmatprep.mubr.msk.f32.mxu1 %vm591_vm0, %v992_v14  ;;  %770 = vmatprep.subr.mxu0 %v731_v58  ;;  %v1626_v13 = vld [vmem:[%s2551_s8 + $0x80] sm:$0xff]  ;;  %v1880_v14 = vmov 0.0   ;;  %v1650_v58 = vld [vmem:[%s2553_s10 + $0x128] sm:$0xff]  ;;  %p1791_p13 = pneg %p1790_p12 }
  0x2a   : > { %1723 = vmatmul.mubr.msk.f32.vlgmr.msra.gmra.mxu1 %vm591_vm0, %v993_v15  ;;  %771 = vmatpush1.msra.mxu0 %v730_v59  ;;  %v1625_v15 = vld [vmem:[%s2551_s8 + $0x78] sm:$0xff]  ;;  %v841_v59 = vld [vmem:[%s2553_s10 + $0x50] sm:$0xff] }
  0x2b   : > { %772 = vmatprep.subr.mxu0 %v729_v60  ;;  %1192 = vmatprep.subr.mxu1 %v1633_v63  ;;  %v1649_v60 = vld [vmem:[%s2553_s10 + $0x120] sm:$0xff]  ;;  %p1798_p3 = pnand %p1797_p2, %p1791_p13 }
  0x2c   : > { %773 = vmatpush1.msra.mxu0 %v728_v61  ;;  %1193 = vmatpush1.msra.mxu1 %v1632_v1  ;;  %v840_v61 = vld [vmem:[%s2553_s10 + $0x48] sm:$0xff]  ;;  %v839_v63 = vld [vmem:[%s2553_s10 + $0x40] sm:$0xff]  ;;  %v838_v1 = vld [vmem:[%s2553_s10 + $0x38] sm:$0xff] }
  0x2d   : > { %774 = vmatprep.subr.mxu0 %v727_v62  ;;  %1194 = vmatprep.subr.mxu1 %v1631_v3  ;;  %v1648_v62 = vld [vmem:[%s2553_s10 + $0x118] sm:$0xff]  ;;  %v837_v3 = vld [vmem:[%s2553_s10 + $0x30] sm:$0xff] }
  0x2e   : > { %775 = vmatpush1.msra.mxu0 %v726_v0  ;;  %1195 = vmatpush1.msra.mxu1 %v1630_v5  ;;  %v1647_v0 = vld [vmem:[%s2553_s10 + $0x110] sm:$0xff]  ;;  %v836_v5 = vld [vmem:[%s2553_s10 + $0x28] sm:$0xff] }
  0x2f   : > { %776 = vmatprep.subr.mxu0 %v725_v2  ;;  %1196 = vmatprep.subr.mxu1 %v1629_v7  ;;  %v1646_v2 = vld [vmem:[%s2553_s10 + $0x108] sm:$0xff]  ;;  %v835_v7 = vld [vmem:[%s2553_s10 + $0x20] sm:$0xff] }
  0x30   : > { %777 = vmatpush1.msra.mxu0 %v724_v4  ;;  %1197 = vmatpush1.msra.mxu1 %v1628_v9  ;;  %v1645_v4 = vld [vmem:[%s2553_s10 + $0x100] sm:$0xff]  ;;  %v834_v9 = vld [vmem:[%s2553_s10 + $0x18] sm:$0xff] }
  0x31   : > { %778 = vmatprep.subr.mxu0 %v723_v6  ;;  %1198 = vmatprep.subr.mxu1 %v1627_v11  ;;  %v1644_v6 = vld [vmem:[%s2553_s10 + $0xf8] sm:$0xff]  ;;  %v833_v11 = vld [vmem:[%s2553_s10 + $0x10] sm:$0xff] }
  0x32   : > { %779 = vmatpush1.msra.mxu0 %v722_v8  ;;  %814 = vmatprep.mubr.f32.mxu0 %v1880_v14  ;;  %v1643_v8 = vld [vmem:[%s2553_s10 + $0xf0] sm:$0xff] }
  0x33   : > { %780 = vmatprep.subr.mxu0 %v721_v10  ;;  %1199 = vmatpush1.msra.mxu1 %v1626_v13  ;;  %v1642_v10 = vld [vmem:[%s2553_s10 + $0xe8] sm:$0xff] }
  0x34   : > { %781 = vmatpush1.msra.mxu0 %v720_v12  ;;  %1236 = vmatprep.mubr.f32.mxu1 %v1880_v14  ;;  %v1641_v12 = vld [vmem:[%s2553_s10 + $0xe0] sm:$0xff]  ;;  %v832_v13 = vld [vmem:[%s2553_s10 + $0x8] sm:$0xff] }
  0x35   : > { %1200 = vmatprep.subr.mxu1 %v1625_v15  ;;  %869 = vmatprep.subr.mxu0 %v1880_v14  ;;  %v1640_v15 = vld [vmem:[%s2553_s10 + $0xd8] sm:$0xff] }
  0xe8   : > { %v1709_v17 = vpop.f32.mrf.mxu0 }
  0xe9   : > { %v670_v20 = vadd.f32 %v1709_v17, %v1596_v16  ;;  %v1623_v17 = vld [vmem:[%s2551_s8 + $0x68] sm:$0xff] }
  0xea   : > { %v664_v21 = vpop.f32.mrf.mxu0  ;;  %v1724_v22 = vpop.f32.mrf.mxu1 }
  0xeb   : > { %v665_v25 = vadd.f32 %v1596_v16, %v664_v21  ;;  %v1089_v26 = vadd.f32 %v1724_v22, %v1615_v18  ;;  %v674_v27 = vadd.f32 %v670_v20, %v577_v19  ;;  %v1624_v16 = vld [vmem:[%s2551_s8 + $0x70] sm:$0xff] }
  0xec   : > { %v1083_v28 = vpop.f32.mrf.mxu1  ;;  %1201 = vmatpush1.msra.mxu1 %v1624_v16  ;;  %v831_v16 = vld [vmem:[%s2553_s10] sm:$0xff] }
  0xed   : > { %v1084_v30 = vadd.f32 %v1615_v18, %v1083_v28  ;;  %v680_v31 = vsel %vm591_vm0, %v674_v27, 0.0  ;;  %v673_v32 = vadd.f32 %v665_v25, %v576_v23  ;;  %v1093_v33 = vadd.f32 %v1089_v26, %v995_v24  ;;  %v1622_v18 = vld [vmem:[%s2551_s8 + $0x60] sm:$0xff]  ;;  %1202 = vmatprep.subr.mxu1 %v1623_v17  ;;  %v1639_v17 = vld [vmem:[%s2553_s10 + $0xd0] sm:$0xff] }
  0xee   : > { %681 = vadd.xlane.f32.xlu1 %v680_v31  ;;  %1203 = vmatpush1.msra.mxu1 %v1622_v18  ;;  %v854_v18 = vld [vmem:[%s2553_s10 + $0xb8] sm:$0xff] }
  0xef   : > { %v677_v34 = vsel %vm591_vm0, %v673_v32, 0.0  ;;  %v1101_v35 = vsel %vm591_vm0, %v1093_v33, 0.0  ;;  %v1092_v36 = vadd.f32 %v1084_v30, %v994_v29  ;;  %1292 = vmatprep.subr.mxu1 %v1880_v14 }
  0xf0   : > { %678 = vadd.xlane.f32.xlu0 %v677_v34  ;;  %v1600_v34 = vld [vmem:[%s2550_s7] ss:$0 sm:$0xff] }
  0xf1   : > { %v1098_v37 = vsel %vm591_vm0, %v1092_v36, 0.0 }
  0xf2   : > { %1102 = vadd.xlane.f32.xlu1 %v1101_v35 }
  0xf4   : > { %1099 = vadd.xlane.f32.xlu0 %v1098_v37  ;;  %v1620_v37 = vld [vmem:[%s2549_s6 + $0x1] ss:$0 sm:$0xff] }
 0x177   : > { %v682_v38 = vpop.xlane.xlu1 %681 }
 0x178   : > { %v685_v39 = vmul.f32 0.020833334, %v682_v38 }
 0x179   : > { %v679_v40 = vpop.xlane.xlu0 %678 }
 0x17a   : > { %v684_v41 = vmul.f32 0.020833334, %v679_v40  ;;  %v2082_v43 = vsub.f32 %v674_v27, %v685_v39 }
 0x17b   : > { %v1103_v42 = vpop.xlane.xlu1 %1102 }
 0x17c   : > { %v2084_v44 = vsub.f32 %v673_v32, %v684_v41  ;;  %v1105_v45 = vmul.f32 0.020833334, %v1103_v42  ;;  %v689_v52 = vmul.f32 %v2082_v43, %v2082_v43  ;;  %v1599_v32 = vld [vmem:[%s2549_s6] ss:$0 sm:$0xff]  ;;  %v846_v41 = vld [vmem:[%s2553_s10 + $0x78] sm:$0xff] }
 0x17d   : > { %v1100_v46 = vpop.xlane.xlu0 %1099 }
 0x17e   : > { %v1104_v47 = vmul.f32 0.020833334, %v1100_v46  ;;  %v688_v48 = vmul.f32 %v2084_v44, %v2084_v44  ;;  %v2088_v49 = vsub.f32 %v1093_v33, %v1105_v45  ;;  %v693_v54 = vsel %vm591_vm0, %v689_v52, 0.0  ;;  %v845_v46 = vld [vmem:[%s2553_s10 + $0x70] sm:$0xff]  ;;  %v844_v52 = vld [vmem:[%s2553_s10 + $0x68] sm:$0xff] }
 0x180   : > { %v2090_v50 = vsub.f32 %v1092_v36, %v1104_v47  ;;  %v690_v51 = vsel %vm591_vm0, %v688_v48, 0.0  ;;  %v1109_v56 = vmul.f32 %v2088_v49, %v2088_v49 }
 0x181   : > { %691 = vadd.xlane.f32.xlu0 %v690_v51 }
 0x182   : > { %v1108_v53 = vmul.f32 %v2090_v50, %v2090_v50  ;;  %v1113_v57 = vsel %vm591_vm0, %v1109_v56, 0.0  ;;  %v1651_v56 = vld [vmem:[%s2553_s10 + $0x130] sm:$0xff] }
 0x184   : > { %v1110_v55 = vsel %vm591_vm0, %v1108_v53, 0.0  ;;  %v1652_v53 = vld [vmem:[%s2553_s10 + $0x138] sm:$0xff] }
 0x185   : > { %694 = vadd.xlane.f32.xlu0 %v693_v54  ;;  %1111 = vadd.xlane.f32.xlu1 %v1110_v55 }
 0x189   : > { %1114 = vadd.xlane.f32.xlu1 %v1113_v57  ;;  %v842_v57 = vld [vmem:[%s2553_s10 + $0x58] sm:$0xff] }
 0x20a   : > { %v692_v19 = vpop.xlane.xlu0 %691 }
 0x20b   : > { %v696_v20 = vmul.f32 0.020833334, %v692_v19  ;;  %v1638_v19 = vld [vmem:[%s2553_s10 + $0xc8] sm:$0xff] }
 0x20d   : > { %v698_v21 = vadd.f32 1e-12, %v696_v20  ;;  %v853_v20 = vld [vmem:[%s2553_s10 + $0xb0] sm:$0xff] }
 0x20e   : > { %v1112_v22 = vpop.xlane.xlu1 %1111  ;;  %v695_v23 = vpop.xlane.xlu0 %694 }
 0x20f   : > { %1772 = vrsqrt.f32 %v698_v21  ;;  %v1116_v24 = vmul.f32 0.020833334, %v1112_v22  ;;  %v697_v25 = vmul.f32 0.020833334, %v695_v23  ;;  %v1637_v21 = vld [vmem:[%s2553_s10 + $0xc0] sm:$0xff]  ;;  %v852_v22 = vld [vmem:[%s2553_s10 + $0xa8] sm:$0xff] }
 0x210   : > { %v1660_v23 = vld [vmem:[%s2553_s10 + $0x178] sm:$0xff] }
 0x211   : > { %v1118_v26 = vadd.f32 1e-12, %v1116_v24  ;;  %v699_v27 = vadd.f32 1e-12, %v697_v25  ;;  %v851_v24 = vld [vmem:[%s2553_s10 + $0xa0] sm:$0xff]  ;;  %v1659_v25 = vld [vmem:[%s2553_s10 + $0x170] sm:$0xff] }
 0x212   : > { %v1115_v28 = vpop.xlane.xlu1 %1114 }
 0x213   : > { %1774 = vrsqrt.f32 %v1118_v26  ;;  %v1117_v29 = vmul.f32 0.020833334, %v1115_v28  ;;  %v850_v26 = vld [vmem:[%s2553_s10 + $0x98] sm:$0xff]  ;;  %v849_v28 = vld [vmem:[%s2553_s10 + $0x90] sm:$0xff] }
 0x214   : > { %1776 = vrsqrt.f32 %v699_v27  ;;  %v1658_v27 = vld [vmem:[%s2553_s10 + $0x168] sm:$0xff] }
 0x215   : > { %v1119_v30 = vadd.f32 1e-12, %v1117_v29  ;;  %v1657_v29 = vld [vmem:[%s2553_s10 + $0x160] sm:$0xff] }
 0x217   : > { %1778 = vrsqrt.f32 %v1119_v30  ;;  %v848_v30 = vld [vmem:[%s2553_s10 + $0x88] sm:$0xff] }
 0x21c   : > { %v1773_v31 = vpop.eup %1772 }
 0x21d   : > { %v702_v33 = vmul.f32 %v1773_v31, %v2084_v44  ;;  %v1621_v44 = vld [vmem:[%s2550_s7 + $0x1] ss:$0 sm:$0xff]  ;;  %v1656_v31 = vld [vmem:[%s2553_s10 + $0x158] sm:$0xff] }
 0x21f   : > { %v710_v35 = vmul.f32 %v1599_v32, %v702_v33  ;;  %v1655_v33 = vld [vmem:[%s2553_s10 + $0x150] sm:$0xff] }
 0x220   : > { %v1775_v36 = vpop.eup %1774 }
 0x221   : > { %v1777_v38 = vpop.eup %1776  ;;  %v1122_v39 = vmul.f32 %v1775_v36, %v2090_v50  ;;  %v2189_v40 = vadd.f32 %v1600_v34, %v710_v35  ;;  %v1653_v35 = vld [vmem:[%s2553_s10 + $0x140] sm:$0xff]  ;;  %v734_v36 = vlaneseq }
 0x222   : > { %v703_v42 = vmul.f32 %v1777_v38, %v2082_v43 }
 0x223   : > { %1601 = vmatmul.mubr.msk.f32.vlgmr.msra.gmra.mxu0 %vm591_vm0, %v2189_v40  ;;  %v1130_v45 = vmul.f32 %v1620_v37, %v1122_v39  ;;  %v732_v39 = vld [vmem:[%s2552_s9] sm:$0x3] }
 0x224   : > { %v1779_v47 = vpop.eup %1778  ;;  %820 = vmatprep.mubr.f32.mxu0 %v1880_v14  ;;  %v711_v48 = vmul.f32 %v1599_v32, %v703_v42  ;;  %870 = vmatpush1.msra.mxu0 %v846_v41  ;;  %v847_v32 = vld [vmem:[%s2553_s10 + $0x80] sm:$0xff] }
 0x225   : > { %v2204_v50 = vadd.f32 %v1621_v44, %v1130_v45  ;;  %v1123_v43 = vmul.f32 %v1779_v47, %v2088_v49  ;;  %871 = vmatprep.subr.mxu0 %v1880_v14  ;;  %v843_v49 = vld [vmem:[%s2553_s10 + $0x60] sm:$0xff] }
 0x226   : > { %v2208_v51 = vadd.f32 %v1600_v34, %v711_v48  ;;  %872 = vmatpush1.msra.mxu0 %v845_v46  ;;  %v1654_v34 = vld [vmem:[%s2553_s10 + $0x148] sm:$0xff]  ;;  %v1634_v45 = vld [vmem:[%s2552_s9 + $0x2] sm:$0x3] }
 0x227   : > { %1635 = vmatmul.mubr.msk.f32.vlgmr.msra.gmra.mxu1 %vm591_vm0, %v2204_v50  ;;  %v1131_v54 = vmul.f32 %v1620_v37, %v1123_v43  ;;  %873 = vmatprep.subr.mxu0 %v1880_v14  ;;  %v735_v37 = vshrl.u32 %v734_v36, 7 }
 0x228   : > { %1602 = vmatmul.mubr.msk.f32.gmra.mxu0 %vm591_vm0, %v2208_v51  ;;  %1242 = vmatprep.mubr.f32.mxu1 %v1880_v14 }
 0x229   : > { %v2225_v55 = vadd.f32 %v1621_v44, %v1131_v54  ;;  %874 = vmatpush1.msra.mxu0 %v844_v52  ;;  %1293 = vmatpush1.msra.mxu1 %v1652_v53  ;;  %v736_v38 = vsub.s32 0, %v735_v37  ;;  %v740_v41 = vsub.s32 1, %v735_v37 }
 0x22a   : > { %875 = vmatprep.subr.mxu0 %v1880_v14  ;;  %1294 = vmatprep.subr.mxu1 %v1880_v14 }
 0x22b   : > { %1636 = vmatmul.mubr.msk.f32.gmra.mxu1 %vm591_vm0, %v2225_v55  ;;  %876 = vmatpush1.msra.mxu0 %v843_v49  ;;  %v737_v42 = vrot.slane %v732_v39, %v736_v38  ;;  %v741_v44 = vrot.slane %v732_v39, %v740_v41  ;;  %v1159_v48 = vrot.slane %v1634_v45, %v736_v38 }
 0x22c   : > { %1295 = vmatpush1.msra.mxu1 %v1651_v56  ;;  %877 = vmatprep.subr.mxu0 %v1880_v14  ;;  %v1163_v52 = vrot.slane %v1634_v45, %v740_v41 }
 0x22d   : > { %1296 = vmatprep.subr.mxu1 %v1880_v14  ;;  %878 = vmatpush1.msra.mxu0 %v842_v57 }
 0x22e   : > { %1297 = vmatpush1.msra.mxu1 %v1650_v58  ;;  %879 = vmatprep.subr.mxu0 %v1880_v14 }
 0x22f   : > { %1298 = vmatprep.subr.mxu1 %v1880_v14  ;;  %880 = vmatpush1.msra.mxu0 %v841_v59 }
 0x230   : > { %1299 = vmatpush1.msra.mxu1 %v1649_v60  ;;  %881 = vmatprep.subr.mxu0 %v1880_v14 }
 0x231   : > { %1300 = vmatprep.subr.mxu1 %v1880_v14  ;;  %882 = vmatpush1.msra.mxu0 %v840_v61 }
 0x232   : > { %1301 = vmatpush1.msra.mxu1 %v1648_v62  ;;  %883 = vmatprep.subr.mxu0 %v1880_v14 }
 0x233   : > { %1302 = vmatprep.subr.mxu1 %v1880_v14  ;;  %884 = vmatpush1.msra.mxu0 %v839_v63 }
 0x234   : > { %1303 = vmatpush1.msra.mxu1 %v1647_v0  ;;  %885 = vmatprep.subr.mxu0 %v1880_v14 }
 0x235   : > { %1304 = vmatprep.subr.mxu1 %v1880_v14  ;;  %886 = vmatpush1.msra.mxu0 %v838_v1 }
 0x236   : > { %1305 = vmatpush1.msra.mxu1 %v1646_v2  ;;  %887 = vmatprep.subr.mxu0 %v1880_v14 }
 0x237   : > { %1306 = vmatprep.subr.mxu1 %v1880_v14  ;;  %888 = vmatpush1.msra.mxu0 %v837_v3 }
 0x238   : > { %1307 = vmatpush1.msra.mxu1 %v1645_v4  ;;  %889 = vmatprep.subr.mxu0 %v1880_v14 }
 0x239   : > { %1308 = vmatprep.subr.mxu1 %v1880_v14  ;;  %890 = vmatpush1.msra.mxu0 %v836_v5 }
 0x23a   : > { %1309 = vmatpush1.msra.mxu1 %v1644_v6  ;;  %891 = vmatprep.subr.mxu0 %v1880_v14 }
 0x23b   : > { %1310 = vmatprep.subr.mxu1 %v1880_v14  ;;  %892 = vmatpush1.msra.mxu0 %v835_v7 }
 0x23c   : > { %1311 = vmatpush1.msra.mxu1 %v1643_v8  ;;  %893 = vmatprep.subr.mxu0 %v1880_v14 }
 0x23d   : > { %1312 = vmatprep.subr.mxu1 %v1880_v14  ;;  %894 = vmatpush1.msra.mxu0 %v834_v9  ;;  %v1603_v9 = vld [vmem:[%s2554_s11] ss:$0 sm:$0xff] }
 0x23e   : > { %1313 = vmatpush1.msra.mxu1 %v1642_v10  ;;  %895 = vmatprep.subr.mxu0 %v1880_v14 }
 0x23f   : > { %1314 = vmatprep.subr.mxu1 %v1880_v14  ;;  %896 = vmatpush1.msra.mxu0 %v833_v11 }
 0x240   : > { %1315 = vmatpush1.msra.mxu1 %v1641_v12  ;;  %897 = vmatprep.subr.mxu0 %v1880_v14 }
 0x241   : > { %1316 = vmatprep.subr.mxu1 %v1880_v14  ;;  %898 = vmatpush1.msra.mxu0 %v832_v13  ;;  %v1662_v13 = vld [vmem:[%s2554_s11 + $0x1] ss:$0 sm:$0xff] }
 0x242   : > { %1317 = vmatpush1.msra.mxu1 %v1640_v15  ;;  %899 = vmatprep.subr.mxu0 %v1880_v14 }
 0x243   : > { %1318 = vmatprep.subr.mxu1 %v1880_v14  ;;  %900 = vmatpush1.msra.mxu0 %v831_v16 }
 0x244   : > { %1319 = vmatpush1.msra.mxu1 %v1639_v17  ;;  %917 = vmatprep.subr.mxu0 %v1880_v14 }
 0x245   : > { %1320 = vmatprep.subr.mxu1 %v1880_v14  ;;  %918 = vmatpush2.msra.mxu0 %v854_v18 }
 0x246   : > { %1321 = vmatpush1.msra.mxu1 %v1638_v19  ;;  %919 = vmatprep.subr.mxu0 %v1880_v14 }
 0x247   : > { %1322 = vmatprep.subr.mxu1 %v1880_v14  ;;  %920 = vmatpush2.msra.mxu0 %v853_v20 }
 0x248   : > { %1323 = vmatpush1.msra.mxu1 %v1637_v21  ;;  %921 = vmatprep.subr.mxu0 %v1880_v14 }
 0x249   : > { %1340 = vmatprep.subr.mxu1 %v1880_v14  ;;  %922 = vmatpush2.msra.mxu0 %v852_v22 }
 0x24a   : > { %1341 = vmatpush2.msra.mxu1 %v1660_v23  ;;  %923 = vmatprep.subr.mxu0 %v1880_v14 }
 0x24b   : > { %1342 = vmatprep.subr.mxu1 %v1880_v14  ;;  %924 = vmatpush2.msra.mxu0 %v851_v24 }
 0x24c   : > { %1343 = vmatpush2.msra.mxu1 %v1659_v25  ;;  %925 = vmatprep.subr.mxu0 %v1880_v14 }
 0x24d   : > { %1344 = vmatprep.subr.mxu1 %v1880_v14  ;;  %926 = vmatpush2.msra.mxu0 %v850_v26 }
 0x24e   : > { %1345 = vmatpush2.msra.mxu1 %v1658_v27  ;;  %927 = vmatprep.subr.mxu0 %v1880_v14 }
 0x24f   : > { %1346 = vmatprep.subr.mxu1 %v1880_v14  ;;  %928 = vmatpush2.msra.mxu0 %v849_v28 }
 0x250   : > { %1347 = vmatpush2.msra.mxu1 %v1657_v29  ;;  %929 = vmatprep.subr.mxu0 %v1880_v14 }
 0x251   : > { %1348 = vmatprep.subr.mxu1 %v1880_v14  ;;  %930 = vmatpush2.msra.mxu0 %v848_v30 }
 0x252   : > { %1349 = vmatpush2.msra.mxu1 %v1656_v31  ;;  %931 = vmatprep.subr.mxu0 %v1880_v14 }
 0x253   : > { %1350 = vmatprep.subr.mxu1 %v1880_v14  ;;  %932 = vmatpush2.msra.mxu0 %v847_v32 }
 0x254   : > { %1351 = vmatpush2.msra.mxu1 %v1655_v33 }
 0x255   : > { %1352 = vmatprep.subr.mxu1 %v1880_v14 }
 0x256   : > { %1353 = vmatpush2.msra.mxu1 %v1654_v34 }
 0x257   : > { %1354 = vmatprep.subr.mxu1 %v1880_v14 }
 0x258   : > { %1355 = vmatpush2.msra.mxu1 %v1653_v35 }
 0x2e3   : > { %v816_v14 = vpop.f32.mrf.mxu0 }
 0x2e4   : > { %v817_v46 = vadd.f32 %v816_v14, %v737_v42 }
 0x2e5   : > { %v818_v47 = vpop.f32.mrf.mxu0 }
 0x2e6   : > { %v819_v43 = vadd.f32 %v818_v47, %v741_v44  ;;  %v827_v56 = vmax.f32 %v817_v46, 0.0 }
 0x2e7   : > { %v1238_v53 = vpop.f32.mrf.mxu1 }
 0x2e8   : > { %v828_v54 = vmax.f32 %v819_v43, 0.0  ;;  %v822_v49 = vpop.f32.mrf.mxu0  ;;  %v1239_v57 = vadd.f32 %v1238_v53, %v1159_v48 }
 0x2e9   : > { %v1240_v58 = vpop.f32.mrf.mxu1  ;;  %v823_v59 = vadd.f32 %v822_v49, %v737_v42 }
 0x2ea   : > { %v824_v60 = vpop.f32.mrf.mxu0  ;;  %v1241_v61 = vadd.f32 %v1240_v58, %v1163_v52  ;;  %1604 = vmatprep.mubr.msk.f32.mxu0 %vm862_vm1, %v828_v54  ;;  %v1249_v1 = vmax.f32 %v1239_v57, 0.0 }
 0x2eb   : > { %v825_v62 = vadd.f32 %v824_v60, %v741_v44  ;;  %934 = vmatmul.mubr.f32.vlgmr.msra.gmra.mxu0 %v827_v56  ;;  %v1244_v63 = vpop.f32.mrf.mxu1  ;;  %v829_v5 = vmax.f32 %v823_v59, 0.0 }
 0x2ec   : > { %v1250_v0 = vmax.f32 %v1241_v61, 0.0  ;;  %v1245_v3 = vadd.f32 %v1244_v63, %v1159_v48 }
 0x2ed   : > { %v830_v2 = vmax.f32 %v825_v62, 0.0  ;;  %v1246_v4 = vpop.f32.mrf.mxu1 }
 0x2ee   : > { %v1247_v6 = vadd.f32 %v1246_v4, %v1163_v52  ;;  %1663 = vmatprep.mubr.msk.f32.mxu1 %vm862_vm1, %v1250_v0  ;;  %v1251_v8 = vmax.f32 %v1245_v3, 0.0  ;;  %v1606_v0 = vld [vmem:[%s2555_s12] ss:$0 sm:$0xff] }
 0x2ef   : > { %1605 = vmatprep.mubr.msk.f32.mxu0 %vm862_vm1, %v830_v2  ;;  %1357 = vmatmul.mubr.f32.vlgmr.msra.gmra.mxu1 %v1249_v1  ;;  %v1607_v2 = vld [vmem:[%s2556_s13] ss:$0 sm:$0xff] }
 0x2f0   : > { %v1252_v7 = vmax.f32 %v1247_v6, 0.0  ;;  %939 = vmatmul.mubr.f32.gmra.mxu0 %v829_v5  ;;  %v1667_v5 = vld [vmem:[%s2555_s12 + $0x1] ss:$0 sm:$0xff] }
 0x2f2   : > { %1664 = vmatprep.mubr.msk.f32.mxu1 %vm862_vm1, %v1252_v7 }
 0x2f3   : > { %1362 = vmatmul.mubr.f32.gmra.mxu1 %v1251_v8 }
 0x3ab   : > { %v935_v10 = vpop.f32.mrf.mxu0 }
 0x3ac   : > { %v936_v11 = vadd.f32 %v1603_v9, %v935_v10  ;;  %v1668_v10 = vld [vmem:[%s2556_s13 + $0x1] ss:$0 sm:$0xff] }
 0x3ad   : > { %v937_v12 = vpop.f32.mrf.mxu0 }
 0x3ae   : > { %v944_v15 = vadd.f32 %v936_v11, %v2189_v40 }
 0x3af   : > { %v1358_v16 = vpop.f32.mrf.mxu1 }
 0x3b0   : > { %v940_v17 = vpop.f32.mrf.mxu0  ;;  %v1359_v18 = vadd.f32 %v1662_v13, %v1358_v16  ;;  %v948_v19 = vsel %vm591_vm0, %v944_v15, 0.0 }
 0x3b1   : > { %v941_v20 = vadd.f32 %v1603_v9, %v940_v17  ;;  %v1360_v21 = vpop.f32.mrf.mxu1  ;;  %949 = vadd.xlane.f32.xlu0 %v948_v19 }
 0x3b2   : > { %v942_v22 = vpop.f32.mrf.mxu0  ;;  %v1367_v23 = vadd.f32 %v1359_v18, %v2204_v50 }
 0x3b3   : > { %v1363_v24 = vpop.f32.mrf.mxu1  ;;  %v945_v25 = vadd.f32 %v941_v20, %v2208_v51 }
 0x3b4   : > { %v1364_v26 = vadd.f32 %v1662_v13, %v1363_v24  ;;  %v1373_v27 = vsel %vm591_vm0, %v1367_v23, 0.0 }
 0x3b5   : > { %v1365_v28 = vpop.f32.mrf.mxu1  ;;  %1374 = vadd.xlane.f32.xlu0 %v1373_v27  ;;  %v951_v40 = vsel %vm591_vm0, %v945_v25, 0.0 }
 0x3b6   : > { %952 = vadd.xlane.f32.xlu1 %v951_v40  ;;  %v1368_v29 = vadd.f32 %v1364_v26, %v2225_v55 }
 0x3b8   : > { %v1376_v30 = vsel %vm591_vm0, %v1368_v29, 0.0 }
 0x3ba   : > { %1377 = vadd.xlane.f32.xlu1 %v1376_v30 }
 0x43a   : > { %v950_v31 = vpop.xlane.xlu0 %949 }
 0x43b   : > { %v954_v32 = vmul.f32 0.020833334, %v950_v31 }
 0x43d   : > { %v956_v33 = vsub.f32 %v944_v15, %v954_v32 }
 0x43e   : > { %v1375_v50 = vpop.xlane.xlu0 %1374 }
 0x43f   : > { %v1379_v34 = vmul.f32 0.020833334, %v1375_v50  ;;  %v953_v35 = vpop.xlane.xlu1 %952  ;;  %v958_v51 = vmul.f32 %v956_v33, %v956_v33 }
 0x440   : > { %v955_v36 = vmul.f32 0.020833334, %v953_v35 }
 0x441   : > { %v1381_v37 = vsub.f32 %v1367_v23, %v1379_v34  ;;  %v960_v38 = vsel %vm591_vm0, %v958_v51, 0.0 }
 0x442   : > { %v957_v39 = vsub.f32 %v945_v25, %v955_v36  ;;  %961 = vadd.xlane.f32.xlu0 %v960_v38 }
 0x443   : > { %v1378_v41 = vpop.xlane.xlu1 %1377  ;;  %v1383_v42 = vmul.f32 %v1381_v37, %v1381_v37 }
 0x444   : > { %v1380_v44 = vmul.f32 0.020833334, %v1378_v41  ;;  %v959_v55 = vmul.f32 %v957_v39, %v957_v39 }
 0x445   : > { %v1385_v45 = vsel %vm591_vm0, %v1383_v42, 0.0 }
 0x446   : > { %v1382_v14 = vsub.f32 %v1368_v29, %v1380_v44  ;;  %1386 = vadd.xlane.f32.xlu0 %v1385_v45  ;;  %v963_v46 = vsel %vm591_vm0, %v959_v55, 0.0 }
 0x447   : > { %964 = vadd.xlane.f32.xlu1 %v963_v46 }
 0x448   : > { %v1384_v47 = vmul.f32 %v1382_v14, %v1382_v14 }
 0x44a   : > { %v1388_v48 = vsel %vm591_vm0, %v1384_v47, 0.0 }
 0x44b   : > { %1389 = vadd.xlane.f32.xlu1 %v1388_v48 }
 0x4cb   : > { %v962_v43 = vpop.xlane.xlu0 %961 }
 0x4cc   : > { %v966_v52 = vmul.f32 0.020833334, %v962_v43 }
 0x4ce   : > { %v968_v53 = vadd.f32 1e-12, %v966_v52 }
 0x4cf   : > { %v1387_v54 = vpop.xlane.xlu0 %1386 }
 0x4d0   : > { %1780 = vrsqrt.f32 %v968_v53  ;;  %v1391_v49 = vmul.f32 0.020833334, %v1387_v54  ;;  %v965_v56 = vpop.xlane.xlu1 %964 }
 0x4d1   : > { %v967_v57 = vmul.f32 0.020833334, %v965_v56 }
 0x4d2   : > { %v1393_v58 = vadd.f32 1e-12, %v1391_v49 }
 0x4d3   : > { %v969_v59 = vadd.f32 1e-12, %v967_v57 }
 0x4d4   : > { %1782 = vrsqrt.f32 %v1393_v58  ;;  %v1390_v60 = vpop.xlane.xlu1 %1389 }
 0x4d5   : > { %1784 = vrsqrt.f32 %v969_v59  ;;  %v1392_v61 = vmul.f32 0.020833334, %v1390_v60 }
 0x4d7   : > { %v1394_v62 = vadd.f32 1e-12, %v1392_v61 }
 0x4d9   : > { %1786 = vrsqrt.f32 %v1394_v62 }
 0x4dd   : > { %v1781_v63 = vpop.eup %1780 }
 0x4de   : > { %v972_v1 = vmul.f32 %v1781_v63, %v956_v33 }
 0x4e0   : > { %v980_v3 = vmul.f32 %v1606_v0, %v972_v1 }
 0x4e1   : > { %v1783_v4 = vpop.eup %1782 }
 0x4e2   : > { %v1785_v6 = vpop.eup %1784  ;;  %v1397_v7 = vmul.f32 %v1783_v4, %v1381_v37  ;;  %v988_v8 = vadd.f32 %v1607_v2, %v980_v3 }
 0x4e3   : > { %v973_v9 = vmul.f32 %v1785_v6, %v957_v39 }
 0x4e4   : > { %v1405_v11 = vmul.f32 %v1667_v5, %v1397_v7  ;;  %990 = vst.msk [vmem:[%s540_s20] sm:$0xff] %vm591_vm0, %v988_v8 }
 0x4e5   : > { %v981_v12 = vmul.f32 %v1606_v0, %v973_v9 }
 0x4e6   : > { %v1787_v13 = vpop.eup %1786  ;;  %v1413_v15 = vadd.f32 %v1668_v10, %v1405_v11 }
 0x4e7   : > { %v1398_v16 = vmul.f32 %v1787_v13, %v1382_v14  ;;  %v989_v17 = vadd.f32 %v1607_v2, %v981_v12 }
 0x4e8   : > { %1415 = vst.msk [vmem:[%s2457_s26] sm:$0xff] %vm591_vm0, %v1413_v15 }
 0x4e9   : > { %v1406_v18 = vmul.f32 %v1667_v5, %v1398_v16  ;;  %991 = vst.msk [vmem:[%s540_s20 + $0x8] sm:$0xff] %vm591_vm0, %v989_v17 }
 0x4ea   : > { %1801 = shalt.err (!%p1798_p3)
}
 0x4eb   : > { %s1802_s18 = scalar_lea.hbm %s2453_s25, 256  ;;  %s1806_s30 = scalar_lea.hbm %s2557_s14, 512 }
 0x4ec   : > { %p1803_p4 = scmp.ne.s32.totalorder %s2453_s25, %s1802_s18  ;;  %p1807_p9 = scmp.lt.s32.totalorder %s2453_s25, %s2557_s14 }
 0x4ed   : > { %p1808_p10 = scmp.lt.s32.totalorder %s1806_s30, %s1802_s18 }
 0x4ee   : > { %p1804_p7 = pnand %p1803_p4, %p2003_p5 }
 0x4ef   : > { %p1809_p11 = por %p1808_p10, %p1807_p9 }
 0x4f0   : > { %p1805_p8 = pneg %p1804_p7 }
 0x4f2   : > { %p1810_p12 = pnand %p1809_p11, %p1805_p8 }
 0x4f4   : > { %1813 = shalt.err (!%p1810_p12)
}
 0x4f5   : > { %s1882_s0 = smov 128   ;;  %s1883_s27 = smov 8   ;;  %v1414_v19 = vadd.f32 %v1668_v10, %v1406_v18 }
 0x4f6   : > { %s2578_s1 = scalar_lea.sflag [#allocation3], %s2431_s16  ;;  %s2579_s17 = sshll.u32 %s1986_s22, 8 }
 0x4f7   : > { %1725 = dma.vmem_to_hbm [thread:$0]  (%p2003_p5), %s2455_s24, 256, %s2453_s25, %s2578_s1, %s1882_s0, %s1882_s0, %s1883_s27  }
 0x4f8   : > { %s2494_s18 = scalar_lea.hbm %s2558_s15, %s2579_s17  ;;  %s2580_s20 = sshll.u32 %s2457_s26, 4  ;;  %1416 = vst.msk [vmem:[%s2457_s26 + $0x8] sm:$0xff] %vm591_vm0, %v1414_v19  ;;  %s2498_s20 = int_to_ptr.vmem [resolvable:$true] %s2580_s20 }
 0x4f9   : > { %s1423_s30 = scalar_lea.sflag [#allocation5], %s2431_s16  ;;  %s1814_s2 = scalar_lea.vmem %s2498_s20, 256 }
 0x4fa   : > { %p1815_p13 = scmp.ne.s32.totalorder %s2498_s20, %s1814_s2  ;;  %s1884_s22 = smov [#allocation4]  }
 0x4fb   : > { %s1818_s24 = sshll.u32 %s1884_s22, 4  ;;  %s1819_s24 = int_to_ptr.vmem [resolvable:$false] %s1818_s24 }
 0x4fc   : > { %p1816_p0 = pnand %p1815_p13, %p2003_p5  ;;  %s1820_s25 = scalar_lea.vmem %s1819_s24, 512 }
 0x4fd   : > { %p1821_p2 = scmp.lt.s32.totalorder %s2498_s20, %s1819_s24  ;;  %p1822_p3 = scmp.lt.s32.totalorder %s1820_s25, %s1814_s2 }
 0x4fe   : > { %p1817_p1 = pneg %p1816_p0 }
 0x4ff   : > { %p1823_p4 = por %p1822_p3, %p1821_p2 }
 0x501   : > { %p1824_p7 = pnand %p1823_p4, %p1817_p1 }
 0x503   : > { %1827 = shalt.err (!%p1824_p7)
}
 0x504   : > { %s1828_s26 = scalar_lea.hbm %s2494_s18, 256  ;;  %s1832_s17 = scalar_lea.hbm %s2558_s15, 512 }
 0x505   : > { %p1829_p8 = scmp.ne.s32.totalorder %s2494_s18, %s1828_s26  ;;  %p1833_p11 = scmp.lt.s32.totalorder %s2494_s18, %s2558_s15 }
 0x506   : > { %p1834_p12 = scmp.lt.s32.totalorder %s1832_s17, %s1828_s26 }
 0x507   : > { %p1830_p9 = pnand %p1829_p8, %p2003_p5 }
 0x508   : > { %p1835_p13 = por %p1834_p12, %p1833_p11 }
 0x509   : > { %p1831_p10 = pneg %p1830_p9 }
 0x50b   : > { %p1836_p0 = pnand %p1835_p13, %p1831_p10 }
 0x50d   : > { %1839 = shalt.err (!%p1836_p0)
}
 0x50e   : > { %1726 = dma.vmem_to_hbm [thread:$0]  (%p2003_p5), %s2498_s20, 256, %s2494_s18, %s1423_s30, %s1882_s0, %s1882_s0, %s1883_s27  }
 0x50f PF: > { %s2581_s2 = sld [smem:[#allocation8_spill]]  ;;  %p1736_p1 = scmp.ge.s32.totalorder %s1878_s21, 2 }
 0x511   : > { %p1730_p2 = pnand %p1736_p1, %p2007_p6 }
 0x513   : > { %p1731_p3 = pneg %p1730_p2 }
 0x515   : > { %s1467_s24 = sand.u32 1, %s2581_s2  }
 0x516   : > { %s1468_s25 = scalar_lea.sflag [#allocation3], %s1467_s24 }
 0x517   : > { %1857 = dma.done.wait (%p1731_p3), %s1468_s25, 256  }
 0x518   : > { %1859 = vsyncadd (%p1731_p3), %s1468_s25, 4294967040  ;;  %s1477_s26 = scalar_lea.sflag [#allocation5], %s1467_s24 }
 0x519   : > { %1861 = dma.done.wait (%p1731_p3), %s1477_s26, 256  }
 0x51a   : > { %1863 = vsyncadd (%p1731_p3), %s1477_s26, 4294967040  ;;  %s2583_s21 = sld [smem:[#allocation10_spill]]  ;;  %s2586_s18 = smov %s1870_s19 }
 0x51b   : > { %s2584_s28 = sld [smem:[#allocation9_spill]] }
 0x51c   : > { %s2585_s20 = sld [smem:[#allocation11_spill]] }
 0x520   : > { %p29_p5 = scmp.ge.s32.totalorder %s2583_s21, 4  }
 0x521   : > { %s2587_s19 = smov %s2584_s28 }
 0x522   :  { %31 = sbr.rel (!%p29_p5) target bundleno = 9 (0x9), region = 147 }
 0x527   :  { %1482 = vsyncpa [#allocation3], 1 }
 0x528   :  { %1484 = vsyncpa [#allocation3 + $0x1], 1 }
 0x529   :  { %1485 = vsyncpa [#allocation5], 1 }
 0x52a   :  { %1487 = vsyncpa [#allocation5 + $0x1], 1 }

// kernel: i_s_block_forward.2
= control target key start
LH: loop header
LB: loop body
LE: loop exit
PB: predicated region body
PF: predicated region fallthrough
CT: control target
= control target key end

     0   :  { %s7963_s21 = smov 0   ;;  %s9208_s0 = inlined_call_operand.vmem [shape: f32[2,16,48], index: 0, kind: input, shape index: {}]   ;;  %s9209_s1 = inlined_call_operand.vmem [shape: f32[2,16,48], index: 1, kind: input, shape index: {}]   ;;  %s9210_s2 = inlined_call_operand.vmem [shape: f32[2,1,16], index: 2, kind: input, shape index: {}]   ;;  %s9211_s3 = inlined_call_operand.vmem [shape: f32[4,48,96], index: 3, kind: input, shape index: {}]   ;;  %s9212_s4 = inlined_call_operand.vmem [shape: f32[4,1,96], index: 4, kind: input, shape index: {}]   ;;  %s9213_s5 = inlined_call_operand.vmem [shape: f32[4,48,96], index: 5, kind: input, shape index: {}]   ;;  %s9214_s6 = inlined_call_operand.vmem [shape: f32[4,1,96], index: 6, kind: input, shape index: {}]   ;;  %s9215_s7 = inlined_call_operand.vmem [shape: f32[2,48,48], index: 7, kind: input, shape index: {}]   ;;  %s9216_s8 = inlined_call_operand.vmem [shape: f32[2,1,48], index: 8, kind: input, shape index: {}]   ;;  %s9217_s9 = inlined_call_operand.vmem [shape: f32[16,96], index: 9, kind: input, shape index: {}]   ;;  %s9218_s10 = inlined_call_operand.vmem [shape: f32[16,96], index: 10, kind: input, shape index: {}]   ;;  %s9219_s11 = inlined_call_operand.vmem [shape: f32[2,16,48], index: 11, kind: output, shape index: {0}]   ;;  %s9220_s12 = inlined_call_operand.vmem [shape: f32[2,16,48], index: 12, kind: output, shape index: {1}]  }
   0x1 LB: > { %s6631_s22 = sadd.s32 4294967295, %s7869_s21   ;;  %p6635_p0 = scmp.ge.s32.totalorder %s7869_s21, 1  ;;  %s7869_s21 = sphi %s7963_s21, %s23_s21  }
   0x2   : > { %p383_p1 = scmp.lt.s32.totalorder %s7869_s21, 3 }
   0x4   : > { %p384_p2 = pnand %p6635_p0, %p383_p1 }
   0x5   : > { %p438_p3 = scmp.lt.s32.totalorder (!%p384_p2), %s6631_s22, 1  ;;  %s7871_s28 = smov (!%p384_p2), 120  }
   0x6   : > { %387 = sbr.rel (%p384_p2) target bundleno = 13083 (0x331b), region = 64  ;;  %s7874_s13 = smov (!%p384_p2), 104  }
   0x7   : > { %s7875_s14 = smov (!%p384_p2), 116   ;;  %s7876_s15 = smov (!%p384_p2), 96  }
   0x8   : > { %s7877_s16 = smov (!%p384_p2), 88   ;;  %s7878_s17 = smov (!%p384_p2), 108  }
   0x9   : > { %s7879_s18 = smov (!%p384_p2), 80   ;;  %s7880_s19 = smov (!%p384_p2), 72  }
   0xa   : > { %s7881_s20 = smov (!%p384_p2), 100   ;;  %s9231_s24 = smov (!%p384_p2), 64  }
   0xb   : > { %v475_v0 = vld [vmem:[%s9211_s3 + $0x28] sm:$0xff]  ;;  %v474_v2 = vld [vmem:[%s9211_s3 + $0x20] sm:$0xff]  ;;  %v473_v4 = vld [vmem:[%s9211_s3 + $0x18] sm:$0xff]  ;;  %s9240_s22 = smov (!%p438_p3, %s6631_s22), 1  ;;  %vm483_vm0 = vcmask 392192   ;;  %vm1401_vm1 = vcmask 64512  }
   0xc   : > { %v570_v1 = vld [vmem:[%s9213_s5 + $0x28] sm:$0xff]  ;;  %7146 = vmatprep.subr.mxu0 %v475_v0  ;;  %v569_v3 = vld [vmem:[%s9213_s5 + $0x20] sm:$0xff]  ;;  %v568_v5 = vld [vmem:[%s9213_s5 + $0x18] sm:$0xff]  ;;  %s7998_s23 = sshll.u32 %s9240_s22, 4  ;;  %s8312_s29 = scalar_lea.vmem %s9210_s2, %s9240_s22  ;;  %vm1499_vm2 = vcmask 130048   ;;  %vm3937_vm3 = vcmask 31744  }
   0xd   : > { %7161 = vmatprep.subr.mxu1 %v570_v1  ;;  %7147 = vmatpush3.msra.mxu0 %v475_v0  ;;  %v472_v6 = vld [vmem:[%s9211_s3 + $0x10] sm:$0xff]  ;;  %v471_v8 = vld [vmem:[%s9211_s3 + $0x8] sm:$0xff]  ;;  %s442_s30 = scalar_lea.vmem %s9208_s0, %s7998_s23  ;;  %v470_v10 = vld [vmem:[%s9211_s3] sm:$0xff]  ;;  %s447_s27 = scalar_lea.vmem %s9209_s1, %s7998_s23  ;;  %vm3942_vm4 = vcmask 97280   ;;  %vm3947_vm5 = vcmask 162816   ;;  %vm3950_vm6 = vcmask 195584  }
   0xe   : > { %7162 = vmatpush3.msra.mxu1 %v570_v1  ;;  %7148 = vmatprep.subr.mxu0 %v474_v2  ;;  %v567_v7 = vld [vmem:[%s9213_s5 + $0x10] sm:$0xff]  ;;  %v566_v9 = vld [vmem:[%s9213_s5 + $0x8] sm:$0xff]  ;;  %v565_v11 = vld [vmem:[%s9213_s5] sm:$0xff]  ;;  %s7872_s22 = smov 124   ;;  %s9227_s25 = smov 56   ;;  %vm3953_vm7 = vcmask 228352  }
   0xf   : > { %7163 = vmatprep.subr.mxu1 %v569_v3  ;;  %7149 = vmatpush3.msra.mxu0 %v474_v2  ;;  %v8016_v12 = vld [vmem:[%s442_s30] sm:$0xff]  ;;  %v8018_v13 = vld [vmem:[%s442_s30 + $0x8] sm:$0xff]  ;;  %v6655_v14 = vld [vmem:[%s9211_s3 + $0x58] sm:$0xff]  ;;  %s7873_s30 = smov 112   ;;  %s9225_s26 = smov 92   ;;  %vm3956_vm8 = vcmask 261120  }
  0x10   : > { %7164 = vmatpush3.msra.mxu1 %v569_v3  ;;  %7150 = vmatprep.subr.mxu0 %v473_v4  ;;  %v6665_v15 = vld [vmem:[%s9213_s5 + $0x58] sm:$0xff]  ;;  %v6654_v16 = vld [vmem:[%s9211_s3 + $0x50] sm:$0xff]  ;;  %v6653_v18 = vld [vmem:[%s9211_s3 + $0x48] sm:$0xff]  ;;  %vm3959_vm9 = vcmask 293888   ;;  %vm3962_vm10 = vcmask 326656   ;;  %vm3965_vm11 = vcmask 359424  }
  0x11   : > { %7165 = vmatprep.subr.mxu1 %v568_v5  ;;  %7151 = vmatpush3.msra.mxu0 %v473_v4  ;;  %v6664_v17 = vld [vmem:[%s9213_s5 + $0x50] sm:$0xff]  ;;  %v6663_v19 = vld [vmem:[%s9213_s5 + $0x48] sm:$0xff]  ;;  %v6652_v20 = vld [vmem:[%s9211_s3 + $0x40] sm:$0xff] }
  0x12   : > { %7166 = vmatpush3.msra.mxu1 %v568_v5  ;;  %7152 = vmatprep.subr.mxu0 %v472_v6  ;;  %v6662_v21 = vld [vmem:[%s9213_s5 + $0x40] sm:$0xff]  ;;  %v6651_v22 = vld [vmem:[%s9211_s3 + $0x38] sm:$0xff]  ;;  %v6650_v24 = vld [vmem:[%s9211_s3 + $0x30] sm:$0xff] }
  0x13   : > { %7167 = vmatprep.subr.mxu1 %v567_v7  ;;  %7153 = vmatpush3.msra.mxu0 %v472_v6  ;;  %v6661_v23 = vld [vmem:[%s9213_s5 + $0x38] sm:$0xff]  ;;  %v6660_v25 = vld [vmem:[%s9213_s5 + $0x30] sm:$0xff]  ;;  %v8068_v26 = vld [vmem:[%s447_s27] sm:$0xff] }
  0x14   : > { %7168 = vmatpush3.msra.mxu1 %v567_v7  ;;  %7154 = vmatprep.subr.mxu0 %v471_v8  ;;  %v8070_v27 = vld [vmem:[%s447_s27 + $0x8] sm:$0xff]  ;;  %v6674_v30 = vld [vmem:[%s9211_s3 + $0x80] sm:$0xff]  ;;  %v6673_v32 = vld [vmem:[%s9211_s3 + $0x78] sm:$0xff]  ;;  %s9221_s27 = smov 48  }
  0x15   : > { %7169 = vmatprep.subr.mxu1 %v566_v9  ;;  %7155 = vmatpush3.msra.mxu0 %v471_v8  ;;  %v6675_v28 = vld [vmem:[%s9211_s3 + $0x88] sm:$0xff]  ;;  %v6684_v31 = vld [vmem:[%s9213_s5 + $0x80] sm:$0xff]  ;;  %v6683_v33 = vld [vmem:[%s9213_s5 + $0x78] sm:$0xff] }
  0x16   : > { %7170 = vmatpush3.msra.mxu1 %v566_v9  ;;  %7156 = vmatprep.subr.mxu0 %v470_v10  ;;  %v6685_v29 = vld [vmem:[%s9213_s5 + $0x88] sm:$0xff]  ;;  %v6672_v34 = vld [vmem:[%s9211_s3 + $0x70] sm:$0xff]  ;;  %v6670_v38 = vld [vmem:[%s9211_s3 + $0x60] sm:$0xff] }
  0x17   : > { %7171 = vmatprep.subr.mxu1 %v565_v11  ;;  %7157 = vmatpush3.msra.mxu0 %v470_v10  ;;  %v6682_v35 = vld [vmem:[%s9213_s5 + $0x70] sm:$0xff]  ;;  %v6671_v36 = vld [vmem:[%s9211_s3 + $0x68] sm:$0xff]  ;;  %v6680_v39 = vld [vmem:[%s9213_s5 + $0x60] sm:$0xff] }
  0x18   : > { %7158 = vmatprep.mubr.msk.f32.mxu0 %vm483_vm0, %v8016_v12  ;;  %7172 = vmatpush3.msra.mxu1 %v565_v11  ;;  %v6681_v37 = vld [vmem:[%s9213_s5 + $0x68] sm:$0xff]  ;;  %v6695_v40 = vld [vmem:[%s9211_s3 + $0xb8] sm:$0xff]  ;;  %v6694_v41 = vld [vmem:[%s9211_s3 + $0xb0] sm:$0xff] }
  0x19   : > { %7173 = vmatprep.mubr.msk.f32.mxu1 %vm483_vm0, %v8016_v12  ;;  %7159 = vmatmul.mubr.msk.f32.vlgmr.msra.gmra.mxu0 %vm483_vm0, %v8018_v13  ;;  %v6693_v42 = vld [vmem:[%s9211_s3 + $0xa8] sm:$0xff]  ;;  %v6705_v43 = vld [vmem:[%s9213_s5 + $0xb8] sm:$0xff]  ;;  %v6692_v44 = vld [vmem:[%s9211_s3 + $0xa0] sm:$0xff] }
  0x1a   : > { %7174 = vmatmul.mubr.msk.f32.vlgmr.msra.gmra.mxu1 %vm483_vm0, %v8018_v13  ;;  %7176 = vmatprep.subr.mxu0 %v6655_v14  ;;  %v6704_v45 = vld [vmem:[%s9213_s5 + $0xb0] sm:$0xff]  ;;  %v6691_v46 = vld [vmem:[%s9211_s3 + $0x98] sm:$0xff]  ;;  %v6703_v47 = vld [vmem:[%s9213_s5 + $0xa8] sm:$0xff] }
  0x1b   : > { %7191 = vmatprep.subr.mxu1 %v6665_v15  ;;  %7177 = vmatpush3.msra.mxu0 %v6655_v14  ;;  %v6690_v48 = vld [vmem:[%s9211_s3 + $0x90] sm:$0xff]  ;;  %v1228_v49 = vld [vmem:[%s9215_s7 + $0x28] sm:$0xff]  ;;  %v1227_v50 = vld [vmem:[%s9215_s7 + $0x20] sm:$0xff] }
  0x1c   : > { %7192 = vmatpush3.msra.mxu1 %v6665_v15  ;;  %7178 = vmatprep.subr.mxu0 %v6654_v16  ;;  %v6702_v51 = vld [vmem:[%s9213_s5 + $0xa0] sm:$0xff]  ;;  %v1226_v52 = vld [vmem:[%s9215_s7 + $0x18] sm:$0xff]  ;;  %v1225_v54 = vld [vmem:[%s9215_s7 + $0x10] sm:$0xff] }
  0x1d   : > { %7193 = vmatprep.subr.mxu1 %v6664_v17  ;;  %7179 = vmatpush3.msra.mxu0 %v6654_v16  ;;  %v6701_v53 = vld [vmem:[%s9213_s5 + $0x98] sm:$0xff]  ;;  %v6700_v55 = vld [vmem:[%s9213_s5 + $0x90] sm:$0xff]  ;;  %v1224_v56 = vld [vmem:[%s9215_s7 + $0x8] sm:$0xff] }
  0x1e   : > { %7194 = vmatpush3.msra.mxu1 %v6664_v17  ;;  %7180 = vmatprep.subr.mxu0 %v6653_v18  ;;  %v1223_v57 = vld [vmem:[%s9215_s7] sm:$0xff]  ;;  %v6718_v11 = vld [vmem:[%s9215_s7 + $0x58] sm:$0xff]  ;;  %v466_v16 = vld [vmem:[%s9217_s9 + $0x8] sm:$0xff] }
  0x1f   : > { %7195 = vmatprep.subr.mxu1 %v6663_v19  ;;  %7181 = vmatpush3.msra.mxu0 %v6653_v18  ;;  %v6644_v59 = vld [vmem:[%s9212_s4] ss:$0 sm:$0xff]  ;;  %v6657_v7 = vld [vmem:[%s9212_s4 + $0x1] ss:$0 sm:$0xff]  ;;  %v8232_v17 = vld [vmem:[%s9218_s10 + $0x8] sm:$0xff] }
  0x20   : > { %7196 = vmatpush3.msra.mxu1 %v6663_v19  ;;  %7182 = vmatprep.subr.mxu0 %v6652_v20  ;;  %v6647_v61 = vld [vmem:[%s9214_s6] ss:$0 sm:$0xff]  ;;  %v6667_v8 = vld [vmem:[%s9214_s6 + $0x1] ss:$0 sm:$0xff] }
  0x21   : > { %7197 = vmatprep.subr.mxu1 %v6662_v21  ;;  %7183 = vmatpush3.msra.mxu0 %v6652_v20  ;;  %v8201_v62 = vld [vmem:[%s9217_s9] sm:$0xff]  ;;  %v6716_v20 = vld [vmem:[%s9215_s7 + $0x48] sm:$0xff] }
  0x22   : > { %7198 = vmatpush3.msra.mxu1 %v6662_v21  ;;  %7184 = vmatprep.subr.mxu0 %v6651_v22  ;;  %v8206_v0 = vld [vmem:[%s9218_s10] sm:$0xff] }
  0x23   : > { %7199 = vmatprep.subr.mxu1 %v6661_v23  ;;  %7185 = vmatpush3.msra.mxu0 %v6651_v22 }
  0x24   : > { %7200 = vmatpush3.msra.mxu1 %v6661_v23  ;;  %7186 = vmatprep.subr.mxu0 %v6650_v24 }
  0x25   : > { %7201 = vmatprep.subr.mxu1 %v6660_v25  ;;  %7187 = vmatpush3.msra.mxu0 %v6650_v24 }
  0x26   : > { %7188 = vmatprep.mubr.msk.f32.mxu0 %vm483_vm0, %v8068_v26  ;;  %7202 = vmatpush3.msra.mxu1 %v6660_v25 }
  0x27   : > { %7203 = vmatprep.mubr.msk.f32.mxu1 %vm483_vm0, %v8068_v26  ;;  %7189 = vmatmul.mubr.msk.f32.vlgmr.msra.gmra.mxu0 %vm483_vm0, %v8070_v27 }
  0x28   : > { %7204 = vmatmul.mubr.msk.f32.vlgmr.msra.gmra.mxu1 %vm483_vm0, %v8070_v27  ;;  %7206 = vmatprep.subr.mxu0 %v6675_v28 }
  0x29   : > { %7221 = vmatprep.subr.mxu1 %v6685_v29  ;;  %7207 = vmatpush3.msra.mxu0 %v6675_v28 }
  0x2a   : > { %7222 = vmatpush3.msra.mxu1 %v6685_v29  ;;  %7208 = vmatprep.subr.mxu0 %v6674_v30 }
  0x2b   : > { %7218 = vmatprep.mubr.msk.f32.mxu0 %vm483_vm0, %v8068_v26  ;;  %7209 = vmatpush3.msra.mxu0 %v6674_v30 }
  0x2c   : > { %7223 = vmatprep.subr.mxu1 %v6684_v31  ;;  %7210 = vmatprep.subr.mxu0 %v6673_v32 }
  0x2d   : > { %7224 = vmatpush3.msra.mxu1 %v6684_v31  ;;  %7211 = vmatpush3.msra.mxu0 %v6673_v32  ;;  %v6714_v32 = vld [vmem:[%s9215_s7 + $0x38] sm:$0xff] }
  0x2e   : > { %7225 = vmatprep.subr.mxu1 %v6683_v33  ;;  %7212 = vmatprep.subr.mxu0 %v6672_v34 }
  0x2f   : > { %7226 = vmatpush3.msra.mxu1 %v6683_v33  ;;  %7213 = vmatpush3.msra.mxu0 %v6672_v34 }
  0x30   : > { %7227 = vmatprep.subr.mxu1 %v6682_v35  ;;  %7214 = vmatprep.subr.mxu0 %v6671_v36 }
  0x31   : > { %7228 = vmatpush3.msra.mxu1 %v6682_v35  ;;  %7215 = vmatpush3.msra.mxu0 %v6671_v36  ;;  %v6713_v35 = vld [vmem:[%s9215_s7 + $0x30] sm:$0xff]  ;;  %v6677_v36 = vld [vmem:[%s9212_s4 + $0x2] ss:$0 sm:$0xff] }
  0x32   : > { %7229 = vmatprep.subr.mxu1 %v6681_v37  ;;  %7216 = vmatprep.subr.mxu0 %v6670_v38 }
  0x33   : > { %7230 = vmatpush3.msra.mxu1 %v6681_v37  ;;  %7217 = vmatpush3.msra.mxu0 %v6670_v38 }
  0x34   : > { %7231 = vmatprep.subr.mxu1 %v6680_v39  ;;  %7236 = vmatprep.subr.mxu0 %v6695_v40 }
  0x35   : > { %7219 = vmatmul.mubr.msk.f32.vlgmr.msra.gmra.mxu0 %vm483_vm0, %v8070_v27  ;;  %7232 = vmatpush3.msra.mxu1 %v6680_v39 }
  0x36   : > { %7237 = vmatpush3.msra.mxu0 %v6695_v40  ;;  %7233 = vmatprep.mubr.msk.f32.mxu1 %vm483_vm0, %v8068_v26  ;;  %v6687_v40 = vld [vmem:[%s9214_s6 + $0x2] ss:$0 sm:$0xff] }
  0x37   : > { %7238 = vmatprep.subr.mxu0 %v6694_v41  ;;  %7234 = vmatmul.mubr.msk.f32.vlgmr.msra.gmra.mxu1 %vm483_vm0, %v8070_v27 }
  0x38   : > { %7239 = vmatpush3.msra.mxu0 %v6694_v41  ;;  %7251 = vmatprep.subr.mxu1 %v6705_v43 }
  0x39   : > { %7240 = vmatprep.subr.mxu0 %v6693_v42  ;;  %7252 = vmatpush3.msra.mxu1 %v6705_v43 }
  0x3a   : > { %7241 = vmatpush3.msra.mxu0 %v6693_v42  ;;  %7248 = vmatprep.mubr.msk.f32.mxu0 %vm483_vm0, %v8016_v12 }
  0x3b   : > { %7242 = vmatprep.subr.mxu0 %v6692_v44  ;;  %7253 = vmatprep.subr.mxu1 %v6704_v45 }
  0x3c   : > { %7243 = vmatpush3.msra.mxu0 %v6692_v44  ;;  %7254 = vmatpush3.msra.mxu1 %v6704_v45 }
  0x3d   : > { %7244 = vmatprep.subr.mxu0 %v6691_v46  ;;  %7255 = vmatprep.subr.mxu1 %v6703_v47 }
  0x3e   : > { %7245 = vmatpush3.msra.mxu0 %v6691_v46  ;;  %7256 = vmatpush3.msra.mxu1 %v6703_v47 }
  0x3f   : > { %7246 = vmatprep.subr.mxu0 %v6690_v48  ;;  %7263 = vmatprep.mubr.msk.f32.mxu1 %vm483_vm0, %v8016_v12 }
  0x40   : > { %7247 = vmatpush3.msra.mxu0 %v6690_v48  ;;  %7257 = vmatprep.subr.mxu1 %v6702_v51 }
  0x41   : > { %7266 = vmatprep.subr.mxu0 %v1228_v49  ;;  %7249 = vmatmul.mubr.msk.f32.vlgmr.msra.gmra.mxu0 %vm483_vm0, %v8018_v13 }
  0x42   : > { %7267 = vmatpush3.msra.mxu0 %v1228_v49  ;;  %7278 = vmatprep.mubr.msk.f32.mxu0 %vm483_vm0, %v8068_v26  ;;  %v6715_v26 = vld [vmem:[%s9215_s7 + $0x40] sm:$0xff] }
  0x43   : > { %7268 = vmatprep.subr.mxu0 %v1227_v50  ;;  %7258 = vmatpush3.msra.mxu1 %v6702_v51 }
  0x44   : > { %7269 = vmatpush3.msra.mxu0 %v1227_v50  ;;  %7259 = vmatprep.subr.mxu1 %v6701_v53 }
  0x45   : > { %7270 = vmatprep.subr.mxu0 %v1226_v52  ;;  %7260 = vmatpush3.msra.mxu1 %v6701_v53 }
  0x46   : > { %7271 = vmatpush3.msra.mxu0 %v1226_v52  ;;  %7261 = vmatprep.subr.mxu1 %v6700_v55 }
  0x47   : > { %7272 = vmatprep.subr.mxu0 %v1225_v54  ;;  %7262 = vmatpush3.msra.mxu1 %v6700_v55 }
  0x48   : > { %7273 = vmatpush3.msra.mxu0 %v1225_v54  ;;  %7264 = vmatmul.mubr.msk.f32.vlgmr.msra.gmra.mxu1 %vm483_vm0, %v8018_v13 }
  0x49   : > { %7274 = vmatprep.subr.mxu0 %v1224_v56  ;;  %7293 = vmatprep.mubr.msk.f32.mxu1 %vm483_vm0, %v8016_v12  ;;  %v6717_v12 = vld [vmem:[%s9215_s7 + $0x50] sm:$0xff] }
  0x4a   : > { %7275 = vmatpush3.msra.mxu0 %v1224_v56  ;;  %7281 = vmatprep.subr.mxu1 %v6718_v11 }
  0x4b   : > { %7276 = vmatprep.subr.mxu0 %v1223_v57  ;;  %7282 = vmatpush3.msra.mxu1 %v6718_v11 }
  0x4c   : > { %7277 = vmatpush3.msra.mxu0 %v1223_v57  ;;  %7283 = vmatprep.subr.mxu1 %v6717_v12 }
  0x4d   : > { %7279 = vmatmul.mubr.msk.f32.vlgmr.msra.gmra.mxu0 %vm483_vm0, %v8070_v27  ;;  %7284 = vmatpush3.msra.mxu1 %v6717_v12 }
  0x4e   : > { %7285 = vmatprep.subr.mxu1 %v6716_v20 }
  0x4f   : > { %7286 = vmatpush3.msra.mxu1 %v6716_v20 }
  0x50   : > { %7287 = vmatprep.subr.mxu1 %v6715_v26 }
  0x51   : > { %7288 = vmatpush3.msra.mxu1 %v6715_v26 }
  0x52   : > { %7289 = vmatprep.subr.mxu1 %v6714_v32 }
  0x53   : > { %7290 = vmatpush3.msra.mxu1 %v6714_v32 }
  0x54   : > { %7291 = vmatprep.subr.mxu1 %v6713_v35 }
  0x55   : > { %7292 = vmatpush3.msra.mxu1 %v6713_v35 }
  0x56   : > { %7294 = vmatmul.mubr.msk.f32.vlgmr.msra.gmra.mxu1 %vm483_vm0, %v8018_v13  ;;  %v6697_v13 = vld [vmem:[%s9212_s4 + $0x3] ss:$0 sm:$0xff] }
  0xd9   : > { %v7160_v58 = vpop.f32.mrf.mxu0 }
  0xda   : > { %v7175_v60 = vpop.f32.mrf.mxu1  ;;  %v562_v25 = vadd.f32 %v7160_v58, %v6644_v59 }
  0xdb   : > { %v556_v63 = vpop.f32.mrf.mxu0  ;;  %v650_v27 = vadd.f32 %v7175_v60, %v6647_v61 }
  0xdc   : > { %v644_v1 = vpop.f32.mrf.mxu1  ;;  %v557_v2 = vadd.f32 %v6644_v59, %v556_v63  ;;  %v654_v33 = vmul.f32 %v562_v25, %v466_v16  ;;  %v6707_v59 = vld [vmem:[%s9214_s6 + $0x3] ss:$0 sm:$0xff]  ;;  %v6710_v63 = vld [vmem:[%s9216_s8] ss:$0 sm:$0xff] }
  0xdd   : > { %v645_v3 = vadd.f32 %v6647_v61, %v644_v1  ;;  %v656_v34 = vmul.f32 %v650_v27, %v8232_v17 }
  0xde   : > { %v653_v4 = vmul.f32 %v557_v2, %v8201_v62 }
  0xdf   : > { %v655_v5 = vmul.f32 %v645_v3, %v8206_v0  ;;  %v8267_v37 = vadd.f32 %v656_v34, %v654_v33 }
  0xe1   : > { %v8210_v6 = vadd.f32 %v655_v5, %v653_v4 }
  0xe3   : > { %7300 = vmatprep.mubr.msk.f32.mxu0 %vm1401_vm1, %v8210_v6 }
  0xe7   : > { %v7190_v9 = vpop.f32.mrf.mxu0 }
  0xe8   : > { %v7205_v10 = vpop.f32.mrf.mxu1  ;;  %v752_v14 = vadd.f32 %v7190_v9, %v6657_v7 }
  0xe9   : > { %v842_v15 = vadd.f32 %v7205_v10, %v6667_v8  ;;  %v746_v18 = vpop.f32.mrf.mxu0  ;;  %v8315_v10 = vld [vmem:[%s8312_s29] ss:$0 sm:$0xff] }
  0xea   : > { %v836_v19 = vpop.f32.mrf.mxu1  ;;  %v846_v21 = vmul.f32 %v752_v14, %v466_v16  ;;  %v747_v23 = vadd.f32 %v6657_v7, %v746_v18 }
  0xeb   : > { %v848_v22 = vmul.f32 %v842_v15, %v8232_v17  ;;  %v837_v24 = vadd.f32 %v6667_v8, %v836_v19 }
  0xec   : > { %v845_v29 = vmul.f32 %v747_v23, %v8201_v62 }
  0xed   : > { %v8241_v28 = vadd.f32 %v848_v22, %v846_v21  ;;  %v847_v30 = vmul.f32 %v837_v24, %v8206_v0 }
  0xef   : > { %v8245_v31 = vadd.f32 %v847_v30, %v845_v29  ;;  %7296 = vmatprep.subr.msk.mxu0 %vm1401_vm1, %v8241_v28 }
  0xf0   : > { %7297 = vmatpush3.xpose.msk.msra.mxu0 %vm1401_vm1, %v8241_v28 }
  0xf1   : > { %1607 = vrot.lane.b32.xlu1 %v8245_v31, %s7871_s28  ;;  %7298 = vmatprep.subr.msk.mxu0 %vm1401_vm1, %v8245_v31 }
  0xf4   : > { %7299 = vmatpush3.xpose.msk.msra.mxu0 %vm1401_vm1, %v8245_v31 }
  0xf5   : > { %1603 = vrot.lane.b32.xlu1 %v8210_v6, %s7871_s28  ;;  %v7220_v38 = vpop.f32.mrf.mxu0 }
  0xf6   : > { %v938_v39 = vadd.f32 %v7220_v38, %v6677_v36 }
  0xf7   : > { %7301 = vmatmul.mubr.msk.f32.vlgmr.msra.gmra.mxu0 %vm1401_vm1, %v8267_v37  ;;  %v932_v41 = vpop.f32.mrf.mxu0  ;;  %v7235_v43 = vpop.f32.mrf.mxu1 }
  0xf8   : > { %v1032_v42 = vmul.f32 %v938_v39, %v466_v16  ;;  %v933_v44 = vadd.f32 %v6677_v36, %v932_v41  ;;  %v1028_v45 = vadd.f32 %v7235_v43, %v6687_v40 }
  0xf9   : > { %v1022_v47 = vpop.f32.mrf.mxu1 }
  0xfa   : > { %v1031_v46 = vmul.f32 %v933_v44, %v8201_v62  ;;  %v1034_v48 = vmul.f32 %v1028_v45, %v8232_v17  ;;  %v1023_v49 = vadd.f32 %v6687_v40, %v1022_v47 }
  0xfc   : > { %v8280_v50 = vadd.f32 %v1034_v48, %v1032_v42  ;;  %v1033_v51 = vmul.f32 %v1023_v49, %v8206_v0 }
  0xfe   : > { %v8283_v52 = vadd.f32 %v1033_v51, %v1031_v46 }
 0x101   : > { %v7250_v53 = vpop.f32.mrf.mxu0 }
 0x102   : > { %v1124_v54 = vadd.f32 %v7250_v53, %v6697_v13 }
 0x103   : > { %v1118_v55 = vpop.f32.mrf.mxu0 }
 0x104   : > { %v1218_v56 = vmul.f32 %v1124_v54, %v466_v16  ;;  %v1119_v57 = vadd.f32 %v6697_v13, %v1118_v55 }
 0x106   : > { %v8289_v58 = vmul.f32 %v1119_v57, %v8201_v62 }
 0x108   : > { %v7265_v60 = vpop.f32.mrf.mxu1 }
 0x109   : > { %v1214_v61 = vadd.f32 %v7265_v60, %v6707_v59 }
 0x10a   : > { %v8335_v39 = vpop.f32.mrf.mxu1 }
 0x10b   : > { %v1220_v0 = vmul.f32 %v1214_v61, %v8232_v17 }
 0x10d   : > { %v7280_v1 = vpop.f32.mrf.mxu0  ;;  %v8300_v3 = vadd.f32 %v1220_v0, %v1218_v56 }
 0x10e   : > { %v8298_v2 = vadd.f32 %v7280_v1, %v6710_v63 }
 0x10f   : > { %v1302_v62 = vpop.f32.mrf.mxu0 }
 0x110   : > { %v8302_v4 = vadd.f32 %v6710_v63, %v1302_v62  ;;  %7303 = vmatprep.subr.mxu1 %v8298_v2 }
 0x111   : > { %7304 = vmatpush3.msra.mxu1 %v8298_v2 }
 0x112   : > { %7305 = vmatprep.subr.mxu1 %v8302_v4 }
 0x113   : > { %7306 = vmatpush3.msra.mxu1 %v8302_v4 }
 0x116   : > { %v8337_v40 = vpop.f32.mrf.mxu1 }
 0x118   : > { %v8339_v41 = vpop.f32.mrf.mxu1 }
 0x163   : > { %v1608_v27 = vpop.permute.xlu1 %1607 }
 0x167   : > { %v1604_v29 = vpop.permute.xlu1 %1603 }
 0x1b7   : > { %v7302_v5 = vpop.f32.mrf.mxu0 }
 0x1b8   : > { %v1490_v8 = vmul.f32 0.35355338, %v7302_v5 }
 0x1b9   : > { %v1480_v7 = vpop.f32.mrf.mxu0 }
 0x1ba   : > { %v1489_v9 = vmul.f32 0.35355338, %v1480_v7  ;;  %v1498_v14 = vadd.f32 %v8315_v10, %v1490_v8 }
 0x1bc   : > { %v1497_v11 = vadd.f32 %v8315_v10, %v1489_v9  ;;  %v1503_v15 = vsel %vm1499_vm2, %v1498_v14, -inf }
 0x1be   : > { %v1500_v12 = vsel %vm1499_vm2, %v1497_v11, -inf }
 0x1bf   : > { %1501 = vmax.xlane.f32.xlu0 %v1500_v12 }
 0x1c3   : > { %1504 = vmax.xlane.f32.xlu0 %v1503_v15 }
 0x1d9   : > { %1609 = vrot.lane.b32.xlu0 %v8241_v28, %s7871_s28 }
 0x248   : > { %v1502_v16 = vpop.xlane.xlu0 %1501 }
 0x249   : > { %v1506_v17 = vsub.f32 %v1497_v11, %v1502_v16 }
 0x24b   : > { %v1508_v20 = vmul.f32 1.442695, %v1506_v17 }
 0x24c   : > { %v1505_v18 = vpop.xlane.xlu0 %1504 }
 0x24d   : > { %v1507_v19 = vsub.f32 %v1498_v14, %v1505_v18 }
 0x24f   : > { %v1510_v21 = vmul.f32 1.442695, %v1507_v19 }
 0x250   : > { %v1610_v22 = vpop.permute.xlu0 %1609 }
 0x251   : > { %7667 = vpow2.f32 %v1510_v21  ;;  %7310 = vmatprep.subr.msk.mxu1 %vm1401_vm1, %v1610_v22 }
 0x252   : > { %7669 = vpow2.f32 %v1508_v20 }
 0x25e   : > { %v7668_v23 = vpop.eup %7667 }
 0x25f   : > { %v1515_v24 = vsel %vm1499_vm2, %v7668_v23, 0.0  ;;  %v7670_v25 = vpop.eup %7669 }
 0x260   : > { %1516 = vadd.xlane.f32.xlu1 %v1515_v24  ;;  %v1512_v26 = vsel %vm1499_vm2, %v7670_v25, 0.0 }
 0x264   : > { %1513 = vadd.xlane.f32.xlu1 %v1512_v26 }
 0x275   : > { %1605 = vrot.lane.b32.xlu1 %v8267_v37, %s7871_s28 }
 0x2e9   : > { %v1517_v30 = vpop.xlane.xlu1 %1516 }
 0x2ea   : > { %7671 = vrcp.f32 %v1517_v30 }
 0x2ed   : > { %v1514_v32 = vpop.xlane.xlu1 %1513 }
 0x2ee   : > { %7673 = vrcp.f32 %v1514_v32 }
 0x2f1   : > { %v1606_v38 = vpop.permute.xlu1 %1605 }
 0x2f7   : > { %v7672_v33 = vpop.eup %7671 }
 0x2f8   : > { %v1521_v36 = vmul.f32 %v7672_v33, %v7668_v23 }
 0x2fb   : > { %v7674_v34 = vpop.eup %7673 }
 0x2fc   : > { %v1519_v35 = vmul.f32 %v7674_v34, %v7670_v25 }
 0x2fe   : > { %7307 = vmatprep.mubr.msk.f32.mxu1 %vm1499_vm2, %v1519_v35 }
 0x2ff   : > { %7308 = vmatmul.mubr.msk.f32.vlgmr.msra.gmra.mxu1 %vm1499_vm2, %v1521_v36 }
 0x300   : > { %7311 = vmatpush3.xpose.msk.msra.mxu1 %vm1401_vm1, %v1610_v22  ;;  %7314 = vmatprep.mubr.msk.f32.mxu1 %vm1401_vm1, %v1604_v29 }
 0x301   : > { %7312 = vmatprep.subr.msk.mxu1 %vm1401_vm1, %v1608_v27 }
 0x304   : > { %7313 = vmatpush3.xpose.msk.msra.mxu1 %vm1401_vm1, %v1608_v27 }
 0x307   : > { %7315 = vmatmul.mubr.msk.f32.vlgmr.msra.gmra.mxu1 %vm1401_vm1, %v1606_v38 }
 0x3bf   : > { %v8341_v42 = vpop.f32.mrf.mxu1 }
 0x3c1   : > { %v8343_v43 = vpop.f32.mrf.mxu1 }
 0x3c7   : > { %v7316_v44 = vpop.f32.mrf.mxu1 }
 0x3c8   : > { %v1695_v45 = vmul.f32 0.35355338, %v7316_v44 }
 0x3c9   : > { %v1685_v46 = vpop.f32.mrf.mxu1 }
 0x3ca   : > { %v1694_v47 = vmul.f32 0.35355338, %v1685_v46  ;;  %v1697_v48 = vadd.f32 %v8315_v10, %v1695_v45 }
 0x3cc   : > { %v1701_v49 = vsel %vm1499_vm2, %v1697_v48, -inf  ;;  %v1696_v51 = vadd.f32 %v8315_v10, %v1694_v47 }
 0x3cd   : > { %1702 = vmax.xlane.f32.xlu1 %v1701_v49 }
 0x3ce   : > { %v1698_v13 = vsel %vm1499_vm2, %v1696_v51, -inf }
 0x3cf   : > { %1699 = vmax.xlane.f32.xlu0 %v1698_v13 }
 0x3de   : > { %1722 = vrot.lane.b32.xlu1 %v8302_v4, %s7872_s22 }
 0x3e2   : > { %1815 = vrot.lane.b32.xlu1 %v8241_v28, %s7873_s30 }
 0x3e6   : > { %1813 = vrot.lane.b32.xlu1 %v8245_v31, %s7873_s30 }
 0x3ea   : > { %1811 = vrot.lane.b32.xlu1 %v8267_v37, %s7873_s30 }
 0x456   : > { %v1703_v53 = vpop.xlane.xlu1 %1702 }
 0x457   : > { %v1705_v54 = vsub.f32 %v1697_v48, %v1703_v53 }
 0x458   : > { %v1700_v55 = vpop.xlane.xlu0 %1699 }
 0x459   : > { %v1708_v56 = vmul.f32 1.442695, %v1705_v54  ;;  %v1704_v57 = vsub.f32 %v1696_v51, %v1700_v55 }
 0x45a   : > { %v1723_v5 = vpop.permute.xlu1 %1722 }
 0x45b   : > { %7675 = vpow2.f32 %v1708_v56  ;;  %v1706_v59 = vmul.f32 1.442695, %v1704_v57 }
 0x45d   : > { %7677 = vpow2.f32 %v1706_v59 }
 0x45e   : > { %v1816_v8 = vpop.permute.xlu1 %1815 }
 0x462   : > { %v1814_v16 = vpop.permute.xlu1 %1813 }
 0x466   : > { %v1812_v17 = vpop.permute.xlu1 %1811 }
 0x468   : > { %v7676_v60 = vpop.eup %7675 }
 0x469   : > { %v1713_v61 = vsel %vm1499_vm2, %v7676_v60, 0.0 }
 0x46a   : > { %v7678_v63 = vpop.eup %7677  ;;  %1714 = vadd.xlane.f32.xlu0 %v1713_v61 }
 0x46b   : > { %v1710_v0 = vsel %vm1499_vm2, %v7678_v63, 0.0 }
 0x46e   : > { %1711 = vadd.xlane.f32.xlu0 %v1710_v0 }
 0x484   : > { %1724 = vrot.lane.b32.xlu0 %v8298_v2, %s7872_s22 }
 0x488   : > { %1809 = vrot.lane.b32.xlu0 %v8210_v6, %s7873_s30 }
 0x4f3   : > { %v1715_v1 = vpop.xlane.xlu0 %1714 }
 0x4f4   : > { %7679 = vrcp.f32 %v1715_v1 }
 0x4f7   : > { %v1712_v62 = vpop.xlane.xlu0 %1711 }
 0x4f8   : > { %7681 = vrcp.f32 %v1712_v62 }
 0x4fb   : > { %v1725_v7 = vpop.permute.xlu0 %1724 }
 0x4fc   : > { %7317 = vmatprep.subr.mxu0 %v1725_v7 }
 0x4fd   : > { %7318 = vmatpush3.msra.mxu0 %v1725_v7 }
 0x4fe   : > { %7319 = vmatprep.subr.mxu0 %v1723_v5 }
 0x4ff   : > { %7320 = vmatpush3.msra.mxu0 %v1723_v5  ;;  %v1810_v15 = vpop.permute.xlu0 %1809 }
 0x500   : > { %7324 = vmatprep.subr.msk.mxu0 %vm1401_vm1, %v1816_v8 }
 0x501   : > { %v7680_v9 = vpop.eup %7679 }
 0x502   : > { %v1719_v14 = vmul.f32 %v7680_v9, %v7676_v60 }
 0x505   : > { %v7682_v11 = vpop.eup %7681 }
 0x506   : > { %v1717_v12 = vmul.f32 %v7682_v11, %v7678_v63 }
 0x508   : > { %7321 = vmatprep.mubr.msk.f32.mxu0 %vm1499_vm2, %v1717_v12 }
 0x509   : > { %7322 = vmatmul.mubr.msk.f32.vlgmr.msra.gmra.mxu0 %vm1499_vm2, %v1719_v14 }
 0x50a   : > { %7325 = vmatpush3.xpose.msk.msra.mxu0 %vm1401_vm1, %v1816_v8  ;;  %7328 = vmatprep.mubr.msk.f32.mxu0 %vm1401_vm1, %v1810_v15 }
 0x50b   : > { %7326 = vmatprep.subr.msk.mxu0 %vm1401_vm1, %v1814_v16 }
 0x50e   : > { %7327 = vmatpush3.xpose.msk.msra.mxu0 %vm1401_vm1, %v1814_v16 }
 0x511   : > { %7329 = vmatmul.mubr.msk.f32.vlgmr.msra.gmra.mxu0 %vm1401_vm1, %v1812_v17 }
 0x5c9   : > { %v8371_v18 = vpop.f32.mrf.mxu0 }
 0x5cb   : > { %v8373_v19 = vpop.f32.mrf.mxu0 }
 0x5d1   : > { %v7330_v20 = vpop.f32.mrf.mxu0 }
 0x5d2   : > { %v1901_v21 = vmul.f32 0.35355338, %v7330_v20 }
 0x5d3   : > { %v1891_v22 = vpop.f32.mrf.mxu0 }
 0x5d4   : > { %v1900_v23 = vmul.f32 0.35355338, %v1891_v22  ;;  %v1903_v24 = vadd.f32 %v8315_v10, %v1901_v21 }
 0x5d6   : > { %v1907_v25 = vsel %vm1499_vm2, %v1903_v24, -inf  ;;  %v1902_v26 = vadd.f32 %v8315_v10, %v1900_v23 }
 0x5d7   : > { %1908 = vmax.xlane.f32.xlu1 %v1907_v25 }
 0x5d8   : > { %v1904_v27 = vsel %vm1499_vm2, %v1902_v26, -inf }
 0x5d9   : > { %1905 = vmax.xlane.f32.xlu0 %v1904_v27 }
 0x5e8   : > { %1926 = vrot.lane.b32.xlu1 %v8302_v4, %s7871_s28 }
 0x5ec   : > { %2019 = vrot.lane.b32.xlu1 %v8241_v28, %s7874_s13 }
 0x5f0   : > { %2017 = vrot.lane.b32.xlu1 %v8245_v31, %s7874_s13 }
 0x5f4   : > { %2015 = vrot.lane.b32.xlu1 %v8267_v37, %s7874_s13 }
 0x660   : > { %v1909_v29 = vpop.xlane.xlu1 %1908 }
 0x661   : > { %v1911_v30 = vsub.f32 %v1903_v24, %v1909_v29 }
 0x662   : > { %v1906_v32 = vpop.xlane.xlu0 %1905 }
 0x663   : > { %v1914_v33 = vmul.f32 1.442695, %v1911_v30  ;;  %v1910_v34 = vsub.f32 %v1902_v26, %v1906_v32 }
 0x664   : > { %v1927_v48 = vpop.permute.xlu1 %1926 }
 0x665   : > { %7683 = vpow2.f32 %v1914_v33  ;;  %v1912_v35 = vmul.f32 1.442695, %v1910_v34 }
 0x667   : > { %7685 = vpow2.f32 %v1912_v35 }
 0x668   : > { %v2020_v51 = vpop.permute.xlu1 %2019 }
 0x66c   : > { %v2018_v57 = vpop.permute.xlu1 %2017 }
 0x670   : > { %v2016_v59 = vpop.permute.xlu1 %2015 }
 0x672   : > { %v7684_v36 = vpop.eup %7683 }
 0x673   : > { %v1919_v38 = vsel %vm1499_vm2, %v7684_v36, 0.0 }
 0x674   : > { %v7686_v44 = vpop.eup %7685  ;;  %1920 = vadd.xlane.f32.xlu0 %v1919_v38 }
 0x675   : > { %v1916_v45 = vsel %vm1499_vm2, %v7686_v44, 0.0 }
 0x678   : > { %1917 = vadd.xlane.f32.xlu0 %v1916_v45 }
 0x68e   : > { %1928 = vrot.lane.b32.xlu0 %v8298_v2, %s7871_s28 }
 0x692   : > { %2013 = vrot.lane.b32.xlu0 %v8210_v6, %s7874_s13 }
 0x6fd   : > { %v1921_v46 = vpop.xlane.xlu0 %1920 }
 0x6fe   : > { %7687 = vrcp.f32 %v1921_v46 }
 0x701   : > { %v1918_v47 = vpop.xlane.xlu0 %1917 }
 0x702   : > { %7689 = vrcp.f32 %v1918_v47 }
 0x705   : > { %v1929_v49 = vpop.permute.xlu0 %1928 }
 0x706   : > { %7331 = vmatprep.subr.mxu1 %v1929_v49 }
 0x707   : > { %7332 = vmatpush3.msra.mxu1 %v1929_v49 }
 0x708   : > { %7333 = vmatprep.subr.mxu1 %v1927_v48 }
 0x709   : > { %7334 = vmatpush3.msra.mxu1 %v1927_v48  ;;  %v2014_v56 = vpop.permute.xlu0 %2013 }
 0x70a   : > { %7338 = vmatprep.subr.msk.mxu1 %vm1401_vm1, %v2020_v51 }
 0x70b   : > { %v7688_v13 = vpop.eup %7687 }
 0x70c   : > { %v1925_v55 = vmul.f32 %v7688_v13, %v7684_v36 }
 0x70f   : > { %v7690_v53 = vpop.eup %7689 }
 0x710   : > { %v1923_v54 = vmul.f32 %v7690_v53, %v7686_v44 }
 0x712   : > { %7335 = vmatprep.mubr.msk.f32.mxu1 %vm1499_vm2, %v1923_v54 }
 0x713   : > { %7336 = vmatmul.mubr.msk.f32.vlgmr.msra.gmra.mxu1 %vm1499_vm2, %v1925_v55 }
 0x714   : > { %7339 = vmatpush3.xpose.msk.msra.mxu1 %vm1401_vm1, %v2020_v51  ;;  %7342 = vmatprep.mubr.msk.f32.mxu1 %vm1401_vm1, %v2014_v56 }
 0x715   : > { %7340 = vmatprep.subr.msk.mxu1 %vm1401_vm1, %v2018_v57 }
 0x718   : > { %7341 = vmatpush3.xpose.msk.msra.mxu1 %vm1401_vm1, %v2018_v57 }
 0x71b   : > { %7343 = vmatmul.mubr.msk.f32.vlgmr.msra.gmra.mxu1 %vm1401_vm1, %v2016_v59 }
 0x7d3   : > { %v8401_v60 = vpop.f32.mrf.mxu1 }
 0x7d5   : > { %v8403_v61 = vpop.f32.mrf.mxu1 }
 0x7db   : > { %v7344_v63 = vpop.f32.mrf.mxu1 }
 0x7dc   : > { %v2105_v0 = vmul.f32 0.35355338, %v7344_v63 }
 0x7dd   : > { %v2095_v1 = vpop.f32.mrf.mxu1 }
 0x7de   : > { %v2104_v62 = vmul.f32 0.35355338, %v2095_v1  ;;  %v2107_v5 = vadd.f32 %v8315_v10, %v2105_v0 }
 0x7e0   : > { %v2111_v7 = vsel %vm1499_vm2, %v2107_v5, -inf  ;;  %v2106_v8 = vadd.f32 %v8315_v10, %v2104_v62 }
 0x7e1   : > { %2112 = vmax.xlane.f32.xlu1 %v2111_v7 }
 0x7e2   : > { %v2108_v9 = vsel %vm1499_vm2, %v2106_v8, -inf }
 0x7e3   : > { %2109 = vmax.xlane.f32.xlu0 %v2108_v9 }
 0x7f2   : > { %2130 = vrot.lane.b32.xlu1 %v8302_v4, %s7875_s14 }
 0x7f6   : > { %2223 = vrot.lane.b32.xlu1 %v8241_v28, %s7876_s15 }
 0x7fa   : > { %2221 = vrot.lane.b32.xlu1 %v8245_v31, %s7876_s15 }
 0x7fe   : > { %2219 = vrot.lane.b32.xlu1 %v8267_v37, %s7876_s15 }
 0x86a   : > { %v2113_v11 = vpop.xlane.xlu1 %2112 }
 0x86b   : > { %v2115_v12 = vsub.f32 %v2107_v5, %v2113_v11 }
 0x86c   : > { %v2110_v14 = vpop.xlane.xlu0 %2109 }
 0x86d   : > { %v2118_v15 = vmul.f32 1.442695, %v2115_v12  ;;  %v2114_v16 = vsub.f32 %v2106_v8, %v2110_v14 }
 0x86e   : > { %v2131_v26 = vpop.permute.xlu1 %2130 }
 0x86f   : > { %7691 = vpow2.f32 %v2118_v15  ;;  %v2116_v17 = vmul.f32 1.442695, %v2114_v16 }
 0x871   : > { %7693 = vpow2.f32 %v2116_v17 }
 0x872   : > { %v2224_v29 = vpop.permute.xlu1 %2223 }
 0x876   : > { %v2222_v36 = vpop.permute.xlu1 %2221 }
 0x87a   : > { %v2220_v38 = vpop.permute.xlu1 %2219 }
 0x87c   : > { %v7692_v20 = vpop.eup %7691 }
 0x87d   : > { %v2123_v21 = vsel %vm1499_vm2, %v7692_v20, 0.0 }
 0x87e   : > { %v7694_v22 = vpop.eup %7693  ;;  %2124 = vadd.xlane.f32.xlu0 %v2123_v21 }
 0x87f   : > { %v2120_v23 = vsel %vm1499_vm2, %v7694_v22, 0.0 }
 0x882   : > { %2121 = vadd.xlane.f32.xlu0 %v2120_v23 }
 0x898   : > { %2132 = vrot.lane.b32.xlu0 %v8298_v2, %s7875_s14 }
 0x89c   : > { %2217 = vrot.lane.b32.xlu0 %v8210_v6, %s7876_s15 }
 0x907   : > { %v2125_v24 = vpop.xlane.xlu0 %2124 }
 0x908   : > { %7695 = vrcp.f32 %v2125_v24 }
 0x90b   : > { %v2122_v25 = vpop.xlane.xlu0 %2121 }
 0x90c   : > { %7697 = vrcp.f32 %v2122_v25 }
 0x90f   : > { %v2133_v27 = vpop.permute.xlu0 %2132 }
 0x910   : > { %7345 = vmatprep.subr.mxu0 %v2133_v27 }
 0x911   : > { %7346 = vmatpush3.msra.mxu0 %v2133_v27 }
 0x912   : > { %7347 = vmatprep.subr.mxu0 %v2131_v26 }
 0x913   : > { %7348 = vmatpush3.msra.mxu0 %v2131_v26  ;;  %v2218_v35 = vpop.permute.xlu0 %2217 }
 0x914   : > { %7352 = vmatprep.subr.msk.mxu0 %vm1401_vm1, %v2224_v29 }
 0x915   : > { %v7696_v30 = vpop.eup %7695 }
 0x916   : > { %v2129_v34 = vmul.f32 %v7696_v30, %v7692_v20 }
 0x919   : > { %v7698_v32 = vpop.eup %7697 }
 0x91a   : > { %v2127_v33 = vmul.f32 %v7698_v32, %v7694_v22 }
 0x91c   : > { %7349 = vmatprep.mubr.msk.f32.mxu0 %vm1499_vm2, %v2127_v33 }
 0x91d   : > { %7350 = vmatmul.mubr.msk.f32.vlgmr.msra.gmra.mxu0 %vm1499_vm2, %v2129_v34 }
 0x91e   : > { %7353 = vmatpush3.xpose.msk.msra.mxu0 %vm1401_vm1, %v2224_v29  ;;  %7356 = vmatprep.mubr.msk.f32.mxu0 %vm1401_vm1, %v2218_v35 }
 0x91f   : > { %7354 = vmatprep.subr.msk.mxu0 %vm1401_vm1, %v2222_v36 }
 0x922   : > { %7355 = vmatpush3.xpose.msk.msra.mxu0 %vm1401_vm1, %v2222_v36 }
 0x925   : > { %7357 = vmatmul.mubr.msk.f32.vlgmr.msra.gmra.mxu0 %vm1401_vm1, %v2220_v38 }
 0x9dd   : > { %v8431_v44 = vpop.f32.mrf.mxu0 }
 0x9df   : > { %v8433_v45 = vpop.f32.mrf.mxu0 }
 0x9e5   : > { %v7358_v46 = vpop.f32.mrf.mxu0 }
 0x9e6   : > { %v2309_v47 = vmul.f32 0.35355338, %v7358_v46 }
 0x9e7   : > { %v2299_v48 = vpop.f32.mrf.mxu0 }
 0x9e8   : > { %v2308_v49 = vmul.f32 0.35355338, %v2299_v48  ;;  %v2311_v51 = vadd.f32 %v8315_v10, %v2309_v47 }
 0x9ea   : > { %v2315_v13 = vsel %vm1499_vm2, %v2311_v51, -inf  ;;  %v2310_v53 = vadd.f32 %v8315_v10, %v2308_v49 }
 0x9eb   : > { %2316 = vmax.xlane.f32.xlu1 %v2315_v13 }
 0x9ec   : > { %v2312_v54 = vsel %vm1499_vm2, %v2310_v53, -inf }
 0x9ed   : > { %2313 = vmax.xlane.f32.xlu0 %v2312_v54 }
 0x9fc   : > { %2334 = vrot.lane.b32.xlu1 %v8302_v4, %s7873_s30 }
 0xa00   : > { %2427 = vrot.lane.b32.xlu1 %v8241_v28, %s7877_s16 }
 0xa04   : > { %2425 = vrot.lane.b32.xlu1 %v8245_v31, %s7877_s16 }
 0xa08   : > { %2423 = vrot.lane.b32.xlu1 %v8267_v37, %s7877_s16 }
 0xa74   : > { %v2317_v55 = vpop.xlane.xlu1 %2316 }
 0xa75   : > { %v2319_v56 = vsub.f32 %v2311_v51, %v2317_v55 }
 0xa76   : > { %v2314_v57 = vpop.xlane.xlu0 %2313 }
 0xa77   : > { %v2322_v59 = vmul.f32 1.442695, %v2319_v56  ;;  %v2318_v63 = vsub.f32 %v2310_v53, %v2314_v57 }
 0xa78   : > { %v2335_v11 = vpop.permute.xlu1 %2334 }
 0xa79   : > { %7699 = vpow2.f32 %v2322_v59  ;;  %v2320_v0 = vmul.f32 1.442695, %v2318_v63 }
 0xa7b   : > { %7701 = vpow2.f32 %v2320_v0 }
 0xa7c   : > { %v2428_v14 = vpop.permute.xlu1 %2427 }
 0xa80   : > { %v2426_v22 = vpop.permute.xlu1 %2425 }
 0xa84   : > { %v2424_v23 = vpop.permute.xlu1 %2423 }
 0xa86   : > { %v7700_v1 = vpop.eup %7699 }
 0xa87   : > { %v2327_v62 = vsel %vm1499_vm2, %v7700_v1, 0.0 }
 0xa88   : > { %v7702_v5 = vpop.eup %7701  ;;  %2328 = vadd.xlane.f32.xlu0 %v2327_v62 }
 0xa89   : > { %v2324_v7 = vsel %vm1499_vm2, %v7702_v5, 0.0 }
 0xa8c   : > { %2325 = vadd.xlane.f32.xlu0 %v2324_v7 }
 0xaa2   : > { %2336 = vrot.lane.b32.xlu0 %v8298_v2, %s7873_s30 }
 0xaa6   : > { %2421 = vrot.lane.b32.xlu0 %v8210_v6, %s7877_s16 }
 0xb11   : > { %v2329_v8 = vpop.xlane.xlu0 %2328 }
 0xb12   : > { %7703 = vrcp.f32 %v2329_v8 }
 0xb15   : > { %v2326_v9 = vpop.xlane.xlu0 %2325 }
 0xb16   : > { %7705 = vrcp.f32 %v2326_v9 }
 0xb19   : > { %v2337_v12 = vpop.permute.xlu0 %2336 }
 0xb1a   : > { %7359 = vmatprep.subr.mxu1 %v2337_v12 }
 0xb1b   : > { %7360 = vmatpush3.msra.mxu1 %v2337_v12 }
 0xb1c   : > { %7361 = vmatprep.subr.mxu1 %v2335_v11 }
 0xb1d   : > { %7362 = vmatpush3.msra.mxu1 %v2335_v11  ;;  %v2422_v21 = vpop.permute.xlu0 %2421 }
 0xb1e   : > { %7366 = vmatprep.subr.msk.mxu1 %vm1401_vm1, %v2428_v14 }
 0xb1f   : > { %v7704_v15 = vpop.eup %7703 }
 0xb20   : > { %v2333_v20 = vmul.f32 %v7704_v15, %v7700_v1 }
 0xb23   : > { %v7706_v16 = vpop.eup %7705 }
 0xb24   : > { %v2331_v17 = vmul.f32 %v7706_v16, %v7702_v5 }
 0xb26   : > { %7363 = vmatprep.mubr.msk.f32.mxu1 %vm1499_vm2, %v2331_v17 }
 0xb27   : > { %7364 = vmatmul.mubr.msk.f32.vlgmr.msra.gmra.mxu1 %vm1499_vm2, %v2333_v20 }
 0xb28   : > { %7367 = vmatpush3.xpose.msk.msra.mxu1 %vm1401_vm1, %v2428_v14  ;;  %7370 = vmatprep.mubr.msk.f32.mxu1 %vm1401_vm1, %v2422_v21 }
 0xb29   : > { %7368 = vmatprep.subr.msk.mxu1 %vm1401_vm1, %v2426_v22 }
 0xb2c   : > { %7369 = vmatpush3.xpose.msk.msra.mxu1 %vm1401_vm1, %v2426_v22 }
 0xb2f   : > { %7371 = vmatmul.mubr.msk.f32.vlgmr.msra.gmra.mxu1 %vm1401_vm1, %v2424_v23 }
 0xbe7   : > { %v8461_v24 = vpop.f32.mrf.mxu1 }
 0xbe9   : > { %v8463_v25 = vpop.f32.mrf.mxu1 }
 0xbef   : > { %v7372_v26 = vpop.f32.mrf.mxu1 }
 0xbf0   : > { %v2513_v27 = vmul.f32 0.35355338, %v7372_v26 }
 0xbf1   : > { %v2503_v29 = vpop.f32.mrf.mxu1 }
 0xbf2   : > { %v2512_v30 = vmul.f32 0.35355338, %v2503_v29  ;;  %v2515_v32 = vadd.f32 %v8315_v10, %v2513_v27 }
 0xbf4   : > { %v2519_v33 = vsel %vm1499_vm2, %v2515_v32, -inf  ;;  %v2514_v34 = vadd.f32 %v8315_v10, %v2512_v30 }
 0xbf5   : > { %2520 = vmax.xlane.f32.xlu1 %v2519_v33 }
 0xbf6   : > { %v2516_v35 = vsel %vm1499_vm2, %v2514_v34, -inf }
 0xbf7   : > { %2517 = vmax.xlane.f32.xlu0 %v2516_v35 }
 0xc06   : > { %2538 = vrot.lane.b32.xlu1 %v8302_v4, %s7878_s17 }
 0xc0a   : > { %2631 = vrot.lane.b32.xlu1 %v8241_v28, %s7879_s18 }
 0xc0e   : > { %2629 = vrot.lane.b32.xlu1 %v8245_v31, %s7879_s18 }
 0xc12   : > { %2627 = vrot.lane.b32.xlu1 %v8267_v37, %s7879_s18 }
 0xc7e   : > { %v2521_v36 = vpop.xlane.xlu1 %2520 }
 0xc7f   : > { %v2523_v38 = vsub.f32 %v2515_v32, %v2521_v36 }
 0xc80   : > { %v2518_v46 = vpop.xlane.xlu0 %2517 }
 0xc81   : > { %v2526_v47 = vmul.f32 1.442695, %v2523_v38  ;;  %v2522_v48 = vsub.f32 %v2514_v34, %v2518_v46 }
 0xc82   : > { %v2539_v57 = vpop.permute.xlu1 %2538 }
 0xc83   : > { %7707 = vpow2.f32 %v2526_v47  ;;  %v2524_v49 = vmul.f32 1.442695, %v2522_v48 }
 0xc85   : > { %7709 = vpow2.f32 %v2524_v49 }
 0xc86   : > { %v2632_v63 = vpop.permute.xlu1 %2631 }
 0xc8a   : > { %v2630_v8 = vpop.permute.xlu1 %2629 }
 0xc8e   : > { %v2628_v9 = vpop.permute.xlu1 %2627 }
 0xc90   : > { %v7708_v51 = vpop.eup %7707 }
 0xc91   : > { %v2531_v13 = vsel %vm1499_vm2, %v7708_v51, 0.0 }
 0xc92   : > { %v7710_v53 = vpop.eup %7709  ;;  %2532 = vadd.xlane.f32.xlu0 %v2531_v13 }
 0xc93   : > { %v2528_v54 = vsel %vm1499_vm2, %v7710_v53, 0.0 }
 0xc96   : > { %2529 = vadd.xlane.f32.xlu0 %v2528_v54 }
 0xcac   : > { %2540 = vrot.lane.b32.xlu0 %v8298_v2, %s7878_s17 }
 0xcb0   : > { %2625 = vrot.lane.b32.xlu0 %v8210_v6, %s7879_s18 }
 0xd1b   : > { %v2533_v55 = vpop.xlane.xlu0 %2532 }
 0xd1c   : > { %7711 = vrcp.f32 %v2533_v55 }
 0xd1f   : > { %v2530_v56 = vpop.xlane.xlu0 %2529 }
 0xd20   : > { %7713 = vrcp.f32 %v2530_v56 }
 0xd23   : > { %v2541_v59 = vpop.permute.xlu0 %2540 }
 0xd24   : > { %7373 = vmatprep.subr.mxu0 %v2541_v59 }
 0xd25   : > { %7374 = vmatpush3.msra.mxu0 %v2541_v59 }
 0xd26   : > { %7375 = vmatprep.subr.mxu0 %v2539_v57 }
 0xd27   : > { %7376 = vmatpush3.msra.mxu0 %v2539_v57  ;;  %v2626_v7 = vpop.permute.xlu0 %2625 }
 0xd28   : > { %7380 = vmatprep.subr.msk.mxu0 %vm1401_vm1, %v2632_v63 }
 0xd29   : > { %v7712_v0 = vpop.eup %7711 }
 0xd2a   : > { %v2537_v5 = vmul.f32 %v7712_v0, %v7708_v51 }
 0xd2d   : > { %v7714_v1 = vpop.eup %7713 }
 0xd2e   : > { %v2535_v62 = vmul.f32 %v7714_v1, %v7710_v53 }
 0xd30   : > { %7377 = vmatprep.mubr.msk.f32.mxu0 %vm1499_vm2, %v2535_v62 }
 0xd31   : > { %7378 = vmatmul.mubr.msk.f32.vlgmr.msra.gmra.mxu0 %vm1499_vm2, %v2537_v5 }
 0xd32   : > { %7381 = vmatpush3.xpose.msk.msra.mxu0 %vm1401_vm1, %v2632_v63  ;;  %7384 = vmatprep.mubr.msk.f32.mxu0 %vm1401_vm1, %v2626_v7 }
 0xd33   : > { %7382 = vmatprep.subr.msk.mxu0 %vm1401_vm1, %v2630_v8 }
 0xd36   : > { %7383 = vmatpush3.xpose.msk.msra.mxu0 %vm1401_vm1, %v2630_v8 }
 0xd39   : > { %7385 = vmatmul.mubr.msk.f32.vlgmr.msra.gmra.mxu0 %vm1401_vm1, %v2628_v9 }
 0xdf1   : > { %v8491_v11 = vpop.f32.mrf.mxu0 }
 0xdf3   : > { %v8493_v12 = vpop.f32.mrf.mxu0 }
 0xdf9   : > { %v7386_v14 = vpop.f32.mrf.mxu0 }
 0xdfa   : > { %v2717_v15 = vmul.f32 0.35355338, %v7386_v14 }
 0xdfb   : > { %v2707_v16 = vpop.f32.mrf.mxu0 }
 0xdfc   : > { %v2716_v17 = vmul.f32 0.35355338, %v2707_v16  ;;  %v2719_v20 = vadd.f32 %v8315_v10, %v2717_v15 }
 0xdfe   : > { %v2723_v21 = vsel %vm1499_vm2, %v2719_v20, -inf  ;;  %v2718_v22 = vadd.f32 %v8315_v10, %v2716_v17 }
 0xdff   : > { %2724 = vmax.xlane.f32.xlu1 %v2723_v21 }
 0xe00   : > { %v2720_v23 = vsel %vm1499_vm2, %v2718_v22, -inf }
 0xe01   : > { %2721 = vmax.xlane.f32.xlu0 %v2720_v23 }
 0xe10   : > { %2742 = vrot.lane.b32.xlu1 %v8302_v4, %s7874_s13 }
 0xe14   : > { %2835 = vrot.lane.b32.xlu1 %v8241_v28, %s7880_s19 }
 0xe18   : > { %2833 = vrot.lane.b32.xlu1 %v8245_v31, %s7880_s19 }
 0xe1c   : > { %2831 = vrot.lane.b32.xlu1 %v8267_v37, %s7880_s19 }
 0xe88   : > { %v2725_v26 = vpop.xlane.xlu1 %2724 }
 0xe89   : > { %v2727_v27 = vsub.f32 %v2719_v20, %v2725_v26 }
 0xe8a   : > { %v2722_v29 = vpop.xlane.xlu0 %2721 }
 0xe8b   : > { %v2730_v30 = vmul.f32 1.442695, %v2727_v27  ;;  %v2726_v32 = vsub.f32 %v2718_v22, %v2722_v29 }
 0xe8c   : > { %v2743_v48 = vpop.permute.xlu1 %2742 }
 0xe8d   : > { %7715 = vpow2.f32 %v2730_v30  ;;  %v2728_v33 = vmul.f32 1.442695, %v2726_v32 }
 0xe8f   : > { %7717 = vpow2.f32 %v2728_v33 }
 0xe90   : > { %v2836_v51 = vpop.permute.xlu1 %2835 }
 0xe94   : > { %v2834_v57 = vpop.permute.xlu1 %2833 }
 0xe98   : > { %v2832_v59 = vpop.permute.xlu1 %2831 }
 0xe9a   : > { %v7716_v34 = vpop.eup %7715 }
 0xe9b   : > { %v2735_v35 = vsel %vm1499_vm2, %v7716_v34, 0.0 }
 0xe9c   : > { %v7718_v36 = vpop.eup %7717  ;;  %2736 = vadd.xlane.f32.xlu0 %v2735_v35 }
 0xe9d   : > { %v2732_v38 = vsel %vm1499_vm2, %v7718_v36, 0.0 }
 0xea0   : > { %2733 = vadd.xlane.f32.xlu0 %v2732_v38 }
 0xeb6   : > { %2744 = vrot.lane.b32.xlu0 %v8298_v2, %s7874_s13 }
 0xeba   : > { %2829 = vrot.lane.b32.xlu0 %v8210_v6, %s7880_s19 }
 0xf25   : > { %v2737_v46 = vpop.xlane.xlu0 %2736 }
 0xf26   : > { %7719 = vrcp.f32 %v2737_v46 }
 0xf29   : > { %v2734_v47 = vpop.xlane.xlu0 %2733 }
 0xf2a   : > { %7721 = vrcp.f32 %v2734_v47 }
 0xf2d   : > { %v2745_v49 = vpop.permute.xlu0 %2744 }
 0xf2e   : > { %7387 = vmatprep.subr.mxu1 %v2745_v49 }
 0xf2f   : > { %7388 = vmatpush3.msra.mxu1 %v2745_v49 }
 0xf30   : > { %7389 = vmatprep.subr.mxu1 %v2743_v48 }
 0xf31   : > { %7390 = vmatpush3.msra.mxu1 %v2743_v48  ;;  %v2830_v56 = vpop.permute.xlu0 %2829 }
 0xf32   : > { %7394 = vmatprep.subr.msk.mxu1 %vm1401_vm1, %v2836_v51 }
 0xf33   : > { %v7720_v13 = vpop.eup %7719 }
 0xf34   : > { %v2741_v55 = vmul.f32 %v7720_v13, %v7716_v34 }
 0xf37   : > { %v7722_v53 = vpop.eup %7721 }
 0xf38   : > { %v2739_v54 = vmul.f32 %v7722_v53, %v7718_v36 }
 0xf3a   : > { %7391 = vmatprep.mubr.msk.f32.mxu1 %vm1499_vm2, %v2739_v54 }
 0xf3b   : > { %7392 = vmatmul.mubr.msk.f32.vlgmr.msra.gmra.mxu1 %vm1499_vm2, %v2741_v55 }
 0xf3c   : > { %7395 = vmatpush3.xpose.msk.msra.mxu1 %vm1401_vm1, %v2836_v51  ;;  %7398 = vmatprep.mubr.msk.f32.mxu1 %vm1401_vm1, %v2830_v56 }
 0xf3d   : > { %7396 = vmatprep.subr.msk.mxu1 %vm1401_vm1, %v2834_v57 }
 0xf40   : > { %7397 = vmatpush3.xpose.msk.msra.mxu1 %vm1401_vm1, %v2834_v57 }
 0xf43   : > { %7399 = vmatmul.mubr.msk.f32.vlgmr.msra.gmra.mxu1 %vm1401_vm1, %v2832_v59 }
 0xffb   : > { %v8521_v63 = vpop.f32.mrf.mxu1 }
 0xffd   : > { %v8523_v0 = vpop.f32.mrf.mxu1 }
0x1003   : > { %v7400_v1 = vpop.f32.mrf.mxu1 }
0x1004   : > { %v2921_v62 = vmul.f32 0.35355338, %v7400_v1 }
0x1005   : > { %v2911_v5 = vpop.f32.mrf.mxu1 }
0x1006   : > { %v2920_v7 = vmul.f32 0.35355338, %v2911_v5  ;;  %v2923_v8 = vadd.f32 %v8315_v10, %v2921_v62 }
0x1008   : > { %v2927_v9 = vsel %vm1499_vm2, %v2923_v8, -inf  ;;  %v2922_v14 = vadd.f32 %v8315_v10, %v2920_v7 }
0x1009   : > { %2928 = vmax.xlane.f32.xlu1 %v2927_v9 }
0x100a   : > { %v2924_v15 = vsel %vm1499_vm2, %v2922_v14, -inf }
0x100b   : > { %2925 = vmax.xlane.f32.xlu0 %v2924_v15 }
0x101a   : > { %2946 = vrot.lane.b32.xlu1 %v8302_v4, %s7881_s20 }
0x101e   : > { %3039 = vrot.lane.b32.xlu1 %v8241_v28, %s9231_s24 }
0x1022   : > { %3037 = vrot.lane.b32.xlu1 %v8245_v31, %s9231_s24 }
0x1026   : > { %3035 = vrot.lane.b32.xlu1 %v8267_v37, %s9231_s24 }
0x1092   : > { %v2929_v16 = vpop.xlane.xlu1 %2928 }
0x1093   : > { %v2931_v17 = vsub.f32 %v2923_v8, %v2929_v16 }
0x1094   : > { %v2926_v20 = vpop.xlane.xlu0 %2925 }
0x1095   : > { %v2934_v21 = vmul.f32 1.442695, %v2931_v17  ;;  %v2930_v22 = vsub.f32 %v2922_v14, %v2926_v20 }
0x1096   : > { %v2947_v34 = vpop.permute.xlu1 %2946 }
0x1097   : > { %7723 = vpow2.f32 %v2934_v21  ;;  %v2932_v23 = vmul.f32 1.442695, %v2930_v22 }
0x1099   : > { %7725 = vpow2.f32 %v2932_v23 }
0x109a   : > { %v3040_v36 = vpop.permute.xlu1 %3039 }
0x109e   : > { %v3038_v51 = vpop.permute.xlu1 %3037 }
0x10a2   : > { %v3036_v13 = vpop.permute.xlu1 %3035 }
0x10a4   : > { %v7724_v26 = vpop.eup %7723 }
0x10a5   : > { %v2939_v27 = vsel %vm1499_vm2, %v7724_v26, 0.0 }
0x10a6   : > { %v7726_v29 = vpop.eup %7725  ;;  %2940 = vadd.xlane.f32.xlu0 %v2939_v27 }
0x10a7   : > { %v2936_v30 = vsel %vm1499_vm2, %v7726_v29, 0.0 }
0x10aa   : > { %2937 = vadd.xlane.f32.xlu0 %v2936_v30 }
0x10c0   : > { %2948 = vrot.lane.b32.xlu0 %v8298_v2, %s7881_s20 }
0x10c4   : > { %3033 = vrot.lane.b32.xlu0 %v8210_v6, %s9231_s24  ;;  %s7894_s24 = smov 28  }
0x112f   : > { %v2941_v32 = vpop.xlane.xlu0 %2940 }
0x1130   : > { %7727 = vrcp.f32 %v2941_v32 }
0x1133   : > { %v2938_v33 = vpop.xlane.xlu0 %2937 }
0x1134   : > { %7729 = vrcp.f32 %v2938_v33 }
0x1137   : > { %v2949_v35 = vpop.permute.xlu0 %2948 }
0x1138   : > { %7401 = vmatprep.subr.mxu0 %v2949_v35 }
0x1139   : > { %7402 = vmatpush3.msra.mxu0 %v2949_v35 }
0x113a   : > { %7403 = vmatprep.subr.mxu0 %v2947_v34 }
0x113b   : > { %7404 = vmatpush3.msra.mxu0 %v2947_v34  ;;  %v3034_v49 = vpop.permute.xlu0 %3033 }
0x113c   : > { %7408 = vmatprep.subr.msk.mxu0 %vm1401_vm1, %v3040_v36 }
0x113d   : > { %v7728_v38 = vpop.eup %7727 }
0x113e   : > { %v2945_v48 = vmul.f32 %v7728_v38, %v7724_v26 }
0x1141   : > { %v7730_v46 = vpop.eup %7729 }
0x1142   : > { %v2943_v47 = vmul.f32 %v7730_v46, %v7726_v29 }
0x1144   : > { %7405 = vmatprep.mubr.msk.f32.mxu0 %vm1499_vm2, %v2943_v47 }
0x1145   : > { %7406 = vmatmul.mubr.msk.f32.vlgmr.msra.gmra.mxu0 %vm1499_vm2, %v2945_v48 }
0x1146   : > { %7409 = vmatpush3.xpose.msk.msra.mxu0 %vm1401_vm1, %v3040_v36  ;;  %7412 = vmatprep.mubr.msk.f32.mxu0 %vm1401_vm1, %v3034_v49 }
0x1147   : > { %7410 = vmatprep.subr.msk.mxu0 %vm1401_vm1, %v3038_v51 }
0x114a   : > { %7411 = vmatpush3.xpose.msk.msra.mxu0 %vm1401_vm1, %v3038_v51 }
0x114d   : > { %7413 = vmatmul.mubr.msk.f32.vlgmr.msra.gmra.mxu0 %vm1401_vm1, %v3036_v13 }
0x1205   : > { %v8551_v53 = vpop.f32.mrf.mxu0 }
0x1207   : > { %v8553_v54 = vpop.f32.mrf.mxu0 }
0x120d   : > { %v7414_v55 = vpop.f32.mrf.mxu0 }
0x120e   : > { %v3125_v56 = vmul.f32 0.35355338, %v7414_v55 }
0x120f   : > { %v3115_v57 = vpop.f32.mrf.mxu0 }
0x1210   : > { %v3124_v59 = vmul.f32 0.35355338, %v3115_v57  ;;  %v3127_v1 = vadd.f32 %v8315_v10, %v3125_v56  ;;  %v8586_v56 = vld [vmem:[%s8312_s29] ss:$0 sm:$0xff] }
0x1212   : > { %v3131_v62 = vsel %vm1499_vm2, %v3127_v1, -inf  ;;  %v3126_v5 = vadd.f32 %v8315_v10, %v3124_v59 }
0x1213   : > { %3132 = vmax.xlane.f32.xlu1 %v3131_v62 }
0x1214   : > { %v3128_v7 = vsel %vm1499_vm2, %v3126_v5, -inf }
0x1215   : > { %3129 = vmax.xlane.f32.xlu0 %v3128_v7 }
0x1224   : > { %3150 = vrot.lane.b32.xlu1 %v8302_v4, %s7876_s15 }
0x1228   : > { %3243 = vrot.lane.b32.xlu1 %v8241_v28, %s9227_s25 }
0x122c   : > { %3241 = vrot.lane.b32.xlu1 %v8245_v31, %s9227_s25 }
0x1230   : > { %3239 = vrot.lane.b32.xlu1 %v8267_v37, %s9227_s25 }
0x129c   : > { %v3133_v8 = vpop.xlane.xlu1 %3132 }
0x129d   : > { %v3135_v9 = vsub.f32 %v3127_v1, %v3133_v8 }
0x129e   : > { %v3130_v10 = vpop.xlane.xlu0 %3129 }
0x129f   : > { %v3138_v14 = vmul.f32 1.442695, %v3135_v9  ;;  %v3134_v15 = vsub.f32 %v3126_v5, %v3130_v10 }
0x12a0   : > { %v3151_v27 = vpop.permute.xlu1 %3150 }
0x12a1   : > { %7731 = vpow2.f32 %v3138_v14  ;;  %v3136_v16 = vmul.f32 1.442695, %v3134_v15 }
0x12a3   : > { %7733 = vpow2.f32 %v3136_v16 }
0x12a4   : > { %v3244_v30 = vpop.permute.xlu1 %3243 }
0x12a8   : > { %v3242_v38 = vpop.permute.xlu1 %3241 }
0x12ac   : > { %v3240_v46 = vpop.permute.xlu1 %3239 }
0x12ae   : > { %v7732_v17 = vpop.eup %7731 }
0x12af   : > { %v3143_v20 = vsel %vm1499_vm2, %v7732_v17, 0.0 }
0x12b0   : > { %v7734_v21 = vpop.eup %7733  ;;  %3144 = vadd.xlane.f32.xlu0 %v3143_v20 }
0x12b1   : > { %v3140_v22 = vsel %vm1499_vm2, %v7734_v21, 0.0 }
0x12b4   : > { %3141 = vadd.xlane.f32.xlu0 %v3140_v22 }
0x12ca   : > { %3152 = vrot.lane.b32.xlu0 %v8298_v2, %s7876_s15 }
0x12ce   : > { %3237 = vrot.lane.b32.xlu0 %v8210_v6, %s9227_s25  ;;  %s7895_s25 = smov 32  }
0x1339   : > { %v3145_v23 = vpop.xlane.xlu0 %3144 }
0x133a   : > { %7735 = vrcp.f32 %v3145_v23 }
0x133d   : > { %v3142_v26 = vpop.xlane.xlu0 %3141 }
0x133e   : > { %7737 = vrcp.f32 %v3142_v26 }
0x1341   : > { %v3153_v29 = vpop.permute.xlu0 %3152 }
0x1342   : > { %7415 = vmatprep.subr.mxu1 %v3153_v29 }
0x1343   : > { %7416 = vmatpush3.msra.mxu1 %v3153_v29 }
0x1344   : > { %7417 = vmatprep.subr.mxu1 %v3151_v27 }
0x1345   : > { %7418 = vmatpush3.msra.mxu1 %v3151_v27  ;;  %v3238_v36 = vpop.permute.xlu0 %3237 }
0x1346   : > { %7422 = vmatprep.subr.msk.mxu1 %vm1401_vm1, %v3244_v30 }
0x1347   : > { %v7736_v32 = vpop.eup %7735 }
0x1348   : > { %v3149_v35 = vmul.f32 %v7736_v32, %v7732_v17 }
0x134b   : > { %v7738_v33 = vpop.eup %7737 }
0x134c   : > { %v3147_v34 = vmul.f32 %v7738_v33, %v7734_v21 }
0x134e   : > { %7419 = vmatprep.mubr.msk.f32.mxu1 %vm1499_vm2, %v3147_v34 }
0x134f   : > { %7420 = vmatmul.mubr.msk.f32.vlgmr.msra.gmra.mxu1 %vm1499_vm2, %v3149_v35 }
0x1350   : > { %7423 = vmatpush3.xpose.msk.msra.mxu1 %vm1401_vm1, %v3244_v30  ;;  %7426 = vmatprep.mubr.msk.f32.mxu1 %vm1401_vm1, %v3238_v36 }
0x1351   : > { %7424 = vmatprep.subr.msk.mxu1 %vm1401_vm1, %v3242_v38 }
0x1354   : > { %7425 = vmatpush3.xpose.msk.msra.mxu1 %vm1401_vm1, %v3242_v38 }
0x1357   : > { %7427 = vmatmul.mubr.msk.f32.vlgmr.msra.gmra.mxu1 %vm1401_vm1, %v3240_v46 }
0x140f   : > { %v8581_v47 = vpop.f32.mrf.mxu1 }
0x1411   : > { %v8583_v48 = vpop.f32.mrf.mxu1 }
0x1417   : > { %v7428_v49 = vpop.f32.mrf.mxu1 }
0x1418   : > { %v3329_v51 = vmul.f32 0.35355338, %v7428_v49 }
0x1419   : > { %v3319_v13 = vpop.f32.mrf.mxu1 }
0x141a   : > { %v3328_v55 = vmul.f32 0.35355338, %v3319_v13  ;;  %v3331_v57 = vadd.f32 %v8586_v56, %v3329_v51 }
0x141c   : > { %v3335_v59 = vsel %vm1499_vm2, %v3331_v57, -inf  ;;  %v3330_v1 = vadd.f32 %v8586_v56, %v3328_v55 }
0x141d   : > { %3336 = vmax.xlane.f32.xlu1 %v3335_v59 }
0x141e   : > { %v3332_v62 = vsel %vm1499_vm2, %v3330_v1, -inf }
0x141f   : > { %3333 = vmax.xlane.f32.xlu0 %v3332_v62 }
0x142e   : > { %3354 = vrot.lane.b32.xlu1 %v8302_v4, %s9225_s26 }
0x1432   : > { %3447 = vrot.lane.b32.xlu1 %v8241_v28, %s9221_s27 }
0x1436   : > { %3445 = vrot.lane.b32.xlu1 %v8245_v31, %s9221_s27 }
0x143a   : > { %3443 = vrot.lane.b32.xlu1 %v8267_v37, %s9221_s27 }
0x14a6   : > { %v3337_v5 = vpop.xlane.xlu1 %3336 }
0x14a7   : > { %v3339_v7 = vsub.f32 %v3331_v57, %v3337_v5 }
0x14a8   : > { %v3334_v8 = vpop.xlane.xlu0 %3333 }
0x14a9   : > { %v3342_v9 = vmul.f32 1.442695, %v3339_v7  ;;  %v3338_v10 = vsub.f32 %v3330_v1, %v3334_v8 }
0x14aa   : > { %v3355_v23 = vpop.permute.xlu1 %3354 }
0x14ab   : > { %7739 = vpow2.f32 %v3342_v9  ;;  %v3340_v14 = vmul.f32 1.442695, %v3338_v10 }
0x14ad   : > { %7741 = vpow2.f32 %v3340_v14 }
0x14ae   : > { %v3448_v27 = vpop.permute.xlu1 %3447 }
0x14b2   : > { %v3446_v35 = vpop.permute.xlu1 %3445 }
0x14b6   : > { %v3444_v36 = vpop.permute.xlu1 %3443 }
0x14b8   : > { %v7740_v15 = vpop.eup %7739 }
0x14b9   : > { %v3347_v16 = vsel %vm1499_vm2, %v7740_v15, 0.0 }
0x14ba   : > { %v7742_v17 = vpop.eup %7741  ;;  %3348 = vadd.xlane.f32.xlu0 %v3347_v16 }
0x14bb   : > { %v3344_v20 = vsel %vm1499_vm2, %v7742_v17, 0.0 }
0x14be   : > { %3345 = vadd.xlane.f32.xlu0 %v3344_v20 }
0x14d4   : > { %3356 = vrot.lane.b32.xlu0 %v8298_v2, %s9225_s26  ;;  %s9229_s26 = smov 84  }
0x14d8   : > { %3441 = vrot.lane.b32.xlu0 %v8210_v6, %s9221_s27  ;;  %s9223_s27 = smov 40  }
0x1543   : > { %v3349_v21 = vpop.xlane.xlu0 %3348 }
0x1544   : > { %7743 = vrcp.f32 %v3349_v21 }
0x1547   : > { %v3346_v22 = vpop.xlane.xlu0 %3345 }
0x1548   : > { %7745 = vrcp.f32 %v3346_v22 }
0x154b   : > { %v3357_v26 = vpop.permute.xlu0 %3356 }
0x154c   : > { %7429 = vmatprep.subr.mxu0 %v3357_v26 }
0x154d   : > { %7430 = vmatpush3.msra.mxu0 %v3357_v26 }
0x154e   : > { %7431 = vmatprep.subr.mxu0 %v3355_v23 }
0x154f   : > { %7432 = vmatpush3.msra.mxu0 %v3355_v23  ;;  %v3442_v34 = vpop.permute.xlu0 %3441 }
0x1550   : > { %7436 = vmatprep.subr.msk.mxu0 %vm1401_vm1, %v3448_v27 }
0x1551   : > { %v7744_v29 = vpop.eup %7743 }
0x1552   : > { %v3353_v33 = vmul.f32 %v7744_v29, %v7740_v15 }
0x1555   : > { %v7746_v30 = vpop.eup %7745 }
0x1556   : > { %v3351_v32 = vmul.f32 %v7746_v30, %v7742_v17  ;;  %v6720_v30 = vld [vmem:[%s9216_s8 + $0x1] ss:$0 sm:$0xff] }
0x1558   : > { %7433 = vmatprep.mubr.msk.f32.mxu0 %vm1499_vm2, %v3351_v32 }
0x1559   : > { %7434 = vmatmul.mubr.msk.f32.vlgmr.msra.gmra.mxu0 %vm1499_vm2, %v3353_v33  ;;  %v8646_v33 = vadd.f32 %v8337_v40, %v6720_v30 }
0x155a   : > { %7437 = vmatpush3.xpose.msk.msra.mxu0 %vm1401_vm1, %v3448_v27  ;;  %7440 = vmatprep.mubr.msk.f32.mxu0 %vm1401_vm1, %v3442_v34 }
0x155b   : > { %7438 = vmatprep.subr.msk.mxu0 %vm1401_vm1, %v3446_v35 }
0x155e   : > { %7439 = vmatpush3.xpose.msk.msra.mxu0 %vm1401_vm1, %v3446_v35  ;;  %v8651_v35 = vadd.f32 %v6720_v30, %v8339_v41 }
0x1561   : > { %7441 = vmatmul.mubr.msk.f32.vlgmr.msra.gmra.mxu0 %vm1401_vm1, %v3444_v36 }
0x1619   : > { %v8614_v38 = vpop.f32.mrf.mxu0 }
0x161b   : > { %v8616_v46 = vpop.f32.mrf.mxu0 }
0x1621   : > { %v7442_v49 = vpop.f32.mrf.mxu0 }
0x1622   : > { %v3533_v51 = vmul.f32 0.35355338, %v7442_v49 }
0x1623   : > { %v3523_v13 = vpop.f32.mrf.mxu0 }
0x1624   : > { %v3535_v55 = vadd.f32 %v8586_v56, %v3533_v51  ;;  %v3532_v57 = vmul.f32 0.35355338, %v3523_v13 }
0x1626   : > { %v3539_v59 = vsel %vm1499_vm2, %v3535_v55, -inf  ;;  %v3534_v1 = vadd.f32 %v8586_v56, %v3532_v57 }
0x1627   : > { %3540 = vmax.xlane.f32.xlu1 %v3539_v59 }
0x1628   : > { %v3536_v62 = vsel %vm1499_vm2, %v3534_v1, -inf }
0x1629   : > { %3537 = vmax.xlane.f32.xlu0 %v3536_v62 }
0x1638   : > { %3558 = vrot.lane.b32.xlu1 %v8302_v4, %s7877_s16 }
0x163c   : > { %3651 = vrot.lane.b32.xlu1 %v8241_v28, %s9223_s27 }
0x1640   : > { %3649 = vrot.lane.b32.xlu1 %v8245_v31, %s9223_s27 }
0x1644   : > { %3647 = vrot.lane.b32.xlu1 %v8267_v37, %s9223_s27 }
0x16b0   : > { %v3541_v5 = vpop.xlane.xlu1 %3540 }
0x16b1   : > { %v3543_v7 = vsub.f32 %v3535_v55, %v3541_v5 }
0x16b2   : > { %v3538_v8 = vpop.xlane.xlu0 %3537 }
0x16b3   : > { %v3546_v9 = vmul.f32 1.442695, %v3543_v7  ;;  %v3542_v10 = vsub.f32 %v3534_v1, %v3538_v8 }
0x16b4   : > { %v3559_v20 = vpop.permute.xlu1 %3558 }
0x16b5   : > { %7747 = vpow2.f32 %v3546_v9  ;;  %v3544_v14 = vmul.f32 1.442695, %v3542_v10 }
0x16b7   : > { %7749 = vpow2.f32 %v3544_v14 }
0x16b8   : > { %v3652_v22 = vpop.permute.xlu1 %3651 }
0x16bc   : > { %v3650_v32 = vpop.permute.xlu1 %3649 }
0x16c0   : > { %v3648_v34 = vpop.permute.xlu1 %3647 }
0x16c2   : > { %v7748_v15 = vpop.eup %7747 }
0x16c3   : > { %v3551_v16 = vsel %vm1499_vm2, %v7748_v15, 0.0 }
0x16c4   : > { %v7750_v17 = vpop.eup %7749  ;;  %3552 = vadd.xlane.f32.xlu0 %v3551_v16 }
0x16c5   : > { %v3548_v28 = vsel %vm1499_vm2, %v7750_v17, 0.0 }
0x16c8   : > { %3549 = vadd.xlane.f32.xlu0 %v3548_v28 }
0x16de   : > { %3560 = vrot.lane.b32.xlu0 %v8298_v2, %s7877_s16 }
0x16e2   : > { %3645 = vrot.lane.b32.xlu0 %v8210_v6, %s9223_s27  ;;  %s7897_s27 = smov 44  }
0x174d   : > { %v3553_v31 = vpop.xlane.xlu0 %3552 }
0x174e   : > { %7751 = vrcp.f32 %v3553_v31 }
0x1751   : > { %v3550_v37 = vpop.xlane.xlu0 %3549 }
0x1752   : > { %7753 = vrcp.f32 %v3550_v37 }
0x1755   : > { %v3561_v21 = vpop.permute.xlu0 %3560 }
0x1756   : > { %7443 = vmatprep.subr.mxu1 %v3561_v21 }
0x1757   : > { %7444 = vmatpush3.msra.mxu1 %v3561_v21 }
0x1758   : > { %7445 = vmatprep.subr.mxu1 %v3559_v20 }
0x1759   : > { %7446 = vmatpush3.msra.mxu1 %v3559_v20  ;;  %v3646_v6 = vpop.permute.xlu0 %3645  ;;  %v7860_v20 = vld [vmem:[%s9214_s6 + $0x3] ss:$0 sm:$0xff] }
0x175a   : > { %7450 = vmatprep.subr.msk.mxu1 %vm1401_vm1, %v3652_v22  ;;  %v1209_v21 = vadd.f32 %v7860_v20, %v8335_v39 }
0x175b   : > { %v7752_v23 = vpop.eup %7751 }
0x175c   : > { %v3557_v29 = vmul.f32 %v7752_v23, %v7748_v15  ;;  %v7861_v23 = vld [vmem:[%s9218_s10] sm:$0xff] }
0x175f   : > { %v7754_v26 = vpop.eup %7753 }
0x1760   : > { %v3555_v27 = vmul.f32 %v7754_v26, %v7750_v17  ;;  %v1219_v26 = vmul.f32 %v7861_v23, %v1209_v21 }
0x1762   : > { %7447 = vmatprep.mubr.msk.f32.mxu1 %vm1499_vm2, %v3555_v27 }
0x1763   : > { %7448 = vmatmul.mubr.msk.f32.vlgmr.msra.gmra.mxu1 %vm1499_vm2, %v3557_v29 }
0x1764   : > { %7451 = vmatpush3.xpose.msk.msra.mxu1 %vm1401_vm1, %v3652_v22  ;;  %7454 = vmatprep.mubr.msk.f32.mxu1 %vm1401_vm1, %v3646_v6  ;;  %v8682_v6 = vadd.f32 %v1219_v26, %v8289_v58 }
0x1765   : > { %7452 = vmatprep.subr.msk.mxu1 %vm1401_vm1, %v3650_v32 }
0x1768   : > { %7453 = vmatpush3.xpose.msk.msra.mxu1 %vm1401_vm1, %v3650_v32 }
0x1769   : > { %7471 = vmatprep.subr.mxu1 %v8646_v33 }
0x176b   : > { %7455 = vmatmul.mubr.msk.f32.vlgmr.msra.gmra.mxu1 %vm1401_vm1, %v3648_v34 }
0x176c   : > { %7472 = vmatpush3.msra.mxu1 %v8646_v33 }
0x176d   : > { %7473 = vmatprep.subr.mxu1 %v8651_v35 }
0x176e   : > { %7474 = vmatpush3.msra.mxu1 %v8651_v35 }
0x1823   : > { %v8657_v36 = vpop.f32.mrf.mxu1 }
0x1825   : > { %v8659_v40 = vpop.f32.mrf.mxu1 }
0x182b   : > { %v7456_v49 = vpop.f32.mrf.mxu1 }
0x182c   : > { %v3737_v51 = vmul.f32 0.35355338, %v7456_v49 }
0x182d   : > { %v3727_v13 = vpop.f32.mrf.mxu1 }
0x182e   : > { %v3739_v55 = vadd.f32 %v8586_v56, %v3737_v51  ;;  %v3736_v57 = vmul.f32 0.35355338, %v3727_v13 }
0x1830   : > { %v3738_v41 = vadd.f32 %v8586_v56, %v3736_v57  ;;  %v3743_v59 = vsel %vm1499_vm2, %v3739_v55, -inf }
0x1831   : > { %3744 = vmax.xlane.f32.xlu1 %v3743_v59 }
0x1832   : > { %v3740_v1 = vsel %vm1499_vm2, %v3738_v41, -inf }
0x1833   : > { %3741 = vmax.xlane.f32.xlu0 %v3740_v1 }
0x1842   : > { %3762 = vrot.lane.b32.xlu1 %v8302_v4, %s9229_s26 }
0x18ba   : > { %v3745_v62 = vpop.xlane.xlu1 %3744 }
0x18bb   : > { %v3747_v5 = vsub.f32 %v3739_v55, %v3745_v62 }
0x18bc   : > { %v3742_v7 = vpop.xlane.xlu0 %3741 }
0x18bd   : > { %v3750_v8 = vmul.f32 1.442695, %v3747_v5  ;;  %v3746_v9 = vsub.f32 %v3738_v41, %v3742_v7 }
0x18be   : > { %v3763_v37 = vpop.permute.xlu1 %3762 }
0x18bf   : > { %7755 = vpow2.f32 %v3750_v8  ;;  %v3748_v10 = vmul.f32 1.442695, %v3746_v9 }
0x18c1   : > { %7757 = vpow2.f32 %v3748_v10 }
0x18cc   : > { %v7756_v14 = vpop.eup %7755 }
0x18cd   : > { %v3755_v15 = vsel %vm1499_vm2, %v7756_v14, 0.0 }
0x18ce   : > { %v7758_v16 = vpop.eup %7757  ;;  %3756 = vadd.xlane.f32.xlu0 %v3755_v15 }
0x18cf   : > { %v3752_v17 = vsel %vm1499_vm2, %v7758_v16, 0.0 }
0x18d2   : > { %3753 = vadd.xlane.f32.xlu0 %v3752_v17 }
0x18e8   : > { %3764 = vrot.lane.b32.xlu0 %v8298_v2, %s9229_s26  ;;  %s7896_s26 = smov 36  }
0x1957   : > { %v3757_v4 = vpop.xlane.xlu0 %3756 }
0x1958   : > { %7759 = vrcp.f32 %v3757_v4 }
0x195b   : > { %v3754_v28 = vpop.xlane.xlu0 %3753 }
0x195c   : > { %7761 = vrcp.f32 %v3754_v28 }
0x195f   : > { %v3765_v31 = vpop.permute.xlu0 %3764 }
0x1960   : > { %7457 = vmatprep.subr.mxu0 %v3765_v31 }
0x1961   : > { %7458 = vmatpush3.msra.mxu0 %v3765_v31 }
0x1962   : > { %7459 = vmatprep.subr.mxu0 %v3763_v37 }
0x1963   : > { %7460 = vmatpush3.msra.mxu0 %v3763_v37 }
0x1964   : > { %7464 = vmatprep.subr.msk.mxu0 %vm1401_vm1, %v8300_v3 }
0x1965   : > { %v7760_v2 = vpop.eup %7759 }
0x1966   : > { %v3761_v29 = vmul.f32 %v7760_v2, %v7756_v14 }
0x1969   : > { %v7762_v22 = vpop.eup %7761 }
0x196a   : > { %v3759_v27 = vmul.f32 %v7762_v22, %v7758_v16 }
0x196c   : > { %7461 = vmatprep.mubr.msk.f32.mxu0 %vm1499_vm2, %v3759_v27 }
0x196d   : > { %7462 = vmatmul.mubr.msk.f32.vlgmr.msra.gmra.mxu0 %vm1499_vm2, %v3761_v29 }
0x196e   : > { %7465 = vmatpush3.xpose.msk.msra.mxu0 %vm1401_vm1, %v8300_v3  ;;  %7468 = vmatprep.mubr.msk.f32.mxu0 %vm1401_vm1, %v8283_v52 }
0x196f   : > { %7466 = vmatprep.subr.msk.mxu0 %vm1401_vm1, %v8682_v6 }
0x1972   : > { %7467 = vmatpush3.xpose.msk.msra.mxu0 %vm1401_vm1, %v8682_v6 }
0x1975   : > { %7469 = vmatmul.mubr.msk.f32.vlgmr.msra.gmra.mxu0 %vm1401_vm1, %v8280_v50 }
0x1a2d   : > { %v8695_v39 = vpop.f32.mrf.mxu0 }
0x1a2f   : > { %v8697_v58 = vpop.f32.mrf.mxu0 }
0x1a35   : > { %v7470_v30 = vpop.f32.mrf.mxu0 }
0x1a36   : > { %v4058_v32 = vmul.f32 0.35355338, %v7470_v30 }
0x1a37   : > { %v4048_v34 = vpop.f32.mrf.mxu0 }
0x1a38   : > { %v4060_v49 = vadd.f32 %v8586_v56, %v4058_v32  ;;  %v4057_v51 = vmul.f32 0.35355338, %v4048_v34 }
0x1a3a   : > { %v4059_v13 = vadd.f32 %v8586_v56, %v4057_v51  ;;  %v4064_v55 = vsel %vm1499_vm2, %v4060_v49, -inf }
0x1a3b   : > { %4065 = vmax.xlane.f32.xlu0 %v4064_v55 }
0x1a3c   : > { %v4061_v57 = vsel %vm1499_vm2, %v4059_v13, -inf }
0x1a3d   : > { %4062 = vmax.xlane.f32.xlu1 %v4061_v57 }
0x1ac4   : > { %v4066_v41 = vpop.xlane.xlu0 %4065 }
0x1ac5   : > { %v4068_v59 = vsub.f32 %v4060_v49, %v4066_v41 }
0x1ac6   : > { %v4063_v1 = vpop.xlane.xlu1 %4062 }
0x1ac7   : > { %v4071_v62 = vmul.f32 1.442695, %v4068_v59  ;;  %v4067_v5 = vsub.f32 %v4059_v13, %v4063_v1 }
0x1ac9   : > { %7763 = vpow2.f32 %v4071_v62  ;;  %v4069_v7 = vmul.f32 1.442695, %v4067_v5 }
0x1acb   : > { %7765 = vpow2.f32 %v4069_v7 }
0x1ad6   : > { %v7764_v8 = vpop.eup %7763 }
0x1ad7   : > { %v4076_v9 = vsel %vm1499_vm2, %v7764_v8, 0.0 }
0x1ad8   : > { %v7766_v10 = vpop.eup %7765  ;;  %4077 = vadd.xlane.f32.xlu1 %v4076_v9 }
0x1ad9   : > { %v4073_v14 = vsel %vm1499_vm2, %v7766_v10, 0.0 }
0x1ada   : > { %4074 = vadd.xlane.f32.xlu0 %v4073_v14 }
0x1ae9   : > { %4168 = vrot.lane.b32.xlu1 %v8682_v6, %s7871_s28 }
0x1aed   : > { %4164 = vrot.lane.b32.xlu1 %v8283_v52, %s7871_s28 }
0x1af0   : > { %4170 = vrot.lane.b32.xlu0 %v8300_v3, %s7871_s28 }
0x1af1   : > { %4166 = vrot.lane.b32.xlu1 %v8280_v50, %s7871_s28 }
0x1b61   : > { %v4078_v15 = vpop.xlane.xlu1 %4077 }
0x1b62   : > { %7767 = vrcp.f32 %v4078_v15 }
0x1b63   : > { %v4075_v16 = vpop.xlane.xlu0 %4074 }
0x1b64   : > { %7769 = vrcp.f32 %v4075_v16 }
0x1b65   : > { %v4169_v4 = vpop.permute.xlu1 %4168 }
0x1b67   : > { %v4171_v17 = vpop.permute.xlu0 %4170 }
0x1b68   : > { %7478 = vmatprep.subr.msk.mxu1 %vm1401_vm1, %v4171_v17 }
0x1b69   : > { %v4165_v21 = vpop.permute.xlu1 %4164 }
0x1b6d   : > { %v4167_v2 = vpop.permute.xlu1 %4166 }
0x1b6f   : > { %v7768_v28 = vpop.eup %7767 }
0x1b70   : > { %v4082_v20 = vmul.f32 %v7768_v28, %v7764_v8 }
0x1b71   : > { %v7770_v31 = vpop.eup %7769 }
0x1b72   : > { %v4080_v37 = vmul.f32 %v7770_v31, %v7766_v10 }
0x1b74   : > { %7475 = vmatprep.mubr.msk.f32.mxu1 %vm1499_vm2, %v4080_v37 }
0x1b75   : > { %7476 = vmatmul.mubr.msk.f32.vlgmr.msra.gmra.mxu1 %vm1499_vm2, %v4082_v20 }
0x1b76   : > { %7479 = vmatpush3.xpose.msk.msra.mxu1 %vm1401_vm1, %v4171_v17  ;;  %7482 = vmatprep.mubr.msk.f32.mxu1 %vm1401_vm1, %v4165_v21 }
0x1b77   : > { %7480 = vmatprep.subr.msk.mxu1 %vm1401_vm1, %v4169_v4 }
0x1b7a   : > { %7481 = vmatpush3.xpose.msk.msra.mxu1 %vm1401_vm1, %v4169_v4 }
0x1b7d   : > { %7483 = vmatmul.mubr.msk.f32.vlgmr.msra.gmra.mxu1 %vm1401_vm1, %v4167_v2 }
0x1c35   : > { %v8721_v22 = vpop.f32.mrf.mxu1 }
0x1c37   : > { %v8723_v23 = vpop.f32.mrf.mxu1 }
0x1c3d   : > { %v7484_v26 = vpop.f32.mrf.mxu1 }
0x1c3e   : > { %v4256_v27 = vmul.f32 0.35355338, %v7484_v26 }
0x1c3f   : > { %v4246_v29 = vpop.f32.mrf.mxu1 }
0x1c40   : > { %v4258_v30 = vadd.f32 %v8586_v56, %v4256_v27  ;;  %v4255_v32 = vmul.f32 0.35355338, %v4246_v29 }
0x1c42   : > { %v4257_v34 = vadd.f32 %v8586_v56, %v4255_v32  ;;  %v4262_v49 = vsel %vm1499_vm2, %v4258_v30, -inf }
0x1c43   : > { %4263 = vmax.xlane.f32.xlu1 %v4262_v49 }
0x1c44   : > { %v4259_v51 = vsel %vm1499_vm2, %v4257_v34, -inf }
0x1c45   : > { %4260 = vmax.xlane.f32.xlu0 %v4259_v51 }
0x1c54   : > { %4283 = vrot.lane.b32.xlu1 %v8651_v35, %s7872_s22 }
0x1c58   : > { %4376 = vrot.lane.b32.xlu1 %v8300_v3, %s7873_s30 }
0x1c5c   : > { %4374 = vrot.lane.b32.xlu1 %v8682_v6, %s7873_s30 }
0x1c60   : > { %4372 = vrot.lane.b32.xlu1 %v8280_v50, %s7873_s30 }
0x1ccc   : > { %v4264_v13 = vpop.xlane.xlu1 %4263 }
0x1ccd   : > { %v4266_v55 = vsub.f32 %v4258_v30, %v4264_v13 }
0x1cce   : > { %v4261_v57 = vpop.xlane.xlu0 %4260 }
0x1ccf   : > { %v4269_v41 = vmul.f32 1.442695, %v4266_v55  ;;  %v4265_v59 = vsub.f32 %v4257_v34, %v4261_v57 }
0x1cd0   : > { %v4284_v14 = vpop.permute.xlu1 %4283 }
0x1cd1   : > { %7771 = vpow2.f32 %v4269_v41  ;;  %v4267_v1 = vmul.f32 1.442695, %v4265_v59 }
0x1cd3   : > { %7773 = vpow2.f32 %v4267_v1 }
0x1cd4   : > { %v4377_v16 = vpop.permute.xlu1 %4376 }
0x1cd8   : > { %v4375_v20 = vpop.permute.xlu1 %4374 }
0x1cdc   : > { %v4373_v21 = vpop.permute.xlu1 %4372 }
0x1cde   : > { %v7772_v62 = vpop.eup %7771 }
0x1cdf   : > { %v4274_v5 = vsel %vm1499_vm2, %v7772_v62, 0.0 }
0x1ce0   : > { %v7774_v7 = vpop.eup %7773  ;;  %4275 = vadd.xlane.f32.xlu0 %v4274_v5 }
0x1ce1   : > { %v4271_v8 = vsel %vm1499_vm2, %v7774_v7, 0.0 }
0x1ce4   : > { %4272 = vadd.xlane.f32.xlu0 %v4271_v8 }
0x1cfa   : > { %4285 = vrot.lane.b32.xlu0 %v8646_v33, %s7872_s22  ;;  %s9235_s22 = smov 92  }
0x1cfe   : > { %4370 = vrot.lane.b32.xlu0 %v8283_v52, %s7873_s30 }
0x1d69   : > { %v4276_v9 = vpop.xlane.xlu0 %4275 }
0x1d6a   : > { %7775 = vrcp.f32 %v4276_v9 }
0x1d6d   : > { %v4273_v10 = vpop.xlane.xlu0 %4272 }
0x1d6e   : > { %7777 = vrcp.f32 %v4273_v10 }
0x1d71   : > { %v4286_v15 = vpop.permute.xlu0 %4285 }
0x1d72   : > { %7485 = vmatprep.subr.mxu0 %v4286_v15 }
0x1d73   : > { %7486 = vmatpush3.msra.mxu0 %v4286_v15 }
0x1d74   : > { %7487 = vmatprep.subr.mxu0 %v4284_v14 }
0x1d75   : > { %7488 = vmatpush3.msra.mxu0 %v4284_v14  ;;  %v4371_v37 = vpop.permute.xlu0 %4370 }
0x1d76   : > { %7492 = vmatprep.subr.msk.mxu0 %vm1401_vm1, %v4377_v16 }
0x1d77   : > { %v7776_v17 = vpop.eup %7775 }
0x1d78   : > { %v4280_v31 = vmul.f32 %v7776_v17, %v7772_v62 }
0x1d7b   : > { %v7778_v4 = vpop.eup %7777 }
0x1d7c   : > { %v4278_v28 = vmul.f32 %v7778_v4, %v7774_v7 }
0x1d7e   : > { %7489 = vmatprep.mubr.msk.f32.mxu0 %vm1499_vm2, %v4278_v28 }
0x1d7f   : > { %7490 = vmatmul.mubr.msk.f32.vlgmr.msra.gmra.mxu0 %vm1499_vm2, %v4280_v31 }
0x1d80   : > { %7493 = vmatpush3.xpose.msk.msra.mxu0 %vm1401_vm1, %v4377_v16  ;;  %7496 = vmatprep.mubr.msk.f32.mxu0 %vm1401_vm1, %v4371_v37 }
0x1d81   : > { %7494 = vmatprep.subr.msk.mxu0 %vm1401_vm1, %v4375_v20 }
0x1d84   : > { %7495 = vmatpush3.xpose.msk.msra.mxu0 %vm1401_vm1, %v4375_v20 }
0x1d87   : > { %7497 = vmatmul.mubr.msk.f32.vlgmr.msra.gmra.mxu0 %vm1401_vm1, %v4373_v21 }
0x1e3f   : > { %v8751_v2 = vpop.f32.mrf.mxu0 }
0x1e41   : > { %v8753_v26 = vpop.f32.mrf.mxu0 }
0x1e47   : > { %v7498_v27 = vpop.f32.mrf.mxu0 }
0x1e48   : > { %v4462_v29 = vmul.f32 0.35355338, %v7498_v27 }
0x1e49   : > { %v4452_v30 = vpop.f32.mrf.mxu0 }
0x1e4a   : > { %v4464_v32 = vadd.f32 %v8586_v56, %v4462_v29  ;;  %v4461_v34 = vmul.f32 0.35355338, %v4452_v30 }
0x1e4c   : > { %v4463_v49 = vadd.f32 %v8586_v56, %v4461_v34  ;;  %v4468_v51 = vsel %vm1499_vm2, %v4464_v32, -inf }
0x1e4d   : > { %4469 = vmax.xlane.f32.xlu1 %v4468_v51 }
0x1e4e   : > { %v4465_v13 = vsel %vm1499_vm2, %v4463_v49, -inf }
0x1e4f   : > { %4466 = vmax.xlane.f32.xlu0 %v4465_v13 }
0x1e5e   : > { %4487 = vrot.lane.b32.xlu1 %v8651_v35, %s7871_s28 }
0x1e62   : > { %4580 = vrot.lane.b32.xlu1 %v8300_v3, %s7874_s13 }
0x1e66   : > { %4578 = vrot.lane.b32.xlu1 %v8682_v6, %s7874_s13 }
0x1e6a   : > { %4576 = vrot.lane.b32.xlu1 %v8280_v50, %s7874_s13 }
0x1ed6   : > { %v4470_v55 = vpop.xlane.xlu1 %4469 }
0x1ed7   : > { %v4472_v57 = vsub.f32 %v4464_v32, %v4470_v55 }
0x1ed8   : > { %v4467_v41 = vpop.xlane.xlu0 %4466 }
0x1ed9   : > { %v4475_v59 = vmul.f32 1.442695, %v4472_v57  ;;  %v4471_v1 = vsub.f32 %v4463_v49, %v4467_v41 }
0x1eda   : > { %v4488_v15 = vpop.permute.xlu1 %4487 }
0x1edb   : > { %7779 = vpow2.f32 %v4475_v59  ;;  %v4473_v62 = vmul.f32 1.442695, %v4471_v1 }
0x1edd   : > { %7781 = vpow2.f32 %v4473_v62 }
0x1ede   : > { %v4581_v17 = vpop.permute.xlu1 %4580 }
0x1ee2   : > { %v4579_v21 = vpop.permute.xlu1 %4578 }
0x1ee6   : > { %v4577_v27 = vpop.permute.xlu1 %4576 }
0x1ee8   : > { %v7780_v5 = vpop.eup %7779 }
0x1ee9   : > { %v4480_v7 = vsel %vm1499_vm2, %v7780_v5, 0.0 }
0x1eea   : > { %v7782_v8 = vpop.eup %7781  ;;  %4481 = vadd.xlane.f32.xlu0 %v4480_v7 }
0x1eeb   : > { %v4477_v9 = vsel %vm1499_vm2, %v7782_v8, 0.0 }
0x1eee   : > { %4478 = vadd.xlane.f32.xlu0 %v4477_v9 }
0x1f04   : > { %4489 = vrot.lane.b32.xlu0 %v8646_v33, %s7871_s28  ;;  %s9233_s28 = smov 64  }
0x1f08   : > { %4574 = vrot.lane.b32.xlu0 %v8283_v52, %s7874_s13 }
0x1f73   : > { %v4482_v10 = vpop.xlane.xlu0 %4481 }
0x1f74   : > { %7783 = vrcp.f32 %v4482_v10 }
0x1f77   : > { %v4479_v14 = vpop.xlane.xlu0 %4478 }
0x1f78   : > { %7785 = vrcp.f32 %v4479_v14 }
0x1f7b   : > { %v4490_v16 = vpop.permute.xlu0 %4489 }
0x1f7c   : > { %7499 = vmatprep.subr.mxu1 %v4490_v16 }
0x1f7d   : > { %7500 = vmatpush3.msra.mxu1 %v4490_v16 }
0x1f7e   : > { %7501 = vmatprep.subr.mxu1 %v4488_v15 }
0x1f7f   : > { %7502 = vmatpush3.msra.mxu1 %v4488_v15  ;;  %v4575_v20 = vpop.permute.xlu0 %4574 }
0x1f80   : > { %7506 = vmatprep.subr.msk.mxu1 %vm1401_vm1, %v4581_v17 }
0x1f81   : > { %v7784_v4 = vpop.eup %7783 }
0x1f82   : > { %v4486_v37 = vmul.f32 %v7784_v4, %v7780_v5 }
0x1f85   : > { %v7786_v28 = vpop.eup %7785 }
0x1f86   : > { %v4484_v31 = vmul.f32 %v7786_v28, %v7782_v8 }
0x1f88   : > { %7503 = vmatprep.mubr.msk.f32.mxu1 %vm1499_vm2, %v4484_v31 }
0x1f89   : > { %7504 = vmatmul.mubr.msk.f32.vlgmr.msra.gmra.mxu1 %vm1499_vm2, %v4486_v37 }
0x1f8a   : > { %7507 = vmatpush3.xpose.msk.msra.mxu1 %vm1401_vm1, %v4581_v17  ;;  %7510 = vmatprep.mubr.msk.f32.mxu1 %vm1401_vm1, %v4575_v20 }
0x1f8b   : > { %7508 = vmatprep.subr.msk.mxu1 %vm1401_vm1, %v4579_v21 }
0x1f8e   : > { %7509 = vmatpush3.xpose.msk.msra.mxu1 %vm1401_vm1, %v4579_v21 }
0x1f91   : > { %7511 = vmatmul.mubr.msk.f32.vlgmr.msra.gmra.mxu1 %vm1401_vm1, %v4577_v27 }
0x2049   : > { %v8781_v29 = vpop.f32.mrf.mxu1 }
0x204b   : > { %v8783_v30 = vpop.f32.mrf.mxu1 }
0x2051   : > { %v7512_v32 = vpop.f32.mrf.mxu1 }
0x2052   : > { %v4666_v34 = vmul.f32 0.35355338, %v7512_v32 }
0x2053   : > { %v4656_v49 = vpop.f32.mrf.mxu1 }
0x2054   : > { %v4668_v51 = vadd.f32 %v8586_v56, %v4666_v34  ;;  %v4665_v13 = vmul.f32 0.35355338, %v4656_v49 }
0x2056   : > { %v4667_v55 = vadd.f32 %v8586_v56, %v4665_v13  ;;  %v4672_v57 = vsel %vm1499_vm2, %v4668_v51, -inf }
0x2057   : > { %4673 = vmax.xlane.f32.xlu1 %v4672_v57 }
0x2058   : > { %v4669_v41 = vsel %vm1499_vm2, %v4667_v55, -inf }
0x2059   : > { %4670 = vmax.xlane.f32.xlu0 %v4669_v41 }
0x2068   : > { %4691 = vrot.lane.b32.xlu1 %v8651_v35, %s7875_s14 }
0x206c   : > { %4784 = vrot.lane.b32.xlu1 %v8300_v3, %s7876_s15 }
0x2070   : > { %4782 = vrot.lane.b32.xlu1 %v8682_v6, %s7876_s15 }
0x2074   : > { %4780 = vrot.lane.b32.xlu1 %v8280_v50, %s7876_s15 }
0x20e0   : > { %v4674_v59 = vpop.xlane.xlu1 %4673 }
0x20e1   : > { %v4676_v1 = vsub.f32 %v4668_v51, %v4674_v59 }
0x20e2   : > { %v4671_v62 = vpop.xlane.xlu0 %4670 }
0x20e3   : > { %v4679_v5 = vmul.f32 1.442695, %v4676_v1  ;;  %v4675_v7 = vsub.f32 %v4667_v55, %v4671_v62 }
0x20e4   : > { %v4692_v4 = vpop.permute.xlu1 %4691 }
0x20e5   : > { %7787 = vpow2.f32 %v4679_v5  ;;  %v4677_v8 = vmul.f32 1.442695, %v4675_v7 }
0x20e7   : > { %7789 = vpow2.f32 %v4677_v8 }
0x20e8   : > { %v4785_v31 = vpop.permute.xlu1 %4784 }
0x20ec   : > { %v4783_v34 = vpop.permute.xlu1 %4782 }
0x20f0   : > { %v4781_v49 = vpop.permute.xlu1 %4780 }
0x20f2   : > { %v7788_v9 = vpop.eup %7787 }
0x20f3   : > { %v4684_v10 = vsel %vm1499_vm2, %v7788_v9, 0.0 }
0x20f4   : > { %v7790_v14 = vpop.eup %7789  ;;  %4685 = vadd.xlane.f32.xlu0 %v4684_v10 }
0x20f5   : > { %v4681_v15 = vsel %vm1499_vm2, %v7790_v14, 0.0 }
0x20f8   : > { %4682 = vadd.xlane.f32.xlu0 %v4681_v15 }
0x210e   : > { %4693 = vrot.lane.b32.xlu0 %v8646_v33, %s7875_s14  ;;  %s9238_s14 = smov 84  }
0x2112   : > { %4778 = vrot.lane.b32.xlu0 %v8283_v52, %s7876_s15 }
0x217d   : > { %v4686_v16 = vpop.xlane.xlu0 %4685 }
0x217e   : > { %7791 = vrcp.f32 %v4686_v16 }
0x2181   : > { %v4683_v17 = vpop.xlane.xlu0 %4682 }
0x2182   : > { %7793 = vrcp.f32 %v4683_v17 }
0x2185   : > { %v4694_v28 = vpop.permute.xlu0 %4693 }
0x2186   : > { %7513 = vmatprep.subr.mxu0 %v4694_v28 }
0x2187   : > { %7514 = vmatpush3.msra.mxu0 %v4694_v28 }
0x2188   : > { %7515 = vmatprep.subr.mxu0 %v4692_v4 }
0x2189   : > { %7516 = vmatpush3.msra.mxu0 %v4692_v4  ;;  %v4779_v32 = vpop.permute.xlu0 %4778 }
0x218a   : > { %7520 = vmatprep.subr.msk.mxu0 %vm1401_vm1, %v4785_v31 }
0x218b   : > { %v7792_v37 = vpop.eup %7791 }
0x218c   : > { %v4690_v27 = vmul.f32 %v7792_v37, %v7788_v9 }
0x218f   : > { %v7794_v20 = vpop.eup %7793 }
0x2190   : > { %v4688_v21 = vmul.f32 %v7794_v20, %v7790_v14 }
0x2192   : > { %7517 = vmatprep.mubr.msk.f32.mxu0 %vm1499_vm2, %v4688_v21 }
0x2193   : > { %7518 = vmatmul.mubr.msk.f32.vlgmr.msra.gmra.mxu0 %vm1499_vm2, %v4690_v27 }
0x2194   : > { %7521 = vmatpush3.xpose.msk.msra.mxu0 %vm1401_vm1, %v4785_v31  ;;  %7524 = vmatprep.mubr.msk.f32.mxu0 %vm1401_vm1, %v4779_v32 }
0x2195   : > { %7522 = vmatprep.subr.msk.mxu0 %vm1401_vm1, %v4783_v34 }
0x2198   : > { %7523 = vmatpush3.xpose.msk.msra.mxu0 %vm1401_vm1, %v4783_v34 }
0x219b   : > { %7525 = vmatmul.mubr.msk.f32.vlgmr.msra.gmra.mxu0 %vm1401_vm1, %v4781_v49 }
0x2253   : > { %v8811_v51 = vpop.f32.mrf.mxu0 }
0x2255   : > { %v8813_v13 = vpop.f32.mrf.mxu0 }
0x225b   : > { %v7526_v55 = vpop.f32.mrf.mxu0 }
0x225c   : > { %v4870_v57 = vmul.f32 0.35355338, %v7526_v55 }
0x225d   : > { %v4860_v41 = vpop.f32.mrf.mxu0 }
0x225e   : > { %v4872_v59 = vadd.f32 %v8586_v56, %v4870_v57  ;;  %v4869_v1 = vmul.f32 0.35355338, %v4860_v41 }
0x2260   : > { %v4871_v62 = vadd.f32 %v8586_v56, %v4869_v1  ;;  %v4876_v5 = vsel %vm1499_vm2, %v4872_v59, -inf }
0x2261   : > { %4877 = vmax.xlane.f32.xlu1 %v4876_v5 }
0x2262   : > { %v4873_v7 = vsel %vm1499_vm2, %v4871_v62, -inf }
0x2263   : > { %4874 = vmax.xlane.f32.xlu0 %v4873_v7 }
0x2272   : > { %4895 = vrot.lane.b32.xlu1 %v8651_v35, %s7873_s30 }
0x2276   : > { %4988 = vrot.lane.b32.xlu1 %v8300_v3, %s7877_s16 }
0x227a   : > { %4986 = vrot.lane.b32.xlu1 %v8682_v6, %s7877_s16 }
0x227e   : > { %4984 = vrot.lane.b32.xlu1 %v8280_v50, %s7877_s16 }
0x22ea   : > { %v4878_v8 = vpop.xlane.xlu1 %4877 }
0x22eb   : > { %v4880_v9 = vsub.f32 %v4872_v59, %v4878_v8 }
0x22ec   : > { %v4875_v10 = vpop.xlane.xlu0 %4874 }
0x22ed   : > { %v4883_v14 = vmul.f32 1.442695, %v4880_v9  ;;  %v4879_v15 = vsub.f32 %v4871_v62, %v4875_v10 }
0x22ee   : > { %v4896_v21 = vpop.permute.xlu1 %4895 }
0x22ef   : > { %7795 = vpow2.f32 %v4883_v14  ;;  %v4881_v16 = vmul.f32 1.442695, %v4879_v15 }
0x22f1   : > { %7797 = vpow2.f32 %v4881_v16 }
0x22f2   : > { %v4989_v32 = vpop.permute.xlu1 %4988 }
0x22f6   : > { %v4987_v59 = vpop.permute.xlu1 %4986 }
0x22fa   : > { %v4985_v1 = vpop.permute.xlu1 %4984 }
0x22fc   : > { %v7796_v17 = vpop.eup %7795 }
0x22fd   : > { %v4888_v4 = vsel %vm1499_vm2, %v7796_v17, 0.0 }
0x22fe   : > { %v7798_v28 = vpop.eup %7797  ;;  %4889 = vadd.xlane.f32.xlu0 %v4888_v4 }
0x22ff   : > { %v4885_v31 = vsel %vm1499_vm2, %v7798_v28, 0.0 }
0x2302   : > { %4886 = vadd.xlane.f32.xlu0 %v4885_v31 }
0x2318   : > { %4897 = vrot.lane.b32.xlu0 %v8646_v33, %s7873_s30  ;;  %s9236_s30 = smov 48  }
0x231c   : > { %4982 = vrot.lane.b32.xlu0 %v8283_v52, %s7877_s16 }
0x2387   : > { %v4890_v37 = vpop.xlane.xlu0 %4889 }
0x2388   : > { %7799 = vrcp.f32 %v4890_v37 }
0x238b   : > { %v4887_v20 = vpop.xlane.xlu0 %4886 }
0x238c   : > { %7801 = vrcp.f32 %v4887_v20 }
0x238f   : > { %v4898_v27 = vpop.permute.xlu0 %4897 }
0x2390   : > { %7527 = vmatprep.subr.mxu1 %v4898_v27 }
0x2391   : > { %7528 = vmatpush3.msra.mxu1 %v4898_v27 }
0x2392   : > { %7529 = vmatprep.subr.mxu1 %v4896_v21 }
0x2393   : > { %7530 = vmatpush3.msra.mxu1 %v4896_v21  ;;  %v4983_v41 = vpop.permute.xlu0 %4982 }
0x2394   : > { %7534 = vmatprep.subr.msk.mxu1 %vm1401_vm1, %v4989_v32 }
0x2395   : > { %v7800_v34 = vpop.eup %7799 }
0x2396   : > { %v4894_v57 = vmul.f32 %v7800_v34, %v7796_v17 }
0x2399   : > { %v7802_v49 = vpop.eup %7801 }
0x239a   : > { %v4892_v55 = vmul.f32 %v7802_v49, %v7798_v28 }
0x239c   : > { %7531 = vmatprep.mubr.msk.f32.mxu1 %vm1499_vm2, %v4892_v55 }
0x239d   : > { %7532 = vmatmul.mubr.msk.f32.vlgmr.msra.gmra.mxu1 %vm1499_vm2, %v4894_v57 }
0x239e   : > { %7535 = vmatpush3.xpose.msk.msra.mxu1 %vm1401_vm1, %v4989_v32  ;;  %7538 = vmatprep.mubr.msk.f32.mxu1 %vm1401_vm1, %v4983_v41 }
0x239f   : > { %7536 = vmatprep.subr.msk.mxu1 %vm1401_vm1, %v4987_v59 }
0x23a2   : > { %7537 = vmatpush3.xpose.msk.msra.mxu1 %vm1401_vm1, %v4987_v59 }
0x23a5   : > { %7539 = vmatmul.mubr.msk.f32.vlgmr.msra.gmra.mxu1 %vm1401_vm1, %v4985_v1 }
0x245d   : > { %v8841_v62 = vpop.f32.mrf.mxu1 }
0x245f   : > { %v8843_v5 = vpop.f32.mrf.mxu1 }
0x2465   : > { %v7540_v7 = vpop.f32.mrf.mxu1 }
0x2466   : > { %v5074_v8 = vmul.f32 0.35355338, %v7540_v7 }
0x2467   : > { %v5064_v9 = vpop.f32.mrf.mxu1 }
0x2468   : > { %v5076_v10 = vadd.f32 %v8586_v56, %v5074_v8  ;;  %v5073_v14 = vmul.f32 0.35355338, %v5064_v9 }
0x246a   : > { %v5075_v15 = vadd.f32 %v8586_v56, %v5073_v14  ;;  %v5080_v16 = vsel %vm1499_vm2, %v5076_v10, -inf }
0x246b   : > { %5081 = vmax.xlane.f32.xlu1 %v5080_v16 }
0x246c   : > { %v5077_v17 = vsel %vm1499_vm2, %v5075_v15, -inf }
0x246d   : > { %5078 = vmax.xlane.f32.xlu0 %v5077_v17 }
0x247c   : > { %5099 = vrot.lane.b32.xlu1 %v8651_v35, %s7878_s17 }
0x2480   : > { %5192 = vrot.lane.b32.xlu1 %v8300_v3, %s7879_s18 }
0x2484   : > { %5190 = vrot.lane.b32.xlu1 %v8682_v6, %s7879_s18 }
0x2488   : > { %5188 = vrot.lane.b32.xlu1 %v8280_v50, %s7879_s18 }
0x24f4   : > { %v5082_v4 = vpop.xlane.xlu1 %5081 }
0x24f5   : > { %v5084_v56 = vsub.f32 %v5076_v10, %v5082_v4 }
0x24f6   : > { %v5079_v28 = vpop.xlane.xlu0 %5078 }
0x24f7   : > { %v5087_v31 = vmul.f32 1.442695, %v5084_v56  ;;  %v5083_v37 = vsub.f32 %v5075_v15, %v5079_v28 }
0x24f8   : > { %v5100_v57 = vpop.permute.xlu1 %5099 }
0x24f9   : > { %7803 = vpow2.f32 %v5087_v31  ;;  %v5085_v20 = vmul.f32 1.442695, %v5083_v37  ;;  %v8876_v31 = vld [vmem:[%s8312_s29] ss:$0 sm:$0xff]  ;;  %s9234_s29 = smov 56  }
0x24fb   : > { %7805 = vpow2.f32 %v5085_v20 }
0x24fc   : > { %v5193_v59 = vpop.permute.xlu1 %5192 }
0x2500   : > { %v5191_v14 = vpop.permute.xlu1 %5190 }
0x2504   : > { %v5189_v15 = vpop.permute.xlu1 %5188 }
0x2506   : > { %v7804_v21 = vpop.eup %7803 }
0x2507   : > { %v5092_v27 = vsel %vm1499_vm2, %v7804_v21, 0.0 }
0x2508   : > { %v7806_v32 = vpop.eup %7805  ;;  %5093 = vadd.xlane.f32.xlu0 %v5092_v27 }
0x2509   : > { %v5089_v34 = vsel %vm1499_vm2, %v7806_v32, 0.0 }
0x250c   : > { %5090 = vadd.xlane.f32.xlu0 %v5089_v34 }
0x2522   : > { %5101 = vrot.lane.b32.xlu0 %v8646_v33, %s7878_s17  ;;  %s7890_s17 = smov 12  }
0x2526   : > { %5186 = vrot.lane.b32.xlu0 %v8283_v52, %s7879_s18  ;;  %s7891_s18 = smov 16  }
0x2591   : > { %v5094_v49 = vpop.xlane.xlu0 %5093 }
0x2592   : > { %7807 = vrcp.f32 %v5094_v49 }
0x2595   : > { %v5091_v55 = vpop.xlane.xlu0 %5090 }
0x2596   : > { %7809 = vrcp.f32 %v5091_v55 }
0x2599   : > { %v5102_v41 = vpop.permute.xlu0 %5101 }
0x259a   : > { %7541 = vmatprep.subr.mxu0 %v5102_v41 }
0x259b   : > { %7542 = vmatpush3.msra.mxu0 %v5102_v41 }
0x259c   : > { %7543 = vmatprep.subr.mxu0 %v5100_v57 }
0x259d   : > { %7544 = vmatpush3.msra.mxu0 %v5100_v57  ;;  %v5187_v10 = vpop.permute.xlu0 %5186 }
0x259e   : > { %7548 = vmatprep.subr.msk.mxu0 %vm1401_vm1, %v5193_v59 }
0x259f   : > { %v7808_v1 = vpop.eup %7807 }
0x25a0   : > { %v5098_v9 = vmul.f32 %v7808_v1, %v7804_v21 }
0x25a3   : > { %v7810_v7 = vpop.eup %7809 }
0x25a4   : > { %v5096_v8 = vmul.f32 %v7810_v7, %v7806_v32 }
0x25a6   : > { %7545 = vmatprep.mubr.msk.f32.mxu0 %vm1499_vm2, %v5096_v8 }
0x25a7   : > { %7546 = vmatmul.mubr.msk.f32.vlgmr.msra.gmra.mxu0 %vm1499_vm2, %v5098_v9 }
0x25a8   : > { %7549 = vmatpush3.xpose.msk.msra.mxu0 %vm1401_vm1, %v5193_v59  ;;  %7552 = vmatprep.mubr.msk.f32.mxu0 %vm1401_vm1, %v5187_v10 }
0x25a9   : > { %7550 = vmatprep.subr.msk.mxu0 %vm1401_vm1, %v5191_v14 }
0x25ac   : > { %7551 = vmatpush3.xpose.msk.msra.mxu0 %vm1401_vm1, %v5191_v14 }
0x25af   : > { %7553 = vmatmul.mubr.msk.f32.vlgmr.msra.gmra.mxu0 %vm1401_vm1, %v5189_v15 }
0x2667   : > { %v8871_v16 = vpop.f32.mrf.mxu0 }
0x2669   : > { %v8873_v17 = vpop.f32.mrf.mxu0 }
0x266f   : > { %v7554_v4 = vpop.f32.mrf.mxu0 }
0x2670   : > { %v5278_v56 = vmul.f32 0.35355338, %v7554_v4 }
0x2671   : > { %v5268_v28 = vpop.f32.mrf.mxu0 }
0x2672   : > { %v5280_v37 = vadd.f32 %v8876_v31, %v5278_v56  ;;  %v5277_v20 = vmul.f32 0.35355338, %v5268_v28 }
0x2674   : > { %v5279_v21 = vadd.f32 %v8876_v31, %v5277_v20  ;;  %v5284_v27 = vsel %vm1499_vm2, %v5280_v37, -inf }
0x2675   : > { %5285 = vmax.xlane.f32.xlu1 %v5284_v27 }
0x2676   : > { %v5281_v32 = vsel %vm1499_vm2, %v5279_v21, -inf }
0x2677   : > { %5282 = vmax.xlane.f32.xlu0 %v5281_v32 }
0x2686   : > { %5303 = vrot.lane.b32.xlu1 %v8651_v35, %s7874_s13 }
0x268a   : > { %5396 = vrot.lane.b32.xlu1 %v8300_v3, %s7880_s19 }
0x268e   : > { %5394 = vrot.lane.b32.xlu1 %v8682_v6, %s7880_s19 }
0x2692   : > { %5392 = vrot.lane.b32.xlu1 %v8280_v50, %s7880_s19 }
0x26fe   : > { %v5286_v34 = vpop.xlane.xlu1 %5285 }
0x26ff   : > { %v5288_v49 = vsub.f32 %v5280_v37, %v5286_v34 }
0x2700   : > { %v5283_v55 = vpop.xlane.xlu0 %5282 }
0x2701   : > { %v5291_v57 = vmul.f32 1.442695, %v5288_v49  ;;  %v5287_v41 = vsub.f32 %v5279_v21, %v5283_v55 }
0x2702   : > { %v5304_v15 = vpop.permute.xlu1 %5303 }
0x2703   : > { %7811 = vpow2.f32 %v5291_v57  ;;  %v5289_v59 = vmul.f32 1.442695, %v5287_v41 }
0x2705   : > { %7813 = vpow2.f32 %v5289_v59 }
0x2706   : > { %v5397_v56 = vpop.permute.xlu1 %5396 }
0x270a   : > { %v5395_v32 = vpop.permute.xlu1 %5394 }
0x270e   : > { %v5393_v34 = vpop.permute.xlu1 %5392 }
0x2710   : > { %v7812_v1 = vpop.eup %7811 }
0x2711   : > { %v5296_v7 = vsel %vm1499_vm2, %v7812_v1, 0.0 }
0x2712   : > { %v7814_v8 = vpop.eup %7813  ;;  %5297 = vadd.xlane.f32.xlu0 %v5296_v7 }
0x2713   : > { %v5293_v9 = vsel %vm1499_vm2, %v7814_v8, 0.0 }
0x2716   : > { %5294 = vadd.xlane.f32.xlu0 %v5293_v9 }
0x272c   : > { %5305 = vrot.lane.b32.xlu0 %v8646_v33, %s7874_s13  ;;  %s9237_s13 = smov 40  }
0x2730   : > { %5390 = vrot.lane.b32.xlu0 %v8283_v52, %s7880_s19  ;;  %s7892_s19 = smov 20  }
0x279b   : > { %v5298_v10 = vpop.xlane.xlu0 %5297 }
0x279c   : > { %7815 = vrcp.f32 %v5298_v10 }
0x279f   : > { %v5295_v14 = vpop.xlane.xlu0 %5294 }
0x27a0   : > { %7817 = vrcp.f32 %v5295_v14 }
0x27a3   : > { %v5306_v4 = vpop.permute.xlu0 %5305 }
0x27a4   : > { %7555 = vmatprep.subr.mxu1 %v5306_v4 }
0x27a5   : > { %7556 = vmatpush3.msra.mxu1 %v5306_v4 }
0x27a6   : > { %7557 = vmatprep.subr.mxu1 %v5304_v15 }
0x27a7   : > { %7558 = vmatpush3.msra.mxu1 %v5304_v15  ;;  %v5391_v27 = vpop.permute.xlu0 %5390 }
0x27a8   : > { %7562 = vmatprep.subr.msk.mxu1 %vm1401_vm1, %v5397_v56 }
0x27a9   : > { %v7816_v28 = vpop.eup %7815 }
0x27aa   : > { %v5302_v21 = vmul.f32 %v7816_v28, %v7812_v1 }
0x27ad   : > { %v7818_v37 = vpop.eup %7817 }
0x27ae   : > { %v5300_v20 = vmul.f32 %v7818_v37, %v7814_v8 }
0x27b0   : > { %7559 = vmatprep.mubr.msk.f32.mxu1 %vm1499_vm2, %v5300_v20 }
0x27b1   : > { %7560 = vmatmul.mubr.msk.f32.vlgmr.msra.gmra.mxu1 %vm1499_vm2, %v5302_v21 }
0x27b2   : > { %7563 = vmatpush3.xpose.msk.msra.mxu1 %vm1401_vm1, %v5397_v56  ;;  %7566 = vmatprep.mubr.msk.f32.mxu1 %vm1401_vm1, %v5391_v27 }
0x27b3   : > { %7564 = vmatprep.subr.msk.mxu1 %vm1401_vm1, %v5395_v32 }
0x27b6   : > { %7565 = vmatpush3.xpose.msk.msra.mxu1 %vm1401_vm1, %v5395_v32 }
0x27b9   : > { %7567 = vmatmul.mubr.msk.f32.vlgmr.msra.gmra.mxu1 %vm1401_vm1, %v5393_v34 }
0x2871   : > { %v8904_v49 = vpop.f32.mrf.mxu1 }
0x2873   : > { %v8906_v55 = vpop.f32.mrf.mxu1 }
0x2879   : > { %v7568_v57 = vpop.f32.mrf.mxu1 }
0x287a   : > { %v5482_v41 = vmul.f32 0.35355338, %v7568_v57 }
0x287b   : > { %v5472_v59 = vpop.f32.mrf.mxu1 }
0x287c   : > { %v5484_v1 = vadd.f32 %v8876_v31, %v5482_v41  ;;  %v5481_v7 = vmul.f32 0.35355338, %v5472_v59 }
0x287e   : > { %v5483_v8 = vadd.f32 %v8876_v31, %v5481_v7  ;;  %v5488_v9 = vsel %vm1499_vm2, %v5484_v1, -inf }
0x287f   : > { %5489 = vmax.xlane.f32.xlu1 %v5488_v9 }
0x2880   : > { %v5485_v10 = vsel %vm1499_vm2, %v5483_v8, -inf }
0x2881   : > { %5486 = vmax.xlane.f32.xlu0 %v5485_v10 }
0x2890   : > { %5507 = vrot.lane.b32.xlu1 %v8651_v35, %s7881_s20 }
0x2894   : > { %5600 = vrot.lane.b32.xlu1 %v8300_v3, %s9233_s28 }
0x2898   : > { %5598 = vrot.lane.b32.xlu1 %v8682_v6, %s9233_s28 }
0x289c   : > { %5596 = vrot.lane.b32.xlu1 %v8280_v50, %s9233_s28 }
0x2908   : > { %v5490_v14 = vpop.xlane.xlu1 %5489 }
0x2909   : > { %v5492_v15 = vsub.f32 %v5484_v1, %v5490_v14 }
0x290a   : > { %v5487_v4 = vpop.xlane.xlu0 %5486 }
0x290b   : > { %v5495_v56 = vmul.f32 1.442695, %v5492_v15  ;;  %v5491_v28 = vsub.f32 %v5483_v8, %v5487_v4 }
0x290c   : > { %v5508_v41 = vpop.permute.xlu1 %5507 }
0x290d   : > { %7819 = vpow2.f32 %v5495_v56  ;;  %v5493_v37 = vmul.f32 1.442695, %v5491_v28 }
0x290f   : > { %7821 = vpow2.f32 %v5493_v37 }
0x2910   : > { %v5601_v1 = vpop.permute.xlu1 %5600 }
0x2914   : > { %v5599_v15 = vpop.permute.xlu1 %5598 }
0x2918   : > { %v5597_v4 = vpop.permute.xlu1 %5596 }
0x291a   : > { %v7820_v20 = vpop.eup %7819 }
0x291b   : > { %v5500_v21 = vsel %vm1499_vm2, %v7820_v20, 0.0 }
0x291c   : > { %v7822_v27 = vpop.eup %7821  ;;  %5501 = vadd.xlane.f32.xlu0 %v5500_v21 }
0x291d   : > { %v5497_v32 = vsel %vm1499_vm2, %v7822_v27, 0.0 }
0x2920   : > { %5498 = vadd.xlane.f32.xlu0 %v5497_v32 }
0x2936   : > { %5509 = vrot.lane.b32.xlu0 %v8646_v33, %s7881_s20  ;;  %s7893_s20 = smov 24  }
0x293a   : > { %5594 = vrot.lane.b32.xlu0 %v8283_v52, %s9233_s28 }
0x29a5   : > { %v5502_v34 = vpop.xlane.xlu0 %5501 }
0x29a6   : > { %7823 = vrcp.f32 %v5502_v34 }
0x29a9   : > { %v5499_v57 = vpop.xlane.xlu0 %5498 }
0x29aa   : > { %7825 = vrcp.f32 %v5499_v57 }
0x29ad   : > { %v5510_v59 = vpop.permute.xlu0 %5509 }
0x29ae   : > { %7569 = vmatprep.subr.mxu0 %v5510_v59 }
0x29af   : > { %7570 = vmatpush3.msra.mxu0 %v5510_v59 }
0x29b0   : > { %7571 = vmatprep.subr.mxu0 %v5508_v41 }
0x29b1   : > { %7572 = vmatpush3.msra.mxu0 %v5508_v41  ;;  %v5595_v14 = vpop.permute.xlu0 %5594 }
0x29b2   : > { %7576 = vmatprep.subr.msk.mxu0 %vm1401_vm1, %v5601_v1 }
0x29b3   : > { %v7824_v7 = vpop.eup %7823 }
0x29b4   : > { %v5506_v10 = vmul.f32 %v7824_v7, %v7820_v20 }
0x29b7   : > { %v7826_v8 = vpop.eup %7825 }
0x29b8   : > { %v5504_v9 = vmul.f32 %v7826_v8, %v7822_v27 }
0x29ba   : > { %7573 = vmatprep.mubr.msk.f32.mxu0 %vm1499_vm2, %v5504_v9 }
0x29bb   : > { %7574 = vmatmul.mubr.msk.f32.vlgmr.msra.gmra.mxu0 %vm1499_vm2, %v5506_v10 }
0x29bc   : > { %7577 = vmatpush3.xpose.msk.msra.mxu0 %vm1401_vm1, %v5601_v1  ;;  %7580 = vmatprep.mubr.msk.f32.mxu0 %vm1401_vm1, %v5595_v14 }
0x29bd   : > { %7578 = vmatprep.subr.msk.mxu0 %vm1401_vm1, %v5599_v15 }
0x29c0   : > { %7579 = vmatpush3.xpose.msk.msra.mxu0 %vm1401_vm1, %v5599_v15 }
0x29c3   : > { %7581 = vmatmul.mubr.msk.f32.vlgmr.msra.gmra.mxu0 %vm1401_vm1, %v5597_v4 }
0x2a7b   : > { %v8934_v56 = vpop.f32.mrf.mxu0 }
0x2a7d   : > { %v8936_v28 = vpop.f32.mrf.mxu0 }
0x2a83   : > { %v7582_v37 = vpop.f32.mrf.mxu0 }
0x2a84   : > { %v5686_v20 = vmul.f32 0.35355338, %v7582_v37 }
0x2a85   : > { %v5676_v21 = vpop.f32.mrf.mxu0 }
0x2a86   : > { %v5688_v27 = vadd.f32 %v8876_v31, %v5686_v20  ;;  %v5685_v32 = vmul.f32 0.35355338, %v5676_v21 }
0x2a88   : > { %v5687_v34 = vadd.f32 %v8876_v31, %v5685_v32  ;;  %v5692_v57 = vsel %vm1499_vm2, %v5688_v27, -inf }
0x2a89   : > { %5693 = vmax.xlane.f32.xlu1 %v5692_v57 }
0x2a8a   : > { %v5689_v41 = vsel %vm1499_vm2, %v5687_v34, -inf }
0x2a8b   : > { %5690 = vmax.xlane.f32.xlu0 %v5689_v41 }
0x2a9a   : > { %5711 = vrot.lane.b32.xlu1 %v8651_v35, %s7876_s15 }
0x2a9e   : > { %5804 = vrot.lane.b32.xlu1 %v8300_v3, %s9234_s29 }
0x2aa2   : > { %5802 = vrot.lane.b32.xlu1 %v8682_v6, %s9234_s29 }
0x2aa6   : > { %5800 = vrot.lane.b32.xlu1 %v8280_v50, %s9234_s29 }
0x2b12   : > { %v5694_v59 = vpop.xlane.xlu1 %5693 }
0x2b13   : > { %v5696_v1 = vsub.f32 %v5688_v27, %v5694_v59 }
0x2b14   : > { %v5691_v7 = vpop.xlane.xlu0 %5690 }
0x2b15   : > { %v5699_v8 = vmul.f32 1.442695, %v5696_v1  ;;  %v5695_v9 = vsub.f32 %v5687_v34, %v5691_v7 }
0x2b16   : > { %v5712_v27 = vpop.permute.xlu1 %5711 }
0x2b17   : > { %7827 = vpow2.f32 %v5699_v8  ;;  %v5697_v10 = vmul.f32 1.442695, %v5695_v9 }
0x2b19   : > { %7829 = vpow2.f32 %v5697_v10 }
0x2b1a   : > { %v5805_v34 = vpop.permute.xlu1 %5804 }
0x2b1e   : > { %v5803_v8 = vpop.permute.xlu1 %5802 }
0x2b22   : > { %v5801_v9 = vpop.permute.xlu1 %5800 }
0x2b24   : > { %v7828_v14 = vpop.eup %7827 }
0x2b25   : > { %v5704_v15 = vsel %vm1499_vm2, %v7828_v14, 0.0 }
0x2b26   : > { %v7830_v4 = vpop.eup %7829  ;;  %5705 = vadd.xlane.f32.xlu0 %v5704_v15 }
0x2b27   : > { %v5701_v37 = vsel %vm1499_vm2, %v7830_v4, 0.0 }
0x2b2a   : > { %5702 = vadd.xlane.f32.xlu0 %v5701_v37 }
0x2b40   : > { %5713 = vrot.lane.b32.xlu0 %v8646_v33, %s7876_s15  ;;  %s7888_s15 = smov 4  }
0x2b44   : > { %5798 = vrot.lane.b32.xlu0 %v8283_v52, %s9234_s29 }
0x2baf   : > { %v5706_v20 = vpop.xlane.xlu0 %5705 }
0x2bb0   : > { %7831 = vrcp.f32 %v5706_v20 }
0x2bb3   : > { %v5703_v21 = vpop.xlane.xlu0 %5702 }
0x2bb4   : > { %7833 = vrcp.f32 %v5703_v21 }
0x2bb7   : > { %v5714_v32 = vpop.permute.xlu0 %5713 }
0x2bb8   : > { %7583 = vmatprep.subr.mxu1 %v5714_v32 }
0x2bb9   : > { %7584 = vmatpush3.msra.mxu1 %v5714_v32 }
0x2bba   : > { %7585 = vmatprep.subr.mxu1 %v5712_v27 }
0x2bbb   : > { %7586 = vmatpush3.msra.mxu1 %v5712_v27  ;;  %v5799_v7 = vpop.permute.xlu0 %5798 }
0x2bbc   : > { %7590 = vmatprep.subr.msk.mxu1 %vm1401_vm1, %v5805_v34 }
0x2bbd   : > { %v7832_v57 = vpop.eup %7831 }
0x2bbe   : > { %v5710_v1 = vmul.f32 %v7832_v57, %v7828_v14 }
0x2bc1   : > { %v7834_v41 = vpop.eup %7833 }
0x2bc2   : > { %v5708_v59 = vmul.f32 %v7834_v41, %v7830_v4 }
0x2bc4   : > { %7587 = vmatprep.mubr.msk.f32.mxu1 %vm1499_vm2, %v5708_v59 }
0x2bc5   : > { %7588 = vmatmul.mubr.msk.f32.vlgmr.msra.gmra.mxu1 %vm1499_vm2, %v5710_v1 }
0x2bc6   : > { %7591 = vmatpush3.xpose.msk.msra.mxu1 %vm1401_vm1, %v5805_v34  ;;  %7594 = vmatprep.mubr.msk.f32.mxu1 %vm1401_vm1, %v5799_v7 }
0x2bc7   : > { %7592 = vmatprep.subr.msk.mxu1 %vm1401_vm1, %v5803_v8 }
0x2bca   : > { %7593 = vmatpush3.xpose.msk.msra.mxu1 %vm1401_vm1, %v5803_v8 }
0x2bcd   : > { %7595 = vmatmul.mubr.msk.f32.vlgmr.msra.gmra.mxu1 %vm1401_vm1, %v5801_v9 }
0x2c85   : > { %v8964_v10 = vpop.f32.mrf.mxu1 }
0x2c87   : > { %v8966_v14 = vpop.f32.mrf.mxu1 }
0x2c8d   : > { %v7596_v15 = vpop.f32.mrf.mxu1 }
0x2c8e   : > { %v5890_v4 = vmul.f32 0.35355338, %v7596_v15 }
0x2c8f   : > { %v5880_v37 = vpop.f32.mrf.mxu1 }
0x2c90   : > { %v5892_v20 = vadd.f32 %v8876_v31, %v5890_v4  ;;  %v5889_v21 = vmul.f32 0.35355338, %v5880_v37 }
0x2c92   : > { %v5891_v27 = vadd.f32 %v8876_v31, %v5889_v21  ;;  %v5896_v32 = vsel %vm1499_vm2, %v5892_v20, -inf }
0x2c93   : > { %5897 = vmax.xlane.f32.xlu1 %v5896_v32 }
0x2c94   : > { %v5893_v34 = vsel %vm1499_vm2, %v5891_v27, -inf }
0x2c95   : > { %5894 = vmax.xlane.f32.xlu0 %v5893_v34 }
0x2ca4   : > { %5915 = vrot.lane.b32.xlu1 %v8651_v35, %s9235_s22 }
0x2ca8   : > { %6008 = vrot.lane.b32.xlu1 %v8300_v3, %s9236_s30 }
0x2cac   : > { %6006 = vrot.lane.b32.xlu1 %v8682_v6, %s9236_s30 }
0x2cb0   : > { %6004 = vrot.lane.b32.xlu1 %v8280_v50, %s9236_s30 }
0x2d1c   : > { %v5898_v57 = vpop.xlane.xlu1 %5897 }
0x2d1d   : > { %v5900_v41 = vsub.f32 %v5892_v20, %v5898_v57 }
0x2d1e   : > { %v5895_v59 = vpop.xlane.xlu0 %5894 }
0x2d1f   : > { %v5903_v1 = vmul.f32 1.442695, %v5900_v41  ;;  %v5899_v7 = vsub.f32 %v5891_v27, %v5895_v59 }
0x2d20   : > { %v5916_v27 = vpop.permute.xlu1 %5915 }
0x2d21   : > { %7835 = vpow2.f32 %v5903_v1  ;;  %v5901_v8 = vmul.f32 1.442695, %v5899_v7 }
0x2d23   : > { %7837 = vpow2.f32 %v5901_v8 }
0x2d24   : > { %v6009_v34 = vpop.permute.xlu1 %6008 }
0x2d28   : > { %v6007_v8 = vpop.permute.xlu1 %6006 }
0x2d2e   : > { %v7836_v9 = vpop.eup %7835 }
0x2d2f   : > { %v5908_v15 = vsel %vm1499_vm2, %v7836_v9, 0.0 }
0x2d30   : > { %v7838_v4 = vpop.eup %7837  ;;  %5909 = vadd.xlane.f32.xlu0 %v5908_v15  ;;  %v6005_v15 = vpop.permute.xlu1 %6004 }
0x2d31   : > { %v5905_v37 = vsel %vm1499_vm2, %v7838_v4, 0.0 }
0x2d34   : > { %5906 = vadd.xlane.f32.xlu0 %v5905_v37 }
0x2d4a   : > { %5917 = vrot.lane.b32.xlu0 %v8646_v33, %s9235_s22  ;;  %s9138_s22 = scalar_lea.vmem %s9219_s11, %s7998_s23 }
0x2d4e   : > { %6002 = vrot.lane.b32.xlu0 %v8283_v52, %s9236_s30 }
0x2db9   : > { %v5910_v20 = vpop.xlane.xlu0 %5909 }
0x2dba   : > { %7839 = vrcp.f32 %v5910_v20 }
0x2dbd   : > { %v5907_v21 = vpop.xlane.xlu0 %5906 }
0x2dbe   : > { %7841 = vrcp.f32 %v5907_v21 }
0x2dc1   : > { %v5918_v32 = vpop.permute.xlu0 %5917 }
0x2dc2   : > { %7597 = vmatprep.subr.mxu0 %v5918_v32 }
0x2dc3   : > { %7598 = vmatpush3.msra.mxu0 %v5918_v32 }
0x2dc4   : > { %7599 = vmatprep.subr.mxu0 %v5916_v27 }
0x2dc5   : > { %7600 = vmatpush3.msra.mxu0 %v5916_v27  ;;  %v6003_v7 = vpop.permute.xlu0 %6002 }
0x2dc6   : > { %7604 = vmatprep.subr.msk.mxu0 %vm1401_vm1, %v6009_v34 }
0x2dc7   : > { %v7840_v57 = vpop.eup %7839 }
0x2dc8   : > { %v5914_v1 = vmul.f32 %v7840_v57, %v7836_v9 }
0x2dcb   : > { %v7842_v41 = vpop.eup %7841 }
0x2dcc   : > { %v5912_v59 = vmul.f32 %v7842_v41, %v7838_v4 }
0x2dce   : > { %7601 = vmatprep.mubr.msk.f32.mxu0 %vm1499_vm2, %v5912_v59 }
0x2dcf   : > { %7602 = vmatmul.mubr.msk.f32.vlgmr.msra.gmra.mxu0 %vm1499_vm2, %v5914_v1 }
0x2dd0   : > { %7605 = vmatpush3.xpose.msk.msra.mxu0 %vm1401_vm1, %v6009_v34  ;;  %7608 = vmatprep.mubr.msk.f32.mxu0 %vm1401_vm1, %v6003_v7 }
0x2dd1   : > { %7606 = vmatprep.subr.msk.mxu0 %vm1401_vm1, %v6007_v8 }
0x2dd4   : > { %7607 = vmatpush3.xpose.msk.msra.mxu0 %vm1401_vm1, %v6007_v8 }
0x2dd7   : > { %7609 = vmatmul.mubr.msk.f32.vlgmr.msra.gmra.mxu0 %vm1401_vm1, %v6005_v15 }
0x2e8f   : > { %v8994_v37 = vpop.f32.mrf.mxu0 }
0x2e91   : > { %v8996_v9 = vpop.f32.mrf.mxu0 }
0x2e97   : > { %v7610_v4 = vpop.f32.mrf.mxu0 }
0x2e98   : > { %v6094_v20 = vmul.f32 0.35355338, %v7610_v4 }
0x2e99   : > { %v6084_v21 = vpop.f32.mrf.mxu0 }
0x2e9a   : > { %v6096_v27 = vadd.f32 %v8876_v31, %v6094_v20  ;;  %v6093_v32 = vmul.f32 0.35355338, %v6084_v21 }
0x2e9c   : > { %v6095_v34 = vadd.f32 %v8876_v31, %v6093_v32  ;;  %v6100_v57 = vsel %vm1499_vm2, %v6096_v27, -inf }
0x2e9d   : > { %6101 = vmax.xlane.f32.xlu1 %v6100_v57 }
0x2e9e   : > { %v6097_v41 = vsel %vm1499_vm2, %v6095_v34, -inf }
0x2e9f   : > { %6098 = vmax.xlane.f32.xlu0 %v6097_v41 }
0x2eae   : > { %6119 = vrot.lane.b32.xlu1 %v8651_v35, %s7877_s16 }
0x2eb2   : > { %6212 = vrot.lane.b32.xlu1 %v8300_v3, %s9237_s13 }
0x2eb6   : > { %6210 = vrot.lane.b32.xlu1 %v8682_v6, %s9237_s13 }
0x2eba   : > { %6208 = vrot.lane.b32.xlu1 %v8280_v50, %s9237_s13 }
0x2f26   : > { %v6102_v59 = vpop.xlane.xlu1 %6101 }
0x2f27   : > { %v6104_v1 = vsub.f32 %v6096_v27, %v6102_v59 }
0x2f28   : > { %v6099_v7 = vpop.xlane.xlu0 %6098 }
0x2f29   : > { %v6107_v8 = vmul.f32 1.442695, %v6104_v1  ;;  %v6103_v15 = vsub.f32 %v6095_v34, %v6099_v7 }
0x2f2a   : > { %v6120_v27 = vpop.permute.xlu1 %6119 }
0x2f2b   : > { %7843 = vpow2.f32 %v6107_v8  ;;  %v6105_v4 = vmul.f32 1.442695, %v6103_v15 }
0x2f2d   : > { %7845 = vpow2.f32 %v6105_v4 }
0x2f2e   : > { %v6213_v57 = vpop.permute.xlu1 %6212 }
0x2f32   : > { %v6211_v8 = vpop.permute.xlu1 %6210 }
0x2f36   : > { %v6209_v15 = vpop.permute.xlu1 %6208 }
0x2f38   : > { %v7844_v20 = vpop.eup %7843 }
0x2f39   : > { %v6112_v21 = vsel %vm1499_vm2, %v7844_v20, 0.0 }
0x2f3a   : > { %v7846_v32 = vpop.eup %7845  ;;  %6113 = vadd.xlane.f32.xlu0 %v6112_v21 }
0x2f3b   : > { %v6109_v3 = vsel %vm1499_vm2, %v7846_v32, 0.0 }
0x2f3e   : > { %6110 = vadd.xlane.f32.xlu0 %v6109_v3 }
0x2f54   : > { %6121 = vrot.lane.b32.xlu0 %v8646_v33, %s7877_s16  ;;  %s7889_s16 = smov 8  }
0x2f58   : > { %6206 = vrot.lane.b32.xlu0 %v8283_v52, %s9237_s13 }
0x2fc3   : > { %v6114_v50 = vpop.xlane.xlu0 %6113 }
0x2fc4   : > { %7847 = vrcp.f32 %v6114_v50 }
0x2fc7   : > { %v6111_v6 = vpop.xlane.xlu0 %6110 }
0x2fc8   : > { %7849 = vrcp.f32 %v6111_v6 }
0x2fcb   : > { %v6122_v34 = vpop.permute.xlu0 %6121 }
0x2fcc   : > { %7611 = vmatprep.subr.mxu1 %v6122_v34 }
0x2fcd   : > { %7612 = vmatpush3.msra.mxu1 %v6122_v34 }
0x2fce   : > { %7613 = vmatprep.subr.mxu1 %v6120_v27 }
0x2fcf   : > { %7614 = vmatpush3.msra.mxu1 %v6120_v27  ;;  %v6207_v52 = vpop.permute.xlu0 %6206 }
0x2fd0   : > { %7618 = vmatprep.subr.msk.mxu1 %vm1401_vm1, %v6213_v57 }
0x2fd1   : > { %v7848_v41 = vpop.eup %7847 }
0x2fd2   : > { %v6118_v7 = vmul.f32 %v7848_v41, %v7844_v20 }
0x2fd5   : > { %v7850_v59 = vpop.eup %7849 }
0x2fd6   : > { %v6116_v1 = vmul.f32 %v7850_v59, %v7846_v32 }
0x2fd8   : > { %7615 = vmatprep.mubr.msk.f32.mxu1 %vm1499_vm2, %v6116_v1 }
0x2fd9   : > { %7616 = vmatmul.mubr.msk.f32.vlgmr.msra.gmra.mxu1 %vm1499_vm2, %v6118_v7 }
0x2fda   : > { %7619 = vmatpush3.xpose.msk.msra.mxu1 %vm1401_vm1, %v6213_v57  ;;  %7622 = vmatprep.mubr.msk.f32.mxu1 %vm1401_vm1, %v6207_v52 }
0x2fdb   : > { %7620 = vmatprep.subr.msk.mxu1 %vm1401_vm1, %v6211_v8 }
0x2fde   : > { %7621 = vmatpush3.xpose.msk.msra.mxu1 %vm1401_vm1, %v6211_v8 }
0x2fe1   : > { %7623 = vmatmul.mubr.msk.f32.vlgmr.msra.gmra.mxu1 %vm1401_vm1, %v6209_v15 }
0x3099   : > { %v7617_v4 = vpop.f32.mrf.mxu1 }
0x309b   : > { %v9024_v21 = vpop.f32.mrf.mxu1 }
0x30a1   : > { %v7624_v20 = vpop.f32.mrf.mxu1 }
0x30a2   : > { %v6298_v32 = vmul.f32 0.35355338, %v7624_v20 }
0x30a3   : > { %v6288_v3 = vpop.f32.mrf.mxu1 }
0x30a4   : > { %v6300_v50 = vadd.f32 %v8876_v31, %v6298_v32  ;;  %v6297_v6 = vmul.f32 0.35355338, %v6288_v3 }
0x30a6   : > { %v6299_v27 = vadd.f32 %v8876_v31, %v6297_v6  ;;  %v6304_v34 = vsel %vm1499_vm2, %v6300_v50, -inf }
0x30a7   : > { %6305 = vmax.xlane.f32.xlu1 %v6304_v34 }
0x30a8   : > { %v6301_v57 = vsel %vm1499_vm2, %v6299_v27, -inf }
0x30a9   : > { %6302 = vmax.xlane.f32.xlu0 %v6301_v57 }
0x30b8   : > { %6323 = vrot.lane.b32.xlu1 %v8651_v35, %s9238_s14 }
0x30bc   : > { %3851 = vrot.lane.b32.xlu1 %v8373_v19, %s7888_s15 }
0x30c0   : > { %3853 = vrot.lane.b32.xlu1 %v8371_v18, %s7888_s15 }
0x30c4   : > { %3861 = vrot.lane.b32.xlu1 %v8401_v60, %s7889_s16 }
0x30c8   : > { %3869 = vrot.lane.b32.xlu1 %v8431_v44, %s7890_s17 }
0x30cc   : > { %3877 = vrot.lane.b32.xlu1 %v8461_v24, %s7891_s18 }
0x30d0   : > { %3885 = vrot.lane.b32.xlu1 %v8491_v11, %s7892_s19 }
0x30d4   : > { %6414 = vrot.lane.b32.xlu1 %v8751_v2, %s7888_s15 }
0x30d8   : > { %6422 = vrot.lane.b32.xlu1 %v8781_v29, %s7889_s16 }
0x30dc   : > { %6430 = vrot.lane.b32.xlu1 %v8811_v51, %s7890_s17 }
0x30e0   : > { %6438 = vrot.lane.b32.xlu1 %v8841_v62, %s7891_s18 }
0x30e4   : > { %6446 = vrot.lane.b32.xlu1 %v8871_v16, %s7892_s19 }
0x30e8   : > { %3893 = vrot.lane.b32.xlu1 %v8521_v63, %s7893_s20 }
0x30ec   : > { %6454 = vrot.lane.b32.xlu1 %v8904_v49, %s7893_s20 }
0x30f0   : > { %3901 = vrot.lane.b32.xlu1 %v8551_v53, %s7894_s24 }
0x30f4   : > { %6462 = vrot.lane.b32.xlu1 %v8934_v56, %s7894_s24 }
0x30f8   : > { %3909 = vrot.lane.b32.xlu1 %v8581_v47, %s7895_s25 }
0x30fc   : > { %6470 = vrot.lane.b32.xlu1 %v8964_v10, %s7895_s25 }
0x3100   : > { %3917 = vrot.lane.b32.xlu1 %v8614_v38, %s7896_s26 }
0x3104   : > { %6478 = vrot.lane.b32.xlu1 %v8994_v37, %s7896_s26 }
0x3108   : > { %3925 = vrot.lane.b32.xlu1 %v8657_v36, %s9237_s13 }
0x310c   : > { %6486 = vrot.lane.b32.xlu1 %v7617_v4, %s9237_s13 }
0x3110   : > { %3933 = vrot.lane.b32.xlu1 %v8695_v39, %s7897_s27 }
0x3130   : > { %v6306_v18 = vpop.xlane.xlu1 %6305 }
0x3131   : > { %v6308_v19 = vsub.f32 %v6300_v50, %v6306_v18 }
0x3132   : > { %v6303_v60 = vpop.xlane.xlu0 %6302 }
0x3133   : > { %v6311_v44 = vmul.f32 1.442695, %v6308_v19  ;;  %v6307_v24 = vsub.f32 %v6299_v27, %v6303_v60 }
0x3134   : > { %v9075_v11 = vpop.permute.xlu1 %6323 }
0x3135   : > { %7851 = vpow2.f32 %v6311_v44  ;;  %v6309_v63 = vmul.f32 1.442695, %v6307_v24 }
0x3137   : > { %7853 = vpow2.f32 %v6309_v63 }
0x3138   : > { %v9077_v53 = vpop.permute.xlu1 %3851 }
0x313c   : > { %v3854_v47 = vpop.permute.xlu1 %3853 }
0x313d   : > { %v3939_v38 = vsel %vm3937_vm3, %v8341_v42, %v3854_v47 }
0x3140   : > { %v3862_v35 = vpop.permute.xlu1 %3861 }
0x3141   : > { %v3941_v36 = vsel %vm1401_vm1, %v3939_v38, %v3862_v35 }
0x3142   : > { %v9082_v39 = vpop.eup %7851 }
0x3143   : > { %v6316_v2 = vsel %vm1499_vm2, %v9082_v39, 0.0 }
0x3144   : > { %v9086_v29 = vpop.eup %7853  ;;  %v3870_v51 = vpop.permute.xlu1 %3869  ;;  %6317 = vadd.xlane.f32.xlu0 %v6316_v2 }
0x3145   : > { %v3944_v62 = vsel %vm3942_vm4, %v3941_v36, %v3870_v51  ;;  %v6313_v16 = vsel %vm1499_vm2, %v9086_v29, 0.0 }
0x3148   : > { %v3878_v31 = vpop.permute.xlu1 %3877  ;;  %6314 = vadd.xlane.f32.xlu0 %v6313_v16 }
0x3149   : > { %v3946_v50 = vsel %vm1499_vm2, %v3944_v62, %v3878_v31 }
0x314c   : > { %v3886_v42 = vpop.permute.xlu1 %3885 }
0x3150   : > { %v6415_v49 = vpop.permute.xlu1 %6414 }
0x3151   : > { %v6499_v56 = vsel %vm3937_vm3, %v8721_v22, %v6415_v49 }
0x3154   : > { %v6423_v10 = vpop.permute.xlu1 %6422 }
0x3155   : > { %v6501_v37 = vsel %vm1401_vm1, %v6499_v56, %v6423_v10 }
0x3158   : > { %v6431_v41 = vpop.permute.xlu1 %6430 }
0x3159   : > { %v6503_v59 = vsel %vm3942_vm4, %v6501_v37, %v6431_v41 }
0x315c   : > { %v6439_v1 = vpop.permute.xlu1 %6438 }
0x315d   : > { %v6505_v7 = vsel %vm1499_vm2, %v6503_v59, %v6439_v1 }
0x315e   : > { %6325 = vrot.lane.b32.xlu0 %v8646_v33, %s9238_s14  ;;  %s460_s14 = scalar_lea.vmem %s9220_s12, %s7998_s23 }
0x3160   : > { %v6447_v52 = vpop.permute.xlu1 %6446 }
0x3161   : > { %v6507_v8 = vsel %vm3947_vm5, %v6505_v7, %v6447_v52 }
0x3162   : > { %3859 = vrot.lane.b32.xlu0 %v8403_v61, %s7889_s16 }
0x3164   : > { %v3894_v22 = vpop.permute.xlu1 %3893 }
0x3166   : > { %3867 = vrot.lane.b32.xlu0 %v8433_v45, %s7890_s17 }
0x3168   : > { %v6455_v15 = vpop.permute.xlu1 %6454 }
0x3169   : > { %v6509_v4 = vsel %vm3950_vm6, %v6507_v8, %v6455_v15 }
0x316a   : > { %3875 = vrot.lane.b32.xlu0 %v8463_v25, %s7891_s18 }
0x316c   : > { %v3902_v20 = vpop.permute.xlu1 %3901 }
0x316e   : > { %3883 = vrot.lane.b32.xlu0 %v8493_v12, %s7892_s19 }
0x3170   : > { %v6463_v33 = vpop.permute.xlu1 %6462 }
0x3171   : > { %v6511_v32 = vsel %vm3953_vm7, %v6509_v4, %v6463_v33 }
0x3172   : > { %6412 = vrot.lane.b32.xlu0 %v8753_v26, %s7888_s15 }
0x3174   : > { %v3910_v61 = vpop.permute.xlu1 %3909 }
0x3176   : > { %6420 = vrot.lane.b32.xlu0 %v8783_v30, %s7889_s16 }
0x3178   : > { %v6471_v45 = vpop.permute.xlu1 %6470 }
0x3179   : > { %v6513_v3 = vsel %vm3956_vm8, %v6511_v32, %v6471_v45 }
0x317a   : > { %6428 = vrot.lane.b32.xlu0 %v8813_v13, %s7890_s17  ;;  %v3949_v13 = vsel %vm3947_vm5, %v3946_v50, %v3886_v42 }
0x317b   : > { %v3952_v6 = vsel %vm3950_vm6, %v3949_v13, %v3894_v22 }
0x317c   : > { %v3918_v25 = vpop.permute.xlu1 %3917  ;;  %v3955_v27 = vsel %vm3953_vm7, %v3952_v6, %v3902_v20 }
0x317d   : > { %v3958_v57 = vsel %vm3956_vm8, %v3955_v27, %v3910_v61 }
0x317e   : > { %6436 = vrot.lane.b32.xlu0 %v8843_v5, %s7891_s18 }
0x3180   : > { %v6479_v12 = vpop.permute.xlu1 %6478 }
0x3181   : > { %v6515_v26 = vsel %vm3959_vm9, %v6513_v3, %v6479_v12 }
0x3182   : > { %6444 = vrot.lane.b32.xlu0 %v8873_v17, %s7892_s19  ;;  %v3961_v17 = vsel %vm3959_vm9, %v3958_v57, %v3918_v25 }
0x3184   : > { %v3926_v30 = vpop.permute.xlu1 %3925 }
0x3186   : > { %3891 = vrot.lane.b32.xlu0 %v8523_v0, %s7893_s20  ;;  %v3964_v0 = vsel %vm3962_vm10, %v3961_v17, %v3926_v30 }
0x3188   : > { %v6487_v5 = vpop.permute.xlu1 %6486 }
0x3189   : > { %v9128_v34 = vsel %vm3962_vm10, %v6515_v26, %v6487_v5 }
0x318a   : > { %6452 = vrot.lane.b32.xlu0 %v8906_v55, %s7893_s20 }
0x318c   : > { %v3934_v18 = vpop.permute.xlu1 %3933 }
0x318d   : > { %v3967_v19 = vsel %vm3965_vm11, %v3964_v0, %v3934_v18 }
0x318e   : > { %3969 = vst.msk [vmem:[%s9138_s22 + $0x8] sm:$0xff] %vm483_vm0, %v3967_v19  ;;  %3899 = vrot.lane.b32.xlu0 %v8553_v54, %s7894_s24 }
0x3192   : > { %6460 = vrot.lane.b32.xlu0 %v8936_v28, %s7894_s24 }
0x3196   : > { %3907 = vrot.lane.b32.xlu0 %v8583_v48, %s7895_s25 }
0x319a   : > { %6468 = vrot.lane.b32.xlu0 %v8966_v14, %s7895_s25 }
0x319e   : > { %3915 = vrot.lane.b32.xlu0 %v8616_v46, %s7896_s26  ;;  %v3938_v46 = vsel %vm3937_vm3, %v8343_v43, %v9077_v53 }
0x31a2   : > { %6476 = vrot.lane.b32.xlu0 %v8996_v9, %s7896_s26 }
0x31a6   : > { %3923 = vrot.lane.b32.xlu0 %v8659_v40, %s9237_s13 }
0x31aa   : > { %6484 = vrot.lane.b32.xlu0 %v9024_v21, %s9237_s13 }
0x31ae   : > { %3931 = vrot.lane.b32.xlu0 %v8697_v58, %s7897_s27 }
0x31cd   : > { %v6318_v54 = vpop.xlane.xlu0 %6317 }
0x31ce   : > { %7855 = vrcp.f32 %v6318_v54 }
0x31d1   : > { %v6315_v48 = vpop.xlane.xlu0 %6314 }
0x31d2   : > { %7857 = vrcp.f32 %v6315_v48 }
0x31d5   : > { %v6326_v55 = vpop.permute.xlu0 %6325 }
0x31d6   : > { %7625 = vmatprep.subr.mxu0 %v6326_v55 }
0x31d7   : > { %7626 = vmatpush3.msra.mxu0 %v6326_v55 }
0x31d8   : > { %7627 = vmatprep.subr.mxu0 %v9075_v11 }
0x31d9   : > { %7628 = vmatpush3.msra.mxu0 %v9075_v11  ;;  %v3860_v40 = vpop.permute.xlu0 %3859 }
0x31da   : > { %v3940_v28 = vsel %vm1401_vm1, %v3938_v46, %v3860_v40 }
0x31db   : > { %v7856_v58 = vpop.eup %7855 }
0x31dc   : > { %v6322_v24 = vmul.f32 %v7856_v58, %v9082_v39 }
0x31dd   : > { %v3868_v14 = vpop.permute.xlu0 %3867 }
0x31de   : > { %v3943_v9 = vsel %vm3942_vm4, %v3940_v28, %v3868_v14 }
0x31df   : > { %v7858_v21 = vpop.eup %7857 }
0x31e0   : > { %v6320_v60 = vmul.f32 %v7858_v21, %v9086_v29 }
0x31e1   : > { %v3876_v44 = vpop.permute.xlu0 %3875 }
0x31e2   : > { %7629 = vmatprep.mubr.msk.f32.mxu0 %vm1499_vm2, %v6320_v60  ;;  %v3945_v7 = vsel %vm1499_vm2, %v3943_v9, %v3876_v44 }
0x31e3   : > { %7630 = vmatmul.mubr.msk.f32.vlgmr.msra.gmra.mxu0 %vm1499_vm2, %v6322_v24 }
0x31e5   : > { %v3884_v43 = vpop.permute.xlu0 %3883 }
0x31e6   : > { %v3948_v52 = vsel %vm3947_vm5, %v3945_v7, %v3884_v43 }
0x31e9   : > { %v6413_v63 = vpop.permute.xlu0 %6412 }
0x31ea   : > { %v6498_v11 = vsel %vm3937_vm3, %v8723_v23, %v6413_v63 }
0x31ed   : > { %v6421_v53 = vpop.permute.xlu0 %6420 }
0x31ee   : > { %v6500_v47 = vsel %vm1401_vm1, %v6498_v11, %v6421_v53 }
0x31f1   : > { %v6429_v38 = vpop.permute.xlu0 %6428 }
0x31f2   : > { %v6502_v35 = vsel %vm3942_vm4, %v6500_v47, %v6429_v38 }
0x31f5   : > { %v6437_v36 = vpop.permute.xlu0 %6436 }
0x31f6   : > { %v6504_v2 = vsel %vm1499_vm2, %v6502_v35, %v6437_v36 }
0x31f9   : > { %v6445_v29 = vpop.permute.xlu0 %6444 }
0x31fa   : > { %v6506_v39 = vsel %vm3947_vm5, %v6504_v2, %v6445_v29 }
0x31fd   : > { %v3892_v51 = vpop.permute.xlu0 %3891 }
0x31fe   : > { %v3951_v8 = vsel %vm3950_vm6, %v3948_v52, %v3892_v51 }
0x3201   : > { %v6453_v62 = vpop.permute.xlu0 %6452 }
0x3202   : > { %v6508_v16 = vsel %vm3950_vm6, %v6506_v39, %v6453_v62 }
0x3205   : > { %v3900_v31 = vpop.permute.xlu0 %3899 }
0x3206   : > { %v3954_v15 = vsel %vm3953_vm7, %v3951_v8, %v3900_v31 }
0x3209   : > { %v6461_v42 = vpop.permute.xlu0 %6460 }
0x320a   : > { %v6510_v23 = vsel %vm3953_vm7, %v6508_v16, %v6461_v42 }
0x320d   : > { %v3908_v49 = vpop.permute.xlu0 %3907 }
0x320e   : > { %v3957_v20 = vsel %vm3956_vm8, %v3954_v15, %v3908_v49 }
0x3211   : > { %v6469_v56 = vpop.permute.xlu0 %6468 }
0x3212   : > { %v6512_v10 = vsel %vm3956_vm8, %v6510_v23, %v6469_v56 }
0x3215   : > { %v3916_v37 = vpop.permute.xlu0 %3915 }
0x3216   : > { %v3960_v33 = vsel %vm3959_vm9, %v3957_v20, %v3916_v37 }
0x3219   : > { %v6477_v41 = vpop.permute.xlu0 %6476 }
0x321a   : > { %v6514_v59 = vsel %vm3959_vm9, %v6512_v10, %v6477_v41 }
0x321d   : > { %v3924_v1 = vpop.permute.xlu0 %3923 }
0x321e   : > { %v3963_v32 = vsel %vm3962_vm10, %v3960_v33, %v3924_v1 }
0x3221   : > { %v6485_v22 = vpop.permute.xlu0 %6484 }
0x3222   : > { %v6516_v4 = vsel %vm3962_vm10, %v6514_v59, %v6485_v22 }
0x3225   : > { %v3932_v61 = vpop.permute.xlu0 %3931 }
0x3226   : > { %v3966_v45 = vsel %vm3965_vm11, %v3963_v32, %v3932_v61 }
0x3227   : > { %3968 = vst.msk [vmem:[%s9138_s22] sm:$0xff] %vm483_vm0, %v3966_v45 }
0x32a3   : > { %v7631_v3 = vpop.f32.mrf.mxu0 }
0x32a4   : > { %6494 = vrot.lane.b32.xlu1 %v7631_v3, %s7897_s27 }
0x32a5   : > { %v6401_v25 = vpop.f32.mrf.mxu0 }
0x32a6   : > { %6492 = vrot.lane.b32.xlu0 %v6401_v25, %s7897_s27 }
0x3316   : > { %v6495_v12 = vpop.permute.xlu1 %6494 }
0x3317   : > { %v6519_v26 = vsel %vm3965_vm11, %v9128_v34, %v6495_v12 }
0x3318   : > { %6521 = vst.msk [vmem:[%s460_s14 + $0x8] sm:$0xff] %vm483_vm0, %v6519_v26  ;;  %v6493_v30 = vpop.permute.xlu0 %6492 }
0x3319   : > { %v6518_v50 = vsel %vm3965_vm11, %v6516_v4, %v6493_v30 }
0x331a   : > { %6520 = vst.msk [vmem:[%s460_s14] sm:$0xff] %vm483_vm0, %v6518_v50 }
0x331b PF: > { %s23_s21 = sadd.s32 1, %s7869_s21  }
0x331c   : > { %p20_p4 = scmp.ge.s32.totalorder %s23_s21, 4  }
0x331e   :  { %22 = sbr.rel (!%p20_p4) target bundleno = 1 (0x1), region = 126 }

</bundles_post_ra>
